<compile_context>
chip_gen: v5e
topology: v5e:2x2
jax: 0.10.0
libtpu: 0.0.40
codegen_flags: <defaults>
</compile_context>

<pallas_src>
import jax
import jax.numpy as jnp
from jax.experimental import pallas as pl
from jax.experimental.pallas import tpu as pltpu


_MIN_PALLAS_ELEMENTS = 16384          # below this, the XLA-fused jnp path wins
_TILE_MAX_L = 512                     # upper bound on rows per grid step
_TARGET_OUT_BLOCK_BYTES = 8 * 1024 * 1024   # budget for 2x double-buffered out block


def _round_up(x: int, m: int) -> int:
    return ((x + m - 1) // m) * m


def _round_down(x: int, m: int) -> int:
    return (x // m) * m


def _pos_emb_kernel(pos_ref, inv_ref, out_ref):
    """One (tile_l, demb) output tile per grid step.

    Two sliced stores instead of a concatenate: no extra (TL, demb) VMEM temp,
    and (when half % 128 == 0) both stores are fully lane-dense.
    """
    half = inv_ref.shape[-1]
    sinusoid = pos_ref[...] * inv_ref[...]               # (TL,1)*(1,half) -> (TL,half) f32
    out_ref[:, :half] = jnp.sin(sinusoid).astype(out_ref.dtype)
    out_ref[:, half:] = jnp.cos(sinusoid).astype(out_ref.dtype)


def _positional_embedding_ref(pos_seq, inv_freq, out_dtype):
    """Pure-JAX path for tiny shapes (a pallas_call would be pure overhead)."""
    sinusoid = (pos_seq.astype(jnp.float32)[:, None]
                * inv_freq.astype(jnp.float32)[None, :])
    return jnp.concatenate(
        [jnp.sin(sinusoid), jnp.cos(sinusoid)], axis=-1
    ).astype(out_dtype)


def _choose_tile_l(L: int, demb: int, itemsize: int) -> int:
    """VMEM-budget-derived tile length along the sequence axis.

    Budget covers 2 (double-buffered) output blocks of (tile_l, demb); the f32
    sin/cos temps add ~1.5x of one output-block-in-f32 on top, and the (tile_l,1)
    pos block pads to 128 lanes in VMEM (~tile_l*128*4*2 bytes) — total stays
    comfortably under the 32 MiB scoped default on all of v5e/v6e/v7x.
    """
    per_row_bytes = 2 * demb * itemsize                 # output block x 2 buffers
    tile_l = _TARGET_OUT_BLOCK_BYTES // max(per_row_bytes, 1)
    tile_l = max(16, min(_TILE_MAX_L, _round_down(tile_l, 16)))
    tile_l = min(tile_l, _round_up(L, 16))
    # v7x megacore: ensure the "parallel" grid axis has >= 2 steps when L allows,
    # so both TensorCores get work (per-step overhead is only ~0.35 us).
    if pl.cdiv(L, tile_l) < 2 and L > 16:
        tile_l = max(16, _round_up(pl.cdiv(L, 2), 16))
    return tile_l


def _positional_embedding_pallas(pos_seq, inv_freq, out_dtype):
    L = pos_seq.shape[0]
    half = inv_freq.shape[0]
    demb = 2 * half
    itemsize = jnp.dtype(out_dtype).itemsize

    tile_l = _choose_tile_l(L, demb, itemsize)
    grid = (pl.cdiv(L, tile_l),)                         # ragged last tile is masked

    pos2d = pos_seq.astype(jnp.float32).reshape(L, 1)    # no padding copy
    inv2d = inv_freq.astype(jnp.float32).reshape(1, half)

    cost = pl.CostEstimate(
        flops=L * half,                                  # the outer-product mul
        transcendentals=L * demb,                        # one sin/cos per output
        bytes_accessed=L * 4 + half * 4 + L * demb * itemsize,
    )

    return pl.pallas_call(
        _pos_emb_kernel,
        out_shape=jax.ShapeDtypeStruct((L, demb), out_dtype),
        grid=grid,
        in_specs=[
            pl.BlockSpec((tile_l, 1), lambda i: (i, 0)),
            pl.BlockSpec((1, half), lambda i: (0, 0)),
        ],
        out_specs=pl.BlockSpec((tile_l, demb), lambda i: (i, 0)),
        compiler_params=pltpu.CompilerParams(dimension_semantics=("parallel",)),
        cost_estimate=cost,
    )(pos2d, inv2d)


def positional_embedding(pos_seq, inv_freq, bsz=None, *, out_dtype=jnp.float32):
    """JAX/Pallas equivalent of PositionalEmbedding.forward.

    pos_seq : (L,) float
    inv_freq: (demb // 2,) float
    returns : (1, L, demb) or (bsz, L, demb), dtype `out_dtype`

    Note: out_dtype=jnp.bfloat16 is the fast path on v5e (output writeback is
    the binding resource there); f32 default keeps exact parity with PyTorch.
    """
    L = pos_seq.shape[0]
    half = inv_freq.shape[0]
    demb = 2 * half

    if L * demb < _MIN_PALLAS_ELEMENTS:
        pos_emb = _positional_embedding_ref(pos_seq, inv_freq, out_dtype)
    else:
        pos_emb = _positional_embedding_pallas(pos_seq, inv_freq, out_dtype)

    pos_emb = pos_emb[None, :, :]                        # (1, L, demb)
    if bsz is not None:
        # Matches torch .expand; XLA keeps it lazy / fused into consumers.
        pos_emb = jnp.broadcast_to(pos_emb, (bsz, L, demb))
    return pos_emb


if __name__ == "__main__":
    key = jax.random.PRNGKey(0)

    def make_inputs(k, L, demb):
        # inv_freq exactly as in the PyTorch module's __init__.
        inv_freq = 1.0 / (10000.0 ** (jnp.arange(0.0, demb, 2.0) / demb))
        pos_seq = jnp.arange(L, dtype=jnp.float32) + jax.random.uniform(k, (L,))
        return pos_seq, inv_freq

    def reference(pos_seq, inv_freq, bsz):
        sin_inp = pos_seq[:, None] * inv_freq[None, :]
        r = jnp.concatenate([jnp.sin(sin_inp), jnp.cos(sin_inp)], axis=1)[None]
        if bsz is not None:
            r = jnp.broadcast_to(r, (bsz,) + r.shape[1:])
        return r

    k1, k2, k3 = jax.random.split(key, 3)

    # 1) Tiny shape from the module spec (L=8, demb=32) -> pure-JAX fast path.
    pos, inv = make_inputs(k1, 8, 32)
    out = jax.block_until_ready(positional_embedding(pos, inv, bsz=2))
    assert out.shape == (2, 8, 32), out.shape
    assert jnp.allclose(out, reference(pos, inv, 2), atol=1e-5, rtol=1e-5)

    # 2) Lane-aligned Pallas path (half = 128 -> both stores lane-dense),
    #    L=200 is not a multiple of tile_l -> exercises the ragged last block.
    pos, inv = make_inputs(k2, 200, 256)
    out = jax.block_until_ready(positional_embedding(pos, inv, bsz=2))
    assert out.shape == (2, 200, 256), out.shape
    assert jnp.allclose(out, reference(pos, inv, 2), atol=1e-4, rtol=1e-4)

    # 3) Non-lane-aligned Pallas path (half = 48): sliced stores into one
    #    (L, demb) output, no wrapper concat.
    pos, inv = make_inputs(k3, 200, 96)
    out = jax.block_until_ready(positional_embedding(pos, inv))
    assert out.shape == (1, 200, 96), out.shape
    assert jnp.allclose(out, reference(pos, inv, None), atol=1e-4, rtol=1e-4)

    # 3b) Same shape with bf16 output (compute in f32, cast at store).
    out_bf16 = jax.block_until_ready(
        positional_embedding(pos, inv, bsz=2, out_dtype=jnp.bfloat16))
    assert out_bf16.dtype == jnp.bfloat16
    assert jnp.allclose(out_bf16.astype(jnp.float32), reference(pos, inv, 2),
                        atol=1e-2, rtol=1e-2)

    print("KERNEL_OK")
</pallas_src>

<mosaic_0001>
module attributes {stable_mosaic.version = 11 : i64} {
  func.func @_pos_emb_kernel(%arg0: i32, %arg1: memref<112x1xf32, #tpu.memory_space<vmem>>, %arg2: memref<1x128xf32, #tpu.memory_space<vmem>>, %arg3: memref<112x256xf32, #tpu.memory_space<vmem>>) attributes {dimension_semantics = [#tpu.dimension_semantics<parallel>], iteration_bounds = array<i64: 2>, scalar_prefetch = 0 : i64, scratch_operands = 0 : i64, tpu.core_type = #tpu.core_type<tc>, window_params = [{transform_indices = @transform_0, window_bounds = array<i64: 112, 1>}, {pipeline_mode = #tpu.pipeline_mode<synchronous>, transform_indices = @transform_1, window_bounds = array<i64: 1, 128>}, {transform_indices = @transform_2, window_bounds = array<i64: 112, 256>}]} {
    %c0 = arith.constant 0 : index
    %c0_0 = arith.constant 0 : index
    %0 = vector.load %arg1[%c0, %c0_0] : memref<112x1xf32, #tpu.memory_space<vmem>>, vector<112x1xf32>
    %c0_1 = arith.constant 0 : index
    %c0_2 = arith.constant 0 : index
    %1 = vector.load %arg2[%c0_1, %c0_2] : memref<1x128xf32, #tpu.memory_space<vmem>>, vector<1x128xf32>
    %2 = vector.broadcast %0 : vector<112x1xf32> to vector<112x128xf32>
    %3 = vector.broadcast %1 : vector<1x128xf32> to vector<112x128xf32>
    %4 = arith.mulf %2, %3 : vector<112x128xf32>
    %5 = math.sin %4 : vector<112x128xf32>
    %c0_3 = arith.constant 0 : index
    %c0_4 = arith.constant 0 : index
    %6 = vector.load %arg3[%c0_3, %c0_4] : memref<112x256xf32, #tpu.memory_space<vmem>>, vector<112x128xf32>
    tpu.vector_store %arg3[%c0_3, %c0_4], %5 {strides = array<i32>} : memref<112x256xf32, #tpu.memory_space<vmem>>, vector<112x128xf32>,
    %7 = math.cos %4 : vector<112x128xf32>
    %c0_5 = arith.constant 0 : index
    %c128 = arith.constant 128 : index
    %8 = vector.load %arg3[%c0_5, %c128] : memref<112x256xf32, #tpu.memory_space<vmem>>, vector<112x128xf32>
    tpu.vector_store %arg3[%c0_5, %c128], %7 {strides = array<i32>} : memref<112x256xf32, #tpu.memory_space<vmem>>, vector<112x128xf32>,
    return
  }
  func.func @transform_0(%arg0: i32) -> (i32, i32) {
    %c0_i32 = arith.constant 0 : i32
    %c0_i32_0 = arith.constant 0 : i32
    return %arg0, %c0_i32 : i32, i32
  }
  func.func @transform_1(%arg0: i32) -> (i32, i32) {
    %c0_i32 = arith.constant 0 : i32
    %c0_i32_0 = arith.constant 0 : i32
    %c0_i32_1 = arith.constant 0 : i32
    return %c0_i32, %c0_i32_0 : i32, i32
  }
  func.func @transform_2(%arg0: i32) -> (i32, i32) {
    %c0_i32 = arith.constant 0 : i32
    %c0_i32_0 = arith.constant 0 : i32
    return %arg0, %c0_i32 : i32, i32
  }
}

</mosaic_0001>

<bundles_post_ra>
// kernel: tpu_custom_call.1
= control target key start
LH: loop header
LB: loop body
LE: loop exit
PB: predicated region body
PF: predicated region fallthrough
CT: control target
= control target key end

     0   :  { %7 = vsyncpa [#allocation3], 0  ;;  %s7031_s0 = inlined_call_operand.vmem [shape: f32[200,1], index: 0, kind: input, shape index: {}]   ;;  %s7032_s1 = inlined_call_operand.vmem [shape: f32[1,128], index: 1, kind: input, shape index: {}]   ;;  %s7033_s2 = inlined_call_operand.hbm [shape: f32[200,256], index: 2, kind: output, shape index: {}]  }
   0x1   :  { %9 = vsyncpa [#allocation3 + $0x1], 0  ;;  %s4969_s9 = smov 0   ;;  %s4971_s10 = smov 0  }
   0x2   :  { %s4973_s11 = smov 0   ;;  %s4975_s12 = smov 0  }
   0x3 LB: > { %s4990_s13 = sadd.s32 4294967295, %s4942_s12   ;;  %s4713_s14 = sadd.s32 4294967294, %s4942_s12   ;;  %s4942_s12 = sphi %s4975_s12, %s7258_s12   ;;  %s4938_s11 = sphi %s4973_s11, %s7257_s11   ;;  %s4934_s10 = sphi %s4971_s10, %s7256_s10   ;;  %s4930_s9 = sphi %s4969_s9, %s7255_s9  }
   0x4   : > { %s4994_s15 = sadd.s32 1, %s4942_s12   ;;  %s69_s16 = sadd.s32 1, %s4938_s11 }
   0x5   : > { %s66_s17 = ssub.s32 %s4942_s12, %s4994_s15  ;;  %p79_p0 = scmp.ne.s32.totalorder %s4938_s11, %s4934_s10 }
   0x6   : > { %p67_p1 = scmp.eq.s32.totalorder %s66_s17, 0  ;;  %p80_p2 = scmp.eq.s32.totalorder %s4990_s13, 1 }
   0x7   : > { %p85_p3 = scmp.ne.s32.totalorder %s4934_s10, %s4930_s9  ;;  %p86_p4 = scmp.eq.s32.totalorder %s4713_s14, 1 }
   0x8   : > { %s5005_s18 = scalar_select %p67_p1, %s4938_s11, %s69_s16  }
   0x9   : > { %p5007_p5 = por %p80_p2, %p79_p0  ;;  %p5011_p6 = por %p86_p4, %p85_p3 }
   0xa   : > { %p4716_p7 = scmp.ge.s32.totalorder %s4942_s12, 1  ;;  %p124_p8 = scmp.lt.s32.totalorder %s4942_s12, 3 }
   0xc   : > { %p125_p9 = pnand %p4716_p7, %p124_p8 }
   0xe   : > { %128 = sbr.rel (%p125_p9) target bundleno = 759 (0x2f7), region = 28 }
  0x13   : > { %s5018_s21 = smul.u32 14, %s4990_s13  ;;  %v7057_v0 = vmov 0   ;;  %v5031_v15 = vld [vmem:[%s7032_s1] ss:$0 sm:$0xff]  ;;  %v7061_v36 = vmov 683565275  }
  0x14   : > { %4865 = vset.pattern.permute.xlu2 %v7057_v0  ;;  %4864 = vset.pattern.permute.xlu1 %v7057_v0  ;;  %v7055_v38 = vmov 2475754826   ;;  %v7051_v42 = vmov 2131351028   ;;  %v7053_v45 = vmov 2102212464  }
  0x15   : > { %4863 = vset.pattern.permute.xlu0 %v7057_v0  ;;  %p155_p10 = scmp.lt.s32.totalorder %s5018_s21, 24  ;;  %v7048_v48 = vmov 920167782   ;;  %v7046_v51 = vmov 1326507024   ;;  %s147_s29 = sand.u32 1, %s4934_s10  }
  0x16   : > { %s4815_s30 = smul.u32 224, %s147_s29  ;;  %s6970_s8 = scalar_lea.sflag [#allocation3], %s147_s29 }
  0x17   : > { %s156_s22 = scalar_select %p155_p10, %s5018_s21, 24 }
  0x18   : > { %s5320_s3 = scalar_lea.vmem [#allocation2], %s4815_s30  ;;  %s4635_s14 = ssub.s32 (%p5007_p5), 25, %s5018_s21 }
  0x19   : > { %s4717_s23 = sshll.u32 %s156_s22, 3  ;;  %p4636_p11 = scmp.lt.s32.totalorder (%p5007_p5), %s4635_s14, 14 }
  0x1a   : > { %s158_s26 = scalar_lea.vmem %s7031_s0, %s4717_s23 }
  0x1b   : > { %v174_v1 = vld [vmem:[%s158_s26 + $0x20] sm:$0xff]  ;;  %v172_v2 = vld [vmem:[%s158_s26 + $0x10] sm:$0xff]  ;;  %v175_v4 = vld [vmem:[%s158_s26 + $0x28] sm:$0xff] }
  0x1c   : > { %v170_v3 = vld [vmem:[%s158_s26] sm:$0xff]  ;;  %207 = vperm.xlu2 %4865, %v174_v1   ;;  %197 = vperm.xlu1 %4864, %v172_v2   ;;  %v173_v5 = vld [vmem:[%s158_s26 + $0x18] sm:$0xff]  ;;  %v171_v6 = vld [vmem:[%s158_s26 + $0x8] sm:$0xff] }
  0x1d   : > { %187 = vperm.xlu0 %4863, %v170_v3   ;;  %v178_v7 = vld [vmem:[%s158_s26 + $0x40] sm:$0xff]  ;;  %v177_v8 = vld [vmem:[%s158_s26 + $0x38] sm:$0xff]  ;;  %v176_v9 = vld [vmem:[%s158_s26 + $0x30] sm:$0xff] }
  0x1e   : > { %v181_v10 = vld [vmem:[%s158_s26 + $0x58] sm:$0xff]  ;;  %v180_v11 = vld [vmem:[%s158_s26 + $0x50] sm:$0xff]  ;;  %v179_v12 = vld [vmem:[%s158_s26 + $0x48] sm:$0xff] }
  0x1f   : > { %v183_v13 = vld [vmem:[%s158_s26 + $0x68] sm:$0xff]  ;;  %v182_v14 = vld [vmem:[%s158_s26 + $0x60] sm:$0xff] }
  0x24   : > { %212 = vperm.xlu2 %4865, %v175_v4   ;;  %202 = vperm.xlu1 %4864, %v173_v5  }
  0x25   : > { %192 = vperm.xlu0 %4863, %v171_v6  }
  0x2c   : > { %227 = vperm.xlu2 %4865, %v178_v7   ;;  %222 = vperm.xlu1 %4864, %v177_v8  }
  0x2d   : > { %217 = vperm.xlu0 %4863, %v176_v9  }
  0x34   : > { %242 = vperm.xlu2 %4865, %v181_v10   ;;  %237 = vperm.xlu1 %4864, %v180_v11  }
  0x35   : > { %232 = vperm.xlu0 %4863, %v179_v12  }
  0x3c   : > { %252 = vperm.xlu1 %4864, %v183_v13  }
  0x3d   : > { %247 = vperm.xlu0 %4863, %v182_v14  }
  0x8e   : > { %v198_v19 = vpop.permute.xlu1 %197 }
  0x8f   : > { %v188_v16 = vpop.permute.xlu0 %187  ;;  %v5038_v21 = vmul.f32 %v5031_v15, %v198_v19 }
  0x90   : > { %v5034_v17 = vmul.f32 %v5031_v15, %v188_v16 }
  0x91   : > { %v585_v28 = vand.u32 2139095040, %v5038_v21 }
  0x92   : > { %v275_v18 = vand.u32 2139095040, %v5034_v17  ;;  %v272_v22 = vand.u32 2147483647, %v5034_v17 }
  0x93   : > { %v586_v34 = vshrl.u32 %v585_v28, 23 }
  0x94   : > { %v276_v20 = vshrl.u32 %v275_v18, 23  ;;  %v279_v27 = vand.u32 8388607, %v272_v22 }
  0x95   : > { %v4724_v62 = vadd.s32 4294967169, %v586_v34 }
  0x96   : > { %v4718_v23 = vadd.s32 4294967169, %v276_v20  ;;  %v280_v32 = vor.u32 8388608, %v279_v27 }
  0x97   : > { %v193_v24 = vpop.permute.xlu0 %192 }
  0x98   : > { %v5042_v25 = vmul.f32 %v5031_v15, %v193_v24  ;;  %v282_v26 = vadd.s32 1, %v4718_v23  ;;  %v5060_v55 = vshll.u32 %v280_v32, 8  ;;  %v582_v23 = vand.u32 2147483647, %v5038_v21 }
  0x99   : > { %v5093_v24 = vadd.s32 1, %v4724_v62 }
  0x9a   : > { %7131 = vst [vmem:[#allocation5_spill] sm:$0xff] %v5042_v25  ;;  %vm283_vm0 = vcmp.gt.s32.totalorder %v282_v26, 0  ;;  %v430_v30 = vand.u32 2139095040, %v5042_v25  ;;  %v427_v56 = vand.u32 2147483647, %v5042_v25  ;;  %v321_v5 = vand.u32 65535, %v5060_v55 }
  0x9b   : > { %v284_v29 = vsel %vm283_vm0, %v282_v26, 0  ;;  %v322_v8 = vshrl.u32 %v5060_v55, 16  ;;  %vm593_vm8 = vcmp.gt.s32.totalorder %v5093_v24, 0  ;;  %vm274_vm0 = vcmp.lt.s32.totalorder %v5034_v17, 0 }
  0x9c   : > { %v286_v31 = vand.u32 31, %v284_v29  ;;  %v5048_v35 = vshrl.u32 %v284_v29, 5  ;;  %v431_v40 = vshrl.u32 %v430_v30, 23  ;;  %v5087_v9 = vand.u32 8388607, %v427_v56 }
  0x9e   : > { %v287_v33 = vsub.s32 32, %v286_v31  ;;  %v289_v37 = vshll.u32 %v7061_v36, %v286_v31  ;;  %v292_v39 = vshll.u32 %v7055_v38, %v286_v31  ;;  %v295_v44 = vshll.u32 %v7051_v42, %v286_v31 }
  0x9f   : > { %v298_v46 = vshll.u32 %v7053_v45, %v286_v31  ;;  %v301_v50 = vshll.u32 %v7048_v48, %v286_v31  ;;  %vm304_vm1 = vcmp.lt.s32.totalorder %v5048_v35, 1  ;;  %vm307_vm2 = vcmp.lt.s32.totalorder %v5048_v35, 4 }
  0xa0   : > { %v290_v41 = vshrl.u32 %v7055_v38, %v287_v33  ;;  %v293_v43 = vshrl.u32 %v7051_v42, %v287_v33  ;;  %v296_v47 = vshrl.u32 %v7053_v45, %v287_v33  ;;  %v299_v49 = vshrl.u32 %v7048_v48, %v287_v33 }
  0xa1   : > { %v302_v52 = vshrl.u32 %v7046_v51, %v287_v33  ;;  %v4721_v61 = vadd.s32 4294967169, %v431_v40  ;;  %vm306_vm3 = vcmp.lt.s32.totalorder %v5048_v35, 3  ;;  %vm305_vm4 = vcmp.lt.s32.totalorder %v5048_v35, 2 }
  0xa2   : > { %v291_v53 = vor.u32 %v290_v41, %v289_v37  ;;  %v294_v54 = vor.u32 %v293_v43, %v292_v39  ;;  %v297_v57 = vor.u32 %v296_v47, %v295_v44  ;;  %v300_v58 = vor.u32 %v299_v49, %v298_v46 }
  0xa3   : > { %v303_v59 = vor.u32 %v302_v52, %v301_v50  ;;  %v437_v13 = vadd.s32 1, %v4721_v61  ;;  %v288_v14 = vshrl.u32 %v7061_v36, %v287_v33  ;;  %v435_v29 = vor.u32 8388608, %v5087_v9 }
  0xa4   : > { %v312_v60 = vsel %vm304_vm1, %v291_v53, %v294_v54  ;;  %v313_v63 = vsel %vm307_vm2, %v300_v58, 920167782  ;;  %v316_v1 = vsel %vm304_vm1, %v294_v54, %v297_v57  ;;  %v309_v16 = vsel %vm307_vm2, %v297_v57, 2102212464 }
  0xa5   : > { %v317_v2 = vsel %vm307_vm2, %v303_v59, 1326507024  ;;  %v314_v3 = vsel %vm306_vm3, %v297_v57, %v313_v63  ;;  %v308_v26 = vsel %vm304_vm1, %v288_v14, %v291_v53  ;;  %v310_v30 = vsel %vm306_vm3, %v294_v54, %v309_v16 }
  0xa6   : > { %v318_v4 = vsel %vm306_vm3, %v300_v58, %v317_v2  ;;  %v315_v6 = vsel %vm305_vm4, %v312_v60, %v314_v3  ;;  %vm438_vm5 = vcmp.gt.s32.totalorder %v437_v13, 0  ;;  %v311_v49 = vsel %vm305_vm4, %v308_v26, %v310_v30 }
  0xa7   : > { %v319_v7 = vsel %vm305_vm4, %v316_v1, %v318_v4  ;;  %v345_v12 = vand.u32 65535, %v315_v6  ;;  %v346_v18 = vshrl.u32 %v315_v6, 16  ;;  %v439_v47 = vsel %vm438_vm5, %v437_v13, 0 }
  0xa8   : > { %v323_v10 = vand.u32 65535, %v319_v7  ;;  %v324_v11 = vshrl.u32 %v319_v7, 16  ;;  %v441_v61 = vand.u32 31, %v439_v47  ;;  %v440_v3 = vshrl.u32 %v439_v47, 5 }
  0xa9   : > { %v348_v27 = vmul.u32 %v346_v18, %v321_v5  ;;  %v349_v28 = vmul.u32 %v345_v12, %v322_v8  ;;  %v347_v34 = vmul.u32 %v345_v12, %v321_v5  ;;  %v350_v37 = vmul.u32 %v346_v18, %v322_v8 }
  0xaa   : > { %v326_v19 = vmul.u32 %v324_v11, %v321_v5  ;;  %v327_v20 = vmul.u32 %v323_v10, %v322_v8  ;;  %v325_v31 = vmul.u32 %v323_v10, %v321_v5  ;;  %v328_v33 = vmul.u32 %v324_v11, %v322_v8 }
  0xab   : > { %v351_v39 = vshll.u32 %v348_v27, 16  ;;  %v353_v43 = vshll.u32 %v349_v28, 16  ;;  %v352_v62 = vshrl.u32 %v348_v27, 16  ;;  %v354_v63 = vshrl.u32 %v349_v28, 16 }
  0xac   : > { %v329_v32 = vshll.u32 %v326_v19, 16  ;;  %v331_v40 = vshll.u32 %v327_v20, 16  ;;  %v330_v53 = vshrl.u32 %v326_v19, 16  ;;  %v332_v58 = vshrl.u32 %v327_v20, 16 }
  0xad   : > { %vm355_vm7 = vc.u32 %v347_v34, %v351_v39  ;;  %v357_v46 = vadd.s32 %v351_v39, %v347_v34  ;;  %v442_v4 = vsub.s32 32, %v441_v61  ;;  %v444_v5 = vshll.u32 %v7061_v36, %v441_v61 }
  0xae   : > { %vm333_vm6 = vc.u32 %v325_v31, %v329_v32  ;;  %v335_v41 = vadd.s32 %v329_v32, %v325_v31  ;;  %v356_v52 = vsel %vm355_vm7, 1, %v7057_v0  ;;  %v447_v7 = vshll.u32 %v7055_v38, %v441_v61 }
  0xaf   : > { %v334_v44 = vsel %vm333_vm6, 1, %v7057_v0  ;;  %v358_v57 = vadd.s32 %v356_v52, %v350_v37  ;;  %vm359_vm10 = vc.u32 %v357_v46, %v353_v43  ;;  %v361_v1 = vadd.s32 %v357_v46, %v353_v43 }
  0xb0   : > { %v336_v50 = vadd.s32 %v334_v44, %v328_v33  ;;  %vm337_vm9 = vc.u32 %v335_v41, %v331_v40  ;;  %v360_v60 = vsel %vm359_vm10, 1, %v7057_v0  ;;  %v450_v8 = vshll.u32 %v7051_v42, %v441_v61 }
  0xb1   : > { %v338_v54 = vsel %vm337_vm9, 1, %v7057_v0  ;;  %v362_v2 = vadd.s32 %v360_v60, %v358_v57  ;;  %v453_v9 = vshll.u32 %v7053_v45, %v441_v61  ;;  %v445_v11 = vshrl.u32 %v7055_v38, %v442_v4 }
  0xb2   : > { %v340_v59 = vadd.s32 %v338_v54, %v336_v50  ;;  %v448_v12 = vshrl.u32 %v7051_v42, %v442_v4  ;;  %v456_v13 = vshll.u32 %v7048_v48, %v441_v61  ;;  %v451_v16 = vshrl.u32 %v7053_v45, %v442_v4 }
  0xb3   : > { %v363_v6 = vadd.s32 %v362_v2, %v352_v62  ;;  %v454_v18 = vshrl.u32 %v7048_v48, %v442_v4  ;;  %v457_v19 = vshrl.u32 %v7046_v51, %v442_v4  ;;  %v446_v20 = vor.u32 %v445_v11, %v444_v5 }
  0xb4   : > { %v341_v35 = vadd.s32 %v340_v59, %v330_v53  ;;  %v449_v26 = vor.u32 %v448_v12, %v447_v7  ;;  %v5119_v27 = vand.u32 8388607, %v582_v23  ;;  %v452_v30 = vor.u32 %v451_v16, %v450_v8 }
  0xb5   : > { %v364_v14 = vadd.s32 %v363_v6, %v354_v63  ;;  %v455_v31 = vor.u32 %v454_v18, %v453_v9  ;;  %v458_v32 = vor.u32 %v457_v19, %v456_v13  ;;  %v365_v33 = vmul.u32 %v5060_v55, %v311_v49 }
  0xb6   : > { %v342_v10 = vadd.s32 %v341_v35, %v332_v58  ;;  %vm459_vm12 = vcmp.lt.s32.totalorder %v440_v3, 1  ;;  %v5122_v34 = vshll.u32 %v435_v29, 8  ;;  %v594_v37 = vsel %vm593_vm8, %v5093_v24, 0 }
  0xb7   : > { %v368_v28 = vadd.s32 1, %v364_v14  ;;  %vm461_vm13 = vcmp.lt.s32.totalorder %v440_v3, 3  ;;  %vm462_vm14 = vcmp.lt.s32.totalorder %v440_v3, 4  ;;  %v467_v40 = vsel %vm459_vm12, %v446_v20, %v449_v26 }
  0xb8   : > { %vm367_vm11 = vc.u32 %v342_v10, %v361_v1  ;;  %v464_v43 = vsel %vm462_vm14, %v452_v30, 2102212464  ;;  %v468_v44 = vsel %vm462_vm14, %v455_v31, 920167782  ;;  %v471_v46 = vsel %vm459_vm12, %v449_v26, %v452_v30 }
  0xb9   : > { %v369_v39 = vsel %vm367_vm11, %v368_v28, %v364_v14  ;;  %v443_v47 = vshrl.u32 %v7061_v36, %v442_v4  ;;  %vm460_vm15 = vcmp.lt.s32.totalorder %v440_v3, 2  ;;  %v469_v55 = vsel %vm461_vm13, %v452_v30, %v468_v44 }
  0xba   : > { %v370_v41 = vadd.s32 %v369_v39, %v365_v33  ;;  %v472_v29 = vsel %vm462_vm14, %v458_v32, 1326507024  ;;  %v470_v50 = vsel %vm460_vm15, %v467_v40, %v469_v55  ;;  %v476_v52 = vand.u32 65535, %v5122_v34 }
  0xbb   : > { %v473_v24 = vsel %vm461_vm13, %v455_v31, %v472_v29  ;;  %v463_v53 = vsel %vm459_vm12, %v443_v47, %v446_v20  ;;  %v465_v54 = vsel %vm461_vm13, %v449_v26, %v464_v43  ;;  %v501_v58 = vshrl.u32 %v470_v50, 16 }
  0xbc   : > { %v371_v49 = vadd.s32 536870912, %v370_v41  ;;  %v474_v57 = vsel %vm460_vm15, %v471_v46, %v473_v24  ;;  %v500_v62 = vand.u32 65535, %v470_v50  ;;  %v477_v63 = vshrl.u32 %v5122_v34, 16 }
  0xbd   : > { %v478_v60 = vand.u32 65535, %v474_v57  ;;  %v479_v61 = vshrl.u32 %v474_v57, 16  ;;  %v503_v2 = vmul.u32 %v501_v58, %v476_v52  ;;  %v5139_v35 = vand.u32 31, %v594_v37 }
  0xbe   : > { %v372_v59 = vshrl.u32 %v371_v49, 30  ;;  %v590_v6 = vor.u32 8388608, %v5119_v27  ;;  %v5142_v7 = vshrl.u32 %v594_v37, 5  ;;  %v366_v8 = vadd.s32 %v361_v1, %v342_v10 }
  0xbf   : > { %v481_v5 = vmul.u32 %v479_v61, %v476_v52  ;;  %v5145_v9 = vsel %vm460_vm15, %v463_v53, %v465_v54  ;;  %v482_v11 = vmul.u32 %v478_v60, %v477_v63  ;;  %v506_v12 = vshll.u32 %v503_v2, 16 }
  0xc0   : > { %v373_v4 = vshll.u32 %v372_v59, 30  ;;  %v480_v14 = vmul.u32 %v478_v60, %v476_v52  ;;  %v504_v18 = vmul.u32 %v500_v62, %v477_v63  ;;  %v396_v19 = vsub.s32 4, %v372_v59 }
  0xc1   : > { %v484_v16 = vshll.u32 %v481_v5, 16  ;;  %v502_v20 = vmul.u32 %v500_v62, %v476_v52  ;;  %v505_v26 = vmul.u32 %v501_v58, %v477_v63  ;;  %v5148_v28 = vsub.s32 32, %v5139_v35 }
  0xc2   : > { %v374_v13 = vsub.s32 %v370_v41, %v373_v4  ;;  %v483_v31 = vmul.u32 %v479_v61, %v477_v63  ;;  %v486_v1 = vshll.u32 %v482_v11, 16  ;;  %v508_v37 = vshll.u32 %v504_v18, 16 }
  0xc3   : > { %vm488_vm2 = vc.u32 %v480_v14, %v484_v16  ;;  %v490_v10 = vadd.s32 %v484_v16, %v480_v14  ;;  %vm510_vm3 = vc.u32 %v502_v20, %v506_v12  ;;  %v512_v41 = vadd.s32 %v506_v12, %v502_v20 }
  0xc4   : > { %vm375_vm1 = vcmp.lt.s32.totalorder %v374_v13, 0  ;;  %v376_v30 = vsub.s32 0, %v374_v13  ;;  %v489_v3 = vsel %vm488_vm2, 1, %v7057_v0  ;;  %v511_v39 = vsel %vm510_vm3, 1, %v7057_v0 }
  0xc5   : > { %v491_v33 = vadd.s32 %v489_v3, %v483_v31  ;;  %vm492_vm4 = vc.u32 %v490_v10, %v486_v1  ;;  %v513_v43 = vadd.s32 %v511_v39, %v505_v26  ;;  %v397_v44 = vsel %vm274_vm0, %v396_v19, %v372_v59 }
  0xc6   : > { %v377_v32 = vsel %vm375_vm1, %v376_v30, %v374_v13  ;;  %v493_v46 = vsel %vm492_vm4, 1, %v7057_v0  ;;  %v507_v47 = vshrl.u32 %v503_v2, 16  ;;  %v599_v55 = vshll.u32 %v7061_v36, %v5139_v35 }
  0xc7   : > { %v378_v40 = vclz %v377_v32  ;;  %v485_v49 = vshrl.u32 %v481_v5, 16  ;;  %v495_v50 = vadd.s32 %v493_v46, %v491_v33  ;;  %vm514_vm5 = vc.u32 %v512_v41, %v508_v37 }
  0xc8   : > { %vm5159_vm6 = vcmp.le.f32.partialorder %v272_v22, 0.7853982  ;;  %v487_v52 = vshrl.u32 %v482_v11, 16  ;;  %v509_v53 = vshrl.u32 %v504_v18, 16  ;;  %v515_v54 = vsel %vm514_vm5, 1, %v7057_v0 }
  0xc9   : > { %v4719_v29 = vadd.s32 4294967294, %v378_v40  ;;  %v600_v57 = vshrl.u32 %v7055_v38, %v5148_v28  ;;  %v496_v58 = vadd.s32 %v495_v50, %v485_v49  ;;  %v517_v59 = vadd.s32 %v515_v54, %v513_v43  ;;  %v208_v50 = vpop.permute.xlu2 %207 }
  0xca   : > { %v603_v60 = vshrl.u32 %v7051_v42, %v5148_v28  ;;  %v5168_v62 = vadd.s32 %v512_v41, %v508_v37  ;;  %v602_v22 = vshll.u32 %v7055_v38, %v5139_v35  ;;  %v605_v63 = vshll.u32 %v7051_v42, %v5139_v35 }
  0xcb   : > { %vm4720_vm7 = vcmp.lt.s32.totalorder %v4719_v29, 0  ;;  %v497_v5 = vadd.s32 %v496_v58, %v487_v52  ;;  %v606_v11 = vshrl.u32 %v7053_v45, %v5148_v28  ;;  %v518_v12 = vadd.s32 %v517_v59, %v507_v47  ;;  %v203_v58 = vpop.permute.xlu1 %202 }
  0xcc   : > { %v381_v61 = vsel %vm4720_vm7, 0, %v4719_v29  ;;  %v5176_v14 = vor.u32 %v600_v57, %v599_v55  ;;  %v608_v16 = vshll.u32 %v7053_v45, %v5139_v35  ;;  %v609_v18 = vshrl.u32 %v7048_v48, %v5148_v28 }
  0xcd   : > { %v382_v2 = vsub.s32 32, %v381_v61  ;;  %v386_v4 = vsub.s32 4294967266, %v381_v61  ;;  %v383_v19 = vshll.u32 %v374_v13, %v381_v61  ;;  %v5182_v30 = vor.u32 %v603_v60, %v602_v22 }
  0xce   : > { %v519_v31 = vadd.s32 %v518_v12, %v509_v53  ;;  %v610_v1 = vor.u32 %v609_v18, %v608_v16  ;;  %v611_v3 = vshll.u32 %v7048_v48, %v5139_v35  ;;  %v612_v10 = vshrl.u32 %v7046_v51, %v5148_v28 }
  0xcf   : > { %v384_v20 = vshrl.u32 %v366_v8, %v382_v2  ;;  %v387_v26 = vadd.s32 127, %v386_v4  ;;  %vm522_vm8 = vc.u32 %v497_v5, %v5168_v62  ;;  %v607_v37 = vor.u32 %v606_v11, %v605_v63 }
  0xd0   : > { %v520_v13 = vmul.u32 %v5122_v34, %v5145_v9  ;;  %v523_v8 = vadd.s32 1, %v519_v31  ;;  %v613_v39 = vor.u32 %v612_v10, %v611_v3  ;;  %vm614_vm9 = vcmp.lt.s32.totalorder %v5142_v7, 1 }
  0xd1   : > { %v385_v32 = vor.u32 %v384_v20, %v383_v19  ;;  %v388_v33 = vshll.u32 %v387_v26, 23  ;;  %v5194_v41 = vsel %vm5159_vm6, 0, %v397_v44  ;;  %vm616_vm10 = vcmp.lt.s32.totalorder %v5142_v7, 3 }
  0xd2   : > { %vm617_vm11 = vcmp.lt.s32.totalorder %v5142_v7, 4  ;;  %v524_v43 = vsel %vm522_vm8, %v523_v8, %v519_v31  ;;  %v622_v34 = vsel %vm614_vm9, %v5176_v14, %v5182_v30  ;;  %v626_v55 = vsel %vm614_vm9, %v5182_v30, %v607_v37 }
  0xd3   : > { %v389_v40 = vor.u32 4788187, %v388_v33  ;;  %v392_v35 = vcvt.s32.f32 %v385_v32  ;;  %v623_v9 = vsel %vm617_vm11, %v610_v1, 920167782  ;;  %v525_v47 = vadd.s32 %v524_v43, %v520_v13 }
  0xd4   : > { %v624_v44 = vsel %vm616_vm10, %v607_v37, %v623_v9  ;;  %vm615_vm12 = vcmp.lt.s32.totalorder %v5142_v7, 2  ;;  %v627_v29 = vsel %vm617_vm11, %v613_v39, 1326507024  ;;  %v5214_v49 = vshll.u32 %v590_v6, 8 }
  0xd5   : > { %v390_v46 = vand.u32 2147483647, %v389_v40  ;;  %v526_v53 = vadd.s32 536870912, %v525_v47  ;;  %v625_v54 = vsel %vm615_vm12, %v622_v34, %v624_v44  ;;  %v628_v57 = vsel %vm616_vm10, %v610_v1, %v627_v29 }
  0xd6   : > { %v416_v59 = vadd.s32 3, %v5194_v41  ;;  %v629_v60 = vsel %vm615_vm12, %v626_v55, %v628_v57  ;;  %v5226_v63 = vmul.f32 %v5031_v15, %v208_v50  ;;  %v631_v2 = vand.u32 65535, %v5214_v49 }
  0xd7   : > { %v393_v52 = vmul.f32 %v392_v35, %v390_v46  ;;  %v5223_v22 = vshrl.u32 %v526_v53, 30  ;;  %v633_v27 = vand.u32 65535, %v629_v60  ;;  %v634_v6 = vshrl.u32 %v629_v60, 16 }
  0xd8   : > { %7134 = vst [vmem:[#allocation6_spill] sm:$0xff] %v5226_v63  ;;  %v632_v4 = vshrl.u32 %v5214_v49, 16  ;;  %v656_v11 = vshrl.u32 %v625_v54, 16  ;;  %v5231_v12 = vmul.f32 %v5031_v15, %v203_v58  ;;  %v598_v19 = vshrl.u32 %v7061_v36, %v5148_v28 }
  0xd9   : > { %v394_v61 = vxor.u32 2147483648, %v393_v52  ;;  %v528_v18 = vshll.u32 %v5223_v22, 30  ;;  %v5243_v26 = vand.u32 3, %v416_v59  ;;  %v636_v31 = vmul.u32 %v634_v6, %v631_v2 }
  0xda   : > { %7135 = vst [vmem:[#allocation7_spill] sm:$0xff] %v5231_v12  ;;  %v5245_v1 = vmul.u32 %v633_v27, %v632_v4  ;;  %v521_v3 = vadd.s32 %v5168_v62, %v497_v5  ;;  %v619_v28 = vsel %vm617_vm11, %v607_v37, 2102212464  ;;  %v635_v32 = vmul.u32 %v633_v27, %v631_v2 }
  0xdb   : > { %v395_v16 = vsel %vm274_vm0, %v394_v61, %v393_v52  ;;  %v5250_v10 = vsub.s32 %v525_v47, %v528_v18  ;;  %v639_v33 = vshll.u32 %v636_v31, 16  ;;  %v655_v24 = vand.u32 65535, %v625_v54 }
  0xdc   : > { %v5241_v20 = vsel %vm5159_vm6, %v5034_v17, %v395_v16  ;;  %v5254_v13 = vmul.u32 %v656_v11, %v631_v2  ;;  %v638_v35 = vmul.u32 %v634_v6, %v632_v4  ;;  %v641_v43 = vshll.u32 %v5245_v1, 16 }
  0xdd   : > { %v400_v15 = vmul.f32 %v5241_v20, %v5241_v20  ;;  %vm530_vm13 = vcmp.lt.s32.totalorder %v5250_v10, 0  ;;  %v531_v40 = vsub.s32 0, %v5250_v10  ;;  %vm643_vm14 = vc.u32 %v635_v32, %v639_v33 }
  0xde   : > { %v645_v62 = vadd.s32 %v639_v33, %v635_v32  ;;  %v644_v9 = vsel %vm643_vm14, 1, %v7057_v0  ;;  %v661_v44 = vshll.u32 %v5254_v13, 16  ;;  %v618_v50 = vsel %vm614_vm9, %v598_v19, %v5176_v14 }
  0xdf   : > { %v401_v8 = vmul.f32 -0.001358992, %v400_v15  ;;  %v408_v39 = vmul.f32 -0.00019511016, %v400_v15  ;;  %v532_v37 = vsel %vm530_vm13, %v531_v40, %v5250_v10  ;;  %v646_v47 = vadd.s32 %v644_v9, %v638_v35 }
  0xe0   : > { %v533_v46 = vclz %v532_v37  ;;  %vm647_vm15 = vc.u32 %v645_v62, %v641_v43  ;;  %v620_v54 = vsel %vm616_vm10, %v5182_v30, %v619_v28  ;;  %v657_v57 = vmul.u32 %v655_v24, %v631_v2 }
  0xe1   : > { %v402_v5 = vadd.f32 0.041655596, %v401_v8  ;;  %v409_v34 = vadd.f32 0.008332121, %v408_v39  ;;  %v648_v52 = vsel %vm647_vm15, 1, %v7057_v0  ;;  %v659_v58 = vmul.u32 %v655_v24, %v632_v4 }
  0xe2   : > { %v4722_v53 = vadd.s32 4294967294, %v533_v46  ;;  %vm429_vm0 = vcmp.lt.s32.totalorder %v5042_v25, 0  ;;  %v650_v61 = vadd.s32 %v648_v52, %v646_v47  ;;  %v660_v27 = vmul.u32 %v656_v11, %v632_v4 }
  0xe3   : > { %v403_v55 = vmul.f32 %v402_v5, %v400_v15  ;;  %v410_v29 = vmul.f32 %v409_v34, %v400_v15  ;;  %vm419_vm1 = vcmp.eq.s32.totalorder %v5243_v26, 0  ;;  %vm422_vm2 = vcmp.eq.s32.totalorder %v5243_v26, 2 }
  0xe4   : > { %vm4723_vm3 = vcmp.lt.s32.totalorder %v4722_v53, 0  ;;  %v551_v14 = vsub.s32 4, %v5223_v22  ;;  %vm665_vm4 = vc.u32 %v657_v57, %v661_v44  ;;  %v667_v6 = vadd.s32 %v661_v44, %v657_v57 }
  0xe5   : > { %v404_v59 = vadd.f32 -0.4999988, %v403_v55  ;;  %v411_v60 = vadd.f32 -0.16666654, %v410_v29  ;;  %vm418_vm5 = vcmp.lt.s32.totalorder %v5243_v26, 2  ;;  %v536_v2 = vsel %vm4723_vm3, 0, %v4722_v53 }
  0xe6   : > { %v640_v18 = vshrl.u32 %v636_v31, 16  ;;  %vm415_vm6 = vweird.f32 %v5034_v17  ;;  %v537_v19 = vsub.s32 32, %v536_v2  ;;  %v541_v4 = vsub.s32 4294967266, %v536_v2 }
  0xe7   : > { %v405_v16 = vmul.f32 %v404_v59, %v400_v15  ;;  %v412_v30 = vmul.f32 %v411_v60, %v400_v15  ;;  %v663_v11 = vshll.u32 %v659_v58, 16  ;;  %v666_v28 = vsel %vm665_vm4, 1, %v7057_v0 }
  0xe8   : > { %v651_v24 = vadd.s32 %v650_v61, %v640_v18  ;;  %v668_v8 = vadd.s32 %v666_v28, %v660_v27  ;;  %v538_v15 = vshll.u32 %v5250_v10, %v536_v2  ;;  %v539_v39 = vshrl.u32 %v521_v3, %v537_v19 }
  0xe9   : > { %v5276_v32 = vadd.f32 1.0, %v405_v16  ;;  %v413_v33 = vadd.f32 1.0, %v412_v30  ;;  %v542_v40 = vadd.s32 127, %v541_v4  ;;  %vm669_vm7 = vc.u32 %v667_v6, %v663_v11 }
  0xea   : > { %v642_v43 = vshrl.u32 %v5245_v1, 16  ;;  %v670_v62 = vsel %vm669_vm7, 1, %v7057_v0  ;;  %v540_v5 = vor.u32 %v539_v39, %v538_v15  ;;  %v662_v37 = vshrl.u32 %v5254_v13, 16 }
  0xeb   : > { %v5281_v31 = vmul.f32 %v413_v33, %v5241_v20  ;;  %v7040_v35 = vxor.u32 2147483648, %v5276_v32  ;;  %v543_v34 = vshll.u32 %v542_v40, 23  ;;  %v672_v9 = vadd.s32 %v670_v62, %v668_v8 }
  0xec   : > { %v621_v10 = vsel %vm615_vm12, %v618_v50, %v620_v54  ;;  %v652_v20 = vadd.s32 %v651_v24, %v642_v43  ;;  %v737_v46 = vand.u32 2147483647, %v5231_v12  ;;  %v552_v1 = vsel %vm429_vm0, %v551_v14, %v5223_v22 }
  0xed   : > { %v7041_v3 = vxor.u32 2147483648, %v5281_v31  ;;  %v544_v47 = vor.u32 4788187, %v543_v34  ;;  %v664_v44 = vshrl.u32 %v659_v58, 16  ;;  %v673_v55 = vadd.s32 %v672_v9, %v662_v37 }
  0xee   : > { %v424_v7 = vsel %vm422_vm2, %v7040_v35, %v5281_v31  ;;  %v671_v29 = vadd.s32 %v667_v6, %v663_v11  ;;  %v740_v50 = vand.u32 2139095040, %v5231_v12  ;;  %v547_v53 = vcvt.s32.f32 %v540_v5 }
  0xef   : > { %v421_v13 = vsel %vm419_vm1, %v5276_v32, %v7041_v3  ;;  %v545_v52 = vand.u32 2147483647, %v544_v47  ;;  %v674_v54 = vadd.s32 %v673_v55, %v664_v44  ;;  %v744_v59 = vand.u32 8388607, %v737_v46 }
  0xf0   : > { %v425_v22 = vsel %vm418_vm5, %v421_v13, %v424_v7  ;;  %vm677_vm8 = vc.u32 %v652_v20, %v671_v29  ;;  %v741_v58 = vshrl.u32 %v740_v50, 23  ;;  %vm5315_vm9 = vcmp.le.f32.partialorder %v427_v56, 0.7853982 }
  0xf1   : > { %v426_v57 = vsel %vm415_vm6, nan, %v425_v22  ;;  %v548_v61 = vmul.f32 %v547_v53, %v545_v52  ;;  %v678_v26 = vadd.s32 1, %v674_v54  ;;  %v895_v27 = vand.u32 2139095040, %v5226_v63 }
  0xf2   : > { %2442 = vst [vmem:[%s5320_s3] sm:$0xff] %v426_v57  ;;  %v5325_v14 = vsel %vm5315_vm9, 0, %v552_v1  ;;  %v675_v6 = vmul.u32 %v5214_v49, %v621_v10  ;;  %v4727_v16 = vadd.s32 4294967169, %v741_v58  ;;  %v745_v18 = vor.u32 8388608, %v744_v59 }
  0xf3   : > { %v549_v30 = vxor.u32 2147483648, %v548_v61  ;;  %v679_v56 = vsel %vm677_vm8, %v678_v26, %v674_v54  ;;  %v896_v4 = vshrl.u32 %v895_v27, 23  ;;  %v571_v28 = vadd.s32 3, %v5325_v14 }
  0xf4   : > { %v680_v2 = vadd.s32 %v679_v56, %v675_v6  ;;  %v747_v19 = vadd.s32 1, %v4727_v16  ;;  %v892_v49 = vand.u32 2147483647, %v5226_v63  ;;  %vm584_vm11 = vcmp.lt.s32.totalorder %v5038_v21, 0 }
  0xf5   : > { %v550_v11 = vsel %vm429_vm0, %v549_v30, %v548_v61  ;;  %v5336_v43 = vshll.u32 %v745_v18, 8  ;;  %v4730_v62 = vadd.s32 4294967169, %v896_v4  ;;  %vm5340_vm12 = vcmp.le.f32.partialorder %v582_v23, 0.7853982 }
  0xf6   : > { %v553_v33 = vsel %vm5315_vm9, %v5042_v25, %v550_v11  ;;  %v681_v24 = vadd.s32 536870912, %v680_v2  ;;  %vm748_vm10 = vcmp.gt.s32.totalorder %v747_v19, 0  ;;  %v5344_v9 = vand.u32 3, %v571_v28 }
  0xf7   : > { %v555_v8 = vmul.f32 %v553_v33, %v553_v33  ;;  %v749_v15 = vsel %vm748_vm10, %v747_v19, 0  ;;  %v5348_v1 = vand.u32 8388607, %v892_v49  ;;  %v676_v13 = vadd.s32 %v671_v29, %v652_v20 }
  0xf8   : > { %v682_v39 = vshrl.u32 %v681_v24, 30  ;;  %v751_v40 = vand.u32 31, %v749_v15  ;;  %v5353_v22 = vand.u32 65535, %v5336_v43  ;;  %v5356_v23 = vshrl.u32 %v5336_v43, 16 }
  0xf9   : > { %v556_v5 = vmul.f32 -0.001358992, %v555_v8  ;;  %v563_v34 = vmul.f32 -0.00019511016, %v555_v8  ;;  %v5358_v52 = vadd.s32 1, %v4730_v62  ;;  %v5360_v57 = vshrl.u32 %v749_v15, 5 }
  0xfa   : > { %v683_v10 = vshll.u32 %v682_v39, 30  ;;  %v752_v47 = vsub.s32 32, %v751_v40  ;;  %v706_v7 = vsub.s32 4, %v682_v39  ;;  %v754_v58 = vshll.u32 %v7061_v36, %v751_v40 }
  0xfb   : > { %v557_v44 = vadd.f32 0.041655596, %v556_v5  ;;  %v564_v55 = vadd.f32 0.008332121, %v563_v34  ;;  %vm577_vm14 = vcmp.eq.s32.totalorder %v5344_v9, 2  ;;  %vm574_vm15 = vcmp.eq.s32.totalorder %v5344_v9, 0 }
  0xfc   : > { %v5350_v50 = vsub.s32 %v680_v2, %v683_v10  ;;  %v755_v29 = vshrl.u32 %v7055_v38, %v752_v47  ;;  %v758_v59 = vshrl.u32 %v7051_v42, %v752_v47  ;;  %v707_v26 = vsel %vm584_vm11, %v706_v7, %v682_v39 }
  0xfd   : > { %v558_v53 = vmul.f32 %v557_v44, %v555_v8  ;;  %v565_v54 = vmul.f32 %v564_v55, %v555_v8  ;;  %v761_v27 = vshrl.u32 %v7053_v45, %v752_v47  ;;  %v757_v16 = vshll.u32 %v7055_v38, %v751_v40 }
  0xfe   : > { %vm685_vm13 = vcmp.lt.s32.totalorder %v5350_v50, 0  ;;  %v686_v20 = vsub.s32 0, %v5350_v50  ;;  %v760_v30 = vshll.u32 %v7051_v42, %v751_v40  ;;  %v764_v56 = vshrl.u32 %v7048_v48, %v752_v47 }
  0xff   : > { %v559_v60 = vadd.f32 -0.4999988, %v558_v53  ;;  %v566_v61 = vadd.f32 -0.16666654, %v565_v54  ;;  %vm573_vm0 = vcmp.lt.s32.totalorder %v5344_v9, 2  ;;  %v753_v4 = vshrl.u32 %v7061_v36, %v752_v47 }
 0x100   : > { %v687_v6 = vsel %vm685_vm13, %v686_v20, %v5350_v50  ;;  %vm570_vm1 = vweird.f32 %v5042_v25  ;;  %v5381_v11 = vsel %vm5340_vm12, 0, %v707_v26  ;;  %v756_v28 = vor.u32 %v755_v29, %v754_v58 }
 0x101   : > { %v560_v2 = vmul.f32 %v559_v60, %v555_v8  ;;  %v567_v18 = vmul.f32 %v566_v61, %v555_v8  ;;  %v688_v19 = vclz %v687_v6  ;;  %v759_v24 = vor.u32 %v758_v59, %v757_v16 }
 0x102   : > { %v763_v15 = vshll.u32 %v7053_v45, %v751_v40  ;;  %v762_v8 = vor.u32 %v761_v27, %v760_v30  ;;  %v766_v10 = vshll.u32 %v7048_v48, %v751_v40  ;;  %v767_v44 = vshrl.u32 %v7046_v51, %v752_v47 }
 0x103   : > { %v5384_v39 = vadd.f32 1.0, %v560_v2  ;;  %v568_v62 = vadd.f32 1.0, %v567_v18  ;;  %v4725_v5 = vadd.s32 4294967294, %v688_v19  ;;  %vm769_vm2 = vcmp.lt.s32.totalorder %v5360_v57, 1 }
 0x104   : > { %v765_v34 = vor.u32 %v764_v56, %v763_v15  ;;  %vm770_vm4 = vcmp.lt.s32.totalorder %v5360_v57, 2  ;;  %v768_v54 = vor.u32 %v767_v44, %v766_v10  ;;  %vm771_vm5 = vcmp.lt.s32.totalorder %v5360_v57, 3 }
 0x105   : > { %7140 = vst [vmem:[#allocation8_spill] sm:$0xff] %v5384_v39  ;;  %v5389_v55 = vmul.f32 %v568_v62, %v553_v33  ;;  %v7034_v7 = vxor.u32 2147483648, %v5384_v39  ;;  %vm4726_vm3 = vcmp.lt.s32.totalorder %v4725_v5, 0  ;;  %vm772_vm7 = vcmp.lt.s32.totalorder %v5360_v57, 4 }
 0x106   : > { %v691_v53 = vsel %vm4726_vm3, 0, %v4725_v5  ;;  %v773_v47 = vsel %vm769_vm2, %v753_v4, %v756_v28  ;;  %v774_v33 = vsel %vm772_vm7, %v762_v8, 2102212464  ;;  %v777_v59 = vsel %vm769_vm2, %v756_v28, %v759_v24 }
 0x107   : > { %7141 = vst [vmem:[#allocation9_spill] sm:$0xff] %v5389_v55  ;;  %v7035_v58 = vxor.u32 2147483648, %v5389_v55  ;;  %v692_v40 = vsub.s32 32, %v691_v53  ;;  %v579_v20 = vsel %vm577_vm14, %v7034_v7, %v5389_v55  ;;  %v696_v29 = vsub.s32 4294967266, %v691_v53 }
 0x108   : > { %v778_v60 = vsel %vm772_vm7, %v765_v34, 920167782  ;;  %v693_v26 = vshll.u32 %v5350_v50, %v691_v53  ;;  %v781_v2 = vsel %vm769_vm2, %v759_v24, %v762_v8  ;;  %v775_v9 = vsel %vm771_vm5, %v759_v24, %v774_v33 }
 0x109   : > { %v576_v61 = vsel %vm574_vm15, %v5384_v39, %v7035_v58  ;;  %v694_v27 = vshrl.u32 %v676_v13, %v692_v40  ;;  %v779_v6 = vsel %vm771_vm5, %v762_v8, %v778_v60  ;;  %v697_v30 = vadd.s32 127, %v696_v29 }
 0x10a   : > { %v580_v16 = vsel %vm573_vm0, %v576_v61, %v579_v20  ;;  %v780_v56 = vsel %vm770_vm4, %v777_v59, %v779_v6  ;;  %v782_v13 = vsel %vm772_vm7, %v768_v54, 1326507024  ;;  %v900_v8 = vor.u32 8388608, %v5348_v1 }
 0x10b   : > { %v581_v18 = vsel %vm570_vm1, nan, %v580_v16  ;;  %v695_v19 = vor.u32 %v694_v27, %v693_v26  ;;  %v810_v50 = vand.u32 65535, %v780_v56  ;;  %v698_v4 = vshll.u32 %v697_v30, 23 }
 0x10c   : > { %v783_v28 = vsel %vm771_vm5, %v765_v34, %v782_v13  ;;  %v811_v15 = vshrl.u32 %v780_v56, 16  ;;  %2443 = vst [vmem:[%s5320_s3 + $0x10] sm:$0xff] %v581_v18  ;;  %vm903_vm8 = vcmp.gt.s32.totalorder %v5358_v52, 0  ;;  %v5439_v40 = vadd.s32 3, %v5381_v11 }
 0x10d   : > { %v784_v62 = vsel %vm770_vm4, %v781_v2, %v783_v28  ;;  %v814_v5 = vmul.u32 %v810_v50, %v5356_v23  ;;  %v699_v10 = vor.u32 4788187, %v698_v4  ;;  %v702_v24 = vcvt.s32.f32 %v695_v19 }
 0x10e   : > { %v788_v44 = vand.u32 65535, %v784_v62  ;;  %v789_v53 = vshrl.u32 %v784_v62, 16  ;;  %v813_v54 = vmul.u32 %v811_v15, %v5353_v22  ;;  %v5443_v34 = vsel %vm770_vm4, %v773_v47, %v775_v9 }
 0x10f   : > { %v812_v33 = vmul.u32 %v810_v50, %v5353_v22  ;;  %v700_v20 = vand.u32 2147483647, %v699_v10  ;;  %v904_v60 = vsel %vm903_vm8, %v5358_v52, 0  ;;  %v815_v61 = vmul.u32 %v811_v15, %v5356_v23 }
 0x110   : > { %v791_v29 = vmul.u32 %v789_v53, %v5353_v22  ;;  %v792_v59 = vmul.u32 %v788_v44, %v5356_v23  ;;  %v816_v26 = vshll.u32 %v813_v54, 16  ;;  %v818_v27 = vshll.u32 %v814_v5, 16 }
 0x111   : > { %v819_v6 = vshrl.u32 %v814_v5, 16  ;;  %v703_v16 = vmul.f32 %v702_v24, %v700_v20  ;;  %v790_v30 = vmul.u32 %v788_v44, %v5353_v22  ;;  %v793_v57 = vmul.u32 %v789_v53, %v5356_v23 }
 0x112   : > { %v794_v47 = vshll.u32 %v791_v29, 16  ;;  %v796_v56 = vshll.u32 %v792_v59, 16  ;;  %vm820_vm9 = vc.u32 %v812_v33, %v816_v26  ;;  %v822_v2 = vadd.s32 %v816_v26, %v812_v33 }
 0x113   : > { %v906_v18 = vand.u32 31, %v904_v60  ;;  %v704_v19 = vxor.u32 2147483648, %v703_v16  ;;  %v821_v52 = vsel %vm820_vm9, 1, %v7057_v0  ;;  %v817_v4 = vshrl.u32 %v813_v54, 16 }
 0x114   : > { %vm798_vm10 = vc.u32 %v790_v30, %v794_v47  ;;  %v800_v13 = vadd.s32 %v794_v47, %v790_v30  ;;  %v823_v9 = vadd.s32 %v821_v52, %v815_v61  ;;  %vm824_vm13 = vc.u32 %v822_v2, %v818_v27 }
 0x115   : > { %v799_v50 = vsel %vm798_vm10, 1, %v7057_v0  ;;  %v705_v22 = vsel %vm584_vm11, %v704_v19, %v703_v16  ;;  %v825_v23 = vsel %vm824_vm13, 1, %v7057_v0  ;;  %v5461_v10 = vsub.s32 32, %v906_v18 }
 0x116   : > { %v801_v28 = vadd.s32 %v799_v50, %v793_v57  ;;  %vm802_vm14 = vc.u32 %v800_v13, %v796_v56  ;;  %v708_v15 = vsel %vm5340_vm12, %v5038_v21, %v705_v22  ;;  %v827_v5 = vadd.s32 %v825_v23, %v823_v9 }
 0x117   : > { %v803_v62 = vsel %vm802_vm14, 1, %v7057_v0  ;;  %v710_v44 = vmul.f32 %v708_v15, %v708_v15  ;;  %v795_v53 = vshrl.u32 %v791_v29, 16  ;;  %v5463_v24 = vshrl.u32 %v904_v60, 5 }
 0x118   : > { %v805_v54 = vadd.s32 %v803_v62, %v801_v28  ;;  %v797_v33 = vshrl.u32 %v792_v59, 16  ;;  %v5465_v20 = vadd.s32 %v822_v2, %v818_v27  ;;  %v828_v61 = vadd.s32 %v827_v5, %v817_v4 }
 0x119   : > { %v909_v26 = vshll.u32 %v7061_v36, %v906_v18  ;;  %v711_v16 = vmul.f32 -0.001358992, %v710_v44  ;;  %v718_v30 = vmul.f32 -0.00019511016, %v710_v44  ;;  %v912_v57 = vshll.u32 %v7055_v38, %v906_v18 }
 0x11a   : > { %v806_v37 = vadd.s32 %v805_v54, %v795_v53  ;;  %v829_v47 = vadd.s32 %v828_v61, %v819_v6  ;;  %v910_v56 = vshrl.u32 %v7055_v38, %v5461_v10  ;;  %v913_v29 = vshrl.u32 %v7051_v42, %v5461_v10 }
 0x11b   : > { %v915_v60 = vshll.u32 %v7051_v42, %v906_v18  ;;  %v712_v59 = vadd.f32 0.041655596, %v711_v16  ;;  %v719_v27 = vadd.f32 0.008332121, %v718_v30  ;;  %v918_v19 = vshll.u32 %v7053_v45, %v906_v18 }
 0x11c   : > { %v5474_v2 = vadd.s32 %v806_v37, %v797_v33  ;;  %v833_v13 = vadd.s32 1, %v829_v47  ;;  %v916_v52 = vshrl.u32 %v7053_v45, %v5461_v10  ;;  %v919_v6 = vshrl.u32 %v7048_v48, %v5461_v10 }
 0x11d   : > { %v921_v50 = vshll.u32 %v7048_v48, %v906_v18  ;;  %v713_v4 = vmul.f32 %v712_v59, %v710_v44  ;;  %v720_v9 = vmul.f32 %v719_v27, %v710_v44  ;;  %v830_v22 = vmul.u32 %v5336_v43, %v5443_v34 }
 0x11e   : > { %vm832_vm11 = vc.u32 %v5474_v2, %v5465_v20  ;;  %v5486_v23 = vor.u32 %v910_v56, %v909_v26  ;;  %v920_v62 = vor.u32 %v919_v6, %v918_v19  ;;  %v922_v5 = vshrl.u32 %v7046_v51, %v5461_v10 }
 0x11f   : > { %v834_v28 = vsel %vm832_vm11, %v833_v13, %v829_v47  ;;  %v714_v53 = vadd.f32 -0.4999988, %v713_v4  ;;  %v721_v54 = vadd.f32 -0.16666654, %v720_v9  ;;  %v914_v61 = vor.u32 %v913_v29, %v912_v57 }
 0x120   : > { %v835_v33 = vadd.s32 %v834_v28, %v830_v22  ;;  %v917_v18 = vor.u32 %v916_v52, %v915_v60  ;;  %v923_v16 = vor.u32 %v922_v5, %v921_v50  ;;  %vm924_vm12 = vcmp.lt.s32.totalorder %v5463_v24, 1 }
 0x121   : > { %vm927_vm15 = vcmp.lt.s32.totalorder %v5463_v24, 4  ;;  %v715_v43 = vmul.f32 %v714_v53, %v710_v44  ;;  %v722_v34 = vmul.f32 %v721_v54, %v710_v44  ;;  %vm926_vm0 = vcmp.lt.s32.totalorder %v5463_v24, 3  ;;  %v213_v53 = vpop.permute.xlu2 %212 }
 0x122   : > { %v836_v30 = vadd.s32 536870912, %v835_v33  ;;  %v727_v26 = vand.u32 3, %v5439_v40  ;;  %vm925_vm2 = vcmp.lt.s32.totalorder %v5463_v24, 2  ;;  %v933_v37 = vsel %vm927_vm15, %v920_v62, 920167782 }
 0x123   : > { %v5497_v47 = vadd.f32 1.0, %v715_v43  ;;  %v723_v57 = vadd.f32 1.0, %v722_v34  ;;  %v932_v29 = vsel %vm924_vm12, %v5486_v23, %v914_v61  ;;  %vm725_vm3 = vweird.f32 %v5038_v21 }
 0x124   : > { %v5499_v56 = vshrl.u32 %v836_v30, 30  ;;  %v934_v44 = vsel %vm926_vm0, %v917_v18, %v933_v37  ;;  %v937_v40 = vsel %vm927_vm15, %v923_v16, 1326507024  ;;  %v5511_v60 = vshll.u32 %v900_v8, 8 }
 0x125   : > { %v5513_v59 = vmul.f32 %v723_v57, %v708_v15  ;;  %v7036_v27 = vxor.u32 2147483648, %v5497_v47  ;;  %v936_v13 = vsel %vm924_vm12, %v914_v61, %v917_v18  ;;  %vm728_vm4 = vcmp.lt.s32.totalorder %v727_v26, 2 }
 0x126   : > { %v838_v19 = vshll.u32 %v5499_v56, 30  ;;  %vm729_vm5 = vcmp.eq.s32.totalorder %v727_v26, 0  ;;  %v935_v52 = vsel %vm925_vm2, %v932_v29, %v934_v44  ;;  %v938_v6 = vsel %vm926_vm0, %v920_v62, %v937_v40 }
 0x127   : > { %v7039_v1 = vxor.u32 2147483648, %v5513_v59  ;;  %vm732_vm7 = vcmp.eq.s32.totalorder %v727_v26, 2  ;;  %v941_v15 = vand.u32 65535, %v5511_v60  ;;  %v908_v50 = vshrl.u32 %v7061_v36, %v5461_v10  ;;  %v5545_v26 = vld [vmem:[%s7032_s1] ss:$0 sm:$0xff] }
 0x128   : > { %v839_v8 = vsub.s32 %v835_v33, %v838_v19  ;;  %v939_v4 = vsel %vm925_vm2, %v936_v13, %v938_v6  ;;  %v942_v9 = vshrl.u32 %v5511_v60, 16  ;;  %v966_v22 = vshrl.u32 %v935_v52, 16 }
 0x129   : > { %v731_v28 = vsel %vm729_vm5, %v5497_v47, %v7039_v1  ;;  %v734_v62 = vsel %vm732_vm7, %v7036_v27, %v5513_v59  ;;  %v929_v54 = vsel %vm927_vm15, %v917_v18, 2102212464  ;;  %v943_v33 = vand.u32 65535, %v939_v4 }
 0x12a   : > { %vm840_vm8 = vcmp.lt.s32.totalorder %v839_v8, 0  ;;  %v841_v5 = vsub.s32 0, %v839_v8  ;;  %v735_v10 = vsel %vm728_vm4, %v731_v28, %v734_v62  ;;  %v944_v16 = vshrl.u32 %v939_v4, 16 }
 0x12b   : > { %v736_v43 = vsel %vm725_vm3, nan, %v735_v10  ;;  %v965_v30 = vand.u32 65535, %v935_v52  ;;  %v968_v37 = vmul.u32 %v966_v22, %v941_v15  ;;  %v945_v29 = vmul.u32 %v943_v33, %v941_v15 }
 0x12c   : > { %v842_v34 = vsel %vm840_vm8, %v841_v5, %v839_v8  ;;  %v946_v44 = vmul.u32 %v944_v16, %v941_v15  ;;  %v947_v40 = vmul.u32 %v943_v33, %v942_v9  ;;  %2444 = vst [vmem:[%s5320_s3 + $0x20] sm:$0xff] %v736_v43  ;;  %v5548_v18 = vmul.f32 %v5545_v26, %v213_v53 }
 0x12d   : > { %v843_v57 = vclz %v842_v34  ;;  %v831_v19 = vadd.s32 %v5465_v20, %v5474_v2  ;;  %v928_v13 = vsel %vm924_vm12, %v908_v50, %v5486_v23  ;;  %v930_v6 = vsel %vm926_vm0, %v914_v61, %v929_v54 }
 0x12e   : > { %7142 = vst [vmem:[#allocation10_spill] sm:$0xff] %v5548_v18  ;;  %v948_v4 = vmul.u32 %v944_v16, %v942_v9  ;;  %v949_v28 = vshll.u32 %v946_v44, 16  ;;  %v951_v62 = vshll.u32 %v947_v40, 16  ;;  %v967_v5 = vmul.u32 %v965_v30, %v941_v15 }
 0x12f   : > { %v4728_v52 = vadd.s32 4294967294, %v843_v57  ;;  %v969_v10 = vmul.u32 %v965_v30, %v942_v9  ;;  %v971_v33 = vshll.u32 %v968_v37, 16  ;;  %v950_v53 = vshrl.u32 %v946_v44, 16 }
 0x130   : > { %vm953_vm10 = vc.u32 %v945_v29, %v949_v28  ;;  %v955_v43 = vadd.s32 %v949_v28, %v945_v29  ;;  %v970_v2 = vmul.u32 %v966_v22, %v942_v9  ;;  %v952_v57 = vshrl.u32 %v947_v40, 16 }
 0x131   : > { %vm4729_vm9 = vcmp.lt.s32.totalorder %v4728_v52, 0  ;;  %v954_v20 = vsel %vm953_vm10, 1, %v7057_v0  ;;  %v973_v7 = vshll.u32 %v969_v10, 16  ;;  %vm975_vm14 = vc.u32 %v967_v5, %v971_v33 }
 0x132   : > { %v846_v34 = vsel %vm4729_vm9, 0, %v4728_v52  ;;  %v956_v58 = vadd.s32 %v954_v20, %v948_v4  ;;  %vm957_vm13 = vc.u32 %v955_v43, %v951_v62  ;;  %v977_v54 = vadd.s32 %v971_v33, %v967_v5 }
 0x133   : > { %v847_v23 = vsub.s32 32, %v846_v34  ;;  %v851_v50 = vsub.s32 4294967266, %v846_v34  ;;  %v848_v61 = vshll.u32 %v839_v8, %v846_v34  ;;  %v958_v30 = vsel %vm957_vm13, 1, %v7057_v0 }
 0x134   : > { %v976_v44 = vsel %vm975_vm14, 1, %v7057_v0  ;;  %v960_v29 = vadd.s32 %v958_v30, %v956_v58  ;;  %v972_v52 = vshrl.u32 %v968_v37, 16  ;;  %vm979_vm11 = vc.u32 %v977_v54, %v973_v7 }
 0x135   : > { %v849_v15 = vshrl.u32 %v831_v19, %v847_v23  ;;  %v852_v16 = vadd.s32 127, %v851_v50  ;;  %v978_v28 = vadd.s32 %v976_v44, %v970_v2  ;;  %v861_v27 = vsub.s32 4, %v5499_v56 }
 0x136   : > { %v980_v40 = vsel %vm979_vm11, 1, %v7057_v0  ;;  %v961_v8 = vadd.s32 %v960_v29, %v950_v53  ;;  %v974_v4 = vshrl.u32 %v969_v10, 16  ;;  %v1050_v19 = vand.u32 2139095040, %v5548_v18 }
 0x137   : > { %v850_v9 = vor.u32 %v849_v15, %v848_v61  ;;  %v853_v22 = vshll.u32 %v852_v16, 23  ;;  %v982_v62 = vadd.s32 %v980_v40, %v978_v28  ;;  %v931_v33 = vsel %vm925_vm2, %v928_v13, %v930_v6 }
 0x138   : > { %v981_v43 = vadd.s32 %v977_v54, %v973_v7  ;;  %v962_v58 = vadd.s32 %v961_v8, %v952_v57  ;;  %v7042_v34 = vand.u32 2147483647, %v5548_v18  ;;  %v1051_v20 = vshrl.u32 %v1050_v19, 23 }
 0x139   : > { %v854_v5 = vor.u32 4788187, %v853_v22  ;;  %v983_v37 = vadd.s32 %v982_v62, %v972_v52  ;;  %vm739_vm12 = vcmp.lt.s32.totalorder %v5231_v12, 0  ;;  %v857_v23 = vcvt.s32.f32 %v850_v9 }
 0x13a   : > { %v862_v10 = vsel %vm739_vm12, %v861_v27, %v5499_v56  ;;  %v4733_v50 = vadd.s32 4294967169, %v1051_v20  ;;  %v985_v24 = vmul.u32 %v5511_v60, %v931_v33  ;;  %vm987_vm15 = vc.u32 %v962_v58, %v981_v43  ;;  %v218_v60 = vpop.permute.xlu0 %217 }
 0x13b   : > { %v855_v2 = vand.u32 2147483647, %v854_v5  ;;  %v984_v53 = vadd.s32 %v983_v37, %v974_v4  ;;  %vm738_vm0 = vcmp.le.f32.partialorder %v737_v46, 0.7853982  ;;  %v1054_v13 = vand.u32 8388607, %v7042_v34 }
 0x13c   : > { %v1057_v6 = vadd.s32 1, %v4733_v50  ;;  %v5575_v54 = vsel %vm738_vm0, 0, %v862_v10  ;;  %v5582_v22 = vmul.f32 %v5545_v26, %v218_v60  ;;  %vm7128_vm10 = vweird.f32 %v5231_v12 }
 0x13d   : > { %v858_v61 = vmul.f32 %v857_v23, %v855_v2  ;;  %v988_v7 = vadd.s32 1, %v984_v53  ;;  %v881_v46 = vadd.s32 3, %v5575_v54  ;;  %v1055_v44 = vor.u32 8388608, %v1054_v13 }
 0x13e   : > { %vm1058_vm2 = vcmp.gt.s32.totalorder %v1057_v6, 0  ;;  %7143 = vst [vmem:[#allocation11_spill] sm:$0xff] %v5582_v22  ;;  %v5592_v2 = vadd.s32 %v981_v43, %v962_v58  ;;  %vm894_vm13 = vcmp.lt.s32.totalorder %v5226_v63, 0  ;;  %v7196_v17 = vxor.u32 2147483648, %v5497_v47 }
 0x13f   : > { %v859_v57 = vxor.u32 2147483648, %v858_v61  ;;  %v989_v15 = vsel %vm987_vm15, %v988_v7, %v984_v53  ;;  %v1059_v16 = vsel %vm1058_vm2, %v1057_v6, 0  ;;  %v5586_v62 = vand.u32 3, %v881_v46 }
 0x140   : > { %v990_v27 = vadd.s32 %v989_v15, %v985_v24  ;;  %v1061_v29 = vand.u32 31, %v1059_v16  ;;  %v5590_v33 = vshll.u32 %v1055_v44, 8  ;;  %v5601_v6 = vshrl.u32 %v1059_v16, 5 }
 0x141   : > { %v860_v56 = vsel %vm739_vm12, %v859_v57, %v858_v61  ;;  %vm887_vm4 = vcmp.eq.s32.totalorder %v5586_v62, 2  ;;  %vm884_vm7 = vcmp.eq.s32.totalorder %v5586_v62, 0  ;;  %vm883_vm8 = vcmp.lt.s32.totalorder %v5586_v62, 2 }
 0x142   : > { %v863_v30 = vsel %vm738_vm0, %v5231_v12, %v860_v56  ;;  %v991_v28 = vadd.s32 536870912, %v990_v27  ;;  %v1062_v9 = vsub.s32 32, %v1061_v29  ;;  %v1064_v19 = vshll.u32 %v7061_v36, %v1061_v29 }
 0x143   : > { %v865_v52 = vmul.f32 %v863_v30, %v863_v30  ;;  %v1067_v10 = vshll.u32 %v7055_v38, %v1061_v29  ;;  %v1073_v50 = vshll.u32 %v7053_v45, %v1061_v29  ;;  %v1070_v58 = vshll.u32 %v7051_v42, %v1061_v29 }
 0x144   : > { %v5584_v4 = vshrl.u32 %v991_v28, 30  ;;  %v1065_v5 = vshrl.u32 %v7055_v38, %v1062_v9  ;;  %v1068_v53 = vshrl.u32 %v7051_v42, %v1062_v9  ;;  %v1074_v61 = vshrl.u32 %v7048_v48, %v1062_v9 }
 0x145   : > { %v866_v40 = vmul.f32 -0.001358992, %v865_v52  ;;  %v873_v8 = vmul.f32 -0.00019511016, %v865_v52  ;;  %v1071_v57 = vshrl.u32 %v7053_v45, %v1062_v9  ;;  %v5609_v15 = vand.u32 65535, %v5590_v33 }
 0x146   : > { %v993_v23 = vshll.u32 %v5584_v4, 30  ;;  %v5604_v43 = vor.u32 %v1065_v5, %v1064_v19  ;;  %v5614_v16 = vor.u32 %v1068_v53, %v1067_v10  ;;  %v1075_v46 = vor.u32 %v1074_v61, %v1073_v50 }
 0x147   : > { %v867_v37 = vadd.f32 0.041655596, %v866_v40  ;;  %v874_v20 = vadd.f32 0.008332121, %v873_v8  ;;  %v1076_v44 = vshll.u32 %v7048_v48, %v1061_v29  ;;  %v1077_v28 = vshrl.u32 %v7046_v51, %v1062_v9 }
 0x148   : > { %v5599_v13 = vsub.s32 %v990_v27, %v993_v23  ;;  %vm1079_vm9 = vcmp.lt.s32.totalorder %v5601_v6, 1  ;;  %vm1082_vm14 = vcmp.lt.s32.totalorder %v5601_v6, 4  ;;  %v1097_v29 = vshrl.u32 %v5590_v33, 16 }
 0x149   : > { %v868_v24 = vmul.f32 %v867_v37, %v865_v52  ;;  %v875_v7 = vmul.f32 %v874_v20, %v865_v52  ;;  %v1072_v37 = vor.u32 %v1071_v57, %v1070_v58  ;;  %vm1081_vm11 = vcmp.lt.s32.totalorder %v5601_v6, 3 }
 0x14a   : > { %vm995_vm5 = vcmp.lt.s32.totalorder %v5599_v13, 0  ;;  %v996_v27 = vsub.s32 0, %v5599_v13  ;;  %v1078_v53 = vor.u32 %v1077_v28, %v1076_v44  ;;  %vm1080_vm12 = vcmp.lt.s32.totalorder %v5601_v6, 2  ;;  %v223_v6 = vpop.permute.xlu1 %222 }
 0x14b   : > { %v869_v56 = vadd.f32 -0.4999988, %v868_v24  ;;  %v876_v60 = vadd.f32 -0.16666654, %v875_v7  ;;  %v1087_v50 = vsel %vm1079_vm9, %v5604_v43, %v5614_v16  ;;  %vm5639_vm15 = vcmp.le.f32.partialorder %v892_v49, 0.7853982 }
 0x14c   : > { %v997_v19 = vsel %vm995_vm5, %v996_v27, %v5599_v13  ;;  %v5644_v58 = vshrl.u32 %v7061_v36, %v1062_v9  ;;  %v1088_v57 = vsel %vm1082_vm14, %v1075_v46, 920167782 }
 0x14d   : > { %v870_v40 = vmul.f32 %v869_v56, %v865_v52  ;;  %v877_v8 = vmul.f32 %v876_v60, %v865_v52  ;;  %v998_v5 = vclz %v997_v19  ;;  %v7045_v52 = vand.u32 2147483647, %v5582_v22 }
 0x14e   : > { %v1016_v56 = vsub.s32 4, %v5584_v4  ;;  %v1091_v60 = vsel %vm1079_vm9, %v5614_v16, %v1072_v37  ;;  %v1092_v19 = vsel %vm1082_vm14, %v1078_v53, 1326507024 }
 0x14f   : > { %v5625_v20 = vadd.f32 1.0, %v870_v40  ;;  %v878_v23 = vadd.f32 1.0, %v877_v8  ;;  %v4731_v10 = vadd.s32 4294967294, %v998_v5  ;;  %v1209_v7 = vand.u32 8388607, %v7045_v52 }
 0x151   : > { %7144 = vst [vmem:[#allocation12_spill] sm:$0xff] %v5625_v20  ;;  %v5634_v61 = vmul.f32 %v878_v23, %v863_v30  ;;  %v7037_v24 = vxor.u32 2147483648, %v5625_v20  ;;  %vm4732_vm0 = vcmp.lt.s32.totalorder %v4731_v10, 0  ;;  %v1089_v30 = vsel %vm1081_vm11, %v1072_v37, %v1088_v57 }
 0x152   : > { %v1001_v27 = vsel %vm4732_vm0, 0, %v4731_v10  ;;  %v1090_v44 = vsel %vm1080_vm12, %v1087_v50, %v1089_v30  ;;  %v1093_v23 = vsel %vm1081_vm11, %v1075_v46, %v1092_v19  ;;  %vm1049_vm0 = vcmp.lt.s32.totalorder %v5548_v18, 0 }
 0x153   : > { %7145 = vst [vmem:[#allocation13_spill] sm:$0xff] %v5634_v61  ;;  %v7038_v49 = vxor.u32 2147483648, %v5634_v61  ;;  %v889_v9 = vsel %vm887_vm4, %v7037_v24, %v5634_v61  ;;  %v1002_v28 = vsub.s32 32, %v1001_v27  ;;  %v1003_v40 = vshll.u32 %v5599_v13, %v1001_v27 }
 0x154   : > { %v1006_v8 = vsub.s32 4294967266, %v1001_v27  ;;  %v1120_v10 = vand.u32 65535, %v1090_v44  ;;  %v1121_v57 = vshrl.u32 %v1090_v44, 16  ;;  %v1094_v53 = vsel %vm1080_vm12, %v1091_v60, %v1093_v23 }
 0x155   : > { %v886_v5 = vsel %vm884_vm7, %v5625_v20, %v7038_v49  ;;  %v1004_v13 = vshrl.u32 %v5592_v2, %v1002_v28  ;;  %v1017_v24 = vsel %vm894_vm13, %v1016_v56, %v5584_v4  ;;  %v1098_v49 = vand.u32 65535, %v1094_v53 }
 0x156   : > { %v890_v50 = vsel %vm883_vm8, %v886_v5, %v889_v9  ;;  %v1007_v30 = vadd.s32 127, %v1006_v8  ;;  %v1099_v46 = vshrl.u32 %v1094_v53, 16  ;;  %v1123_v62 = vmul.u32 %v1121_v57, %v5609_v15 }
 0x157   : > { %v891_v27 = vsel %vm7128_vm10, nan, %v890_v50  ;;  %v1005_v19 = vor.u32 %v1004_v13, %v1003_v40  ;;  %v1124_v9 = vmul.u32 %v1120_v10, %v1097_v29  ;;  %v1100_v2 = vmul.u32 %v1098_v49, %v5609_v15 }
 0x158   : > { %v1008_v44 = vshll.u32 %v1007_v30, 23  ;;  %2445 = vst [vmem:[%s5320_s3 + $0x30] sm:$0xff] %v891_v27  ;;  %v1101_v28 = vmul.u32 %v1099_v46, %v5609_v15  ;;  %v1102_v60 = vmul.u32 %v1098_v49, %v1097_v29  ;;  %v1122_v8 = vmul.u32 %v1120_v10, %v5609_v15 }
 0x159   : > { %v5689_v23 = vsel %vm5639_vm15, 0, %v1017_v24  ;;  %v1084_v4 = vsel %vm1082_vm14, %v1072_v37, 2102212464  ;;  %v1126_v56 = vshll.u32 %v1123_v62, 16  ;;  %v1103_v40 = vmul.u32 %v1099_v46, %v1097_v29 }
 0x15a   : > { %v1009_v5 = vor.u32 4788187, %v1008_v44  ;;  %v1104_v50 = vshll.u32 %v1101_v28, 16  ;;  %v1106_v13 = vshll.u32 %v1102_v60, 16  ;;  %v1125_v30 = vmul.u32 %v1121_v57, %v1097_v29 }
 0x15b   : > { %v1012_v27 = vcvt.s32.f32 %v1005_v19  ;;  %v1105_v1 = vshrl.u32 %v1101_v28, 16  ;;  %v1128_v35 = vshll.u32 %v1124_v9, 16  ;;  %vm1130_vm4 = vc.u32 %v1122_v8, %v1126_v56 }
 0x15c   : > { %v1010_v53 = vand.u32 2147483647, %v1009_v5  ;;  %vm1108_vm2 = vc.u32 %v1100_v2, %v1104_v50  ;;  %v1110_v49 = vadd.s32 %v1104_v50, %v1100_v2  ;;  %v1132_v15 = vadd.s32 %v1126_v56, %v1122_v8 }
 0x15d   : > { %v1109_v24 = vsel %vm1108_vm2, 1, %v7057_v0  ;;  %v1127_v44 = vshrl.u32 %v1123_v62, 16  ;;  %v1131_v3 = vsel %vm1130_vm4, 1, %v7057_v0  ;;  %v1107_v29 = vshrl.u32 %v1102_v60, 16 }
 0x15e   : > { %v1013_v10 = vmul.f32 %v1012_v27, %v1010_v53  ;;  %v1111_v37 = vadd.s32 %v1109_v24, %v1103_v40  ;;  %vm1112_vm5 = vc.u32 %v1110_v49, %v1106_v13  ;;  %v1133_v46 = vadd.s32 %v1131_v3, %v1125_v30 }
 0x15f   : > { %vm1134_vm7 = vc.u32 %v1132_v15, %v1128_v35  ;;  %v1113_v57 = vsel %vm1112_vm5, 1, %v7057_v0  ;;  %v1129_v2 = vshrl.u32 %v1124_v9, 16  ;;  %v1205_v8 = vand.u32 2139095040, %v5582_v22 }
 0x160   : > { %v1014_v34 = vxor.u32 2147483648, %v1013_v10  ;;  %v1135_v19 = vsel %vm1134_vm7, 1, %v7057_v0  ;;  %v1115_v28 = vadd.s32 %v1113_v57, %v1111_v37  ;;  %v1083_v3 = vsel %vm1079_vm9, %v5644_v58, %v5604_v43 }
 0x161   : > { %v1137_v5 = vadd.s32 %v1135_v19, %v1133_v46  ;;  %v1085_v60 = vsel %vm1081_vm11, %v5614_v16, %v1084_v4  ;;  %v5707_v56 = vadd.s32 %v1132_v15, %v1128_v35  ;;  %v1206_v13 = vshrl.u32 %v1205_v8, 23 }
 0x162   : > { %v1015_v62 = vsel %vm894_vm13, %v1014_v34, %v1013_v10  ;;  %v1116_v40 = vadd.s32 %v1115_v28, %v1105_v1  ;;  %v1036_v34 = vadd.s32 3, %v5689_v23  ;;  %v1086_v53 = vsel %vm1080_vm12, %v1083_v3, %v1085_v60 }
 0x163   : > { %v1018_v9 = vsel %vm5639_vm15, %v5226_v63, %v1015_v62  ;;  %v1138_v50 = vadd.s32 %v1137_v5, %v1127_v44  ;;  %v4736_v27 = vadd.s32 4294967169, %v1206_v13  ;;  %v1140_v10 = vmul.u32 %v5590_v33, %v1086_v53 }
 0x164   : > { %v1020_v30 = vmul.f32 %v1018_v9, %v1018_v9  ;;  %v1117_v43 = vadd.s32 %v1116_v40, %v1107_v29  ;;  %v1037_v24 = vand.u32 3, %v1036_v34  ;;  %v1210_v19 = vor.u32 8388608, %v1209_v7 }
 0x165   : > { %v1139_v58 = vadd.s32 %v1138_v50, %v1129_v2  ;;  %v1212_v1 = vadd.s32 1, %v4736_v27  ;;  %v5720_v62 = vmul.f32 %v5545_v26, %v223_v6  ;;  %vm1035_vm11 = vweird.f32 %v5226_v63 }
 0x166   : > { %v1021_v49 = vmul.f32 -0.001358992, %v1020_v30  ;;  %v1028_v16 = vmul.f32 -0.00019511016, %v1020_v30  ;;  %vm1142_vm8 = vc.u32 %v1117_v43, %v5707_v56  ;;  %vm1038_vm13 = vcmp.lt.s32.totalorder %v1037_v24, 2 }
 0x167   : > { %v1143_v35 = vadd.s32 1, %v1139_v58  ;;  %vm1213_vm9 = vcmp.gt.s32.totalorder %v1212_v1, 0  ;;  %7148 = vst [vmem:[#allocation14_spill] sm:$0xff] %v5720_v62  ;;  %vm1039_vm14 = vcmp.eq.s32.totalorder %v1037_v24, 0  ;;  %v5733_v53 = vshll.u32 %v1210_v19, 8 }
 0x168   : > { %v1022_v4 = vadd.f32 0.041655596, %v1021_v49  ;;  %v1029_v15 = vadd.f32 0.008332121, %v1028_v16  ;;  %v1214_v57 = vsel %vm1213_vm9, %v1212_v1, 0  ;;  %vm1042_vm15 = vcmp.eq.s32.totalorder %v1037_v24, 2 }
 0x169   : > { %v1144_v44 = vsel %vm1142_vm8, %v1143_v35, %v1139_v58  ;;  %v1216_v28 = vand.u32 31, %v1214_v57  ;;  %v5727_v50 = vshrl.u32 %v1214_v57, 5  ;;  %v1251_v24 = vand.u32 65535, %v5733_v53 }
 0x16a   : > { %v1023_v37 = vmul.f32 %v1022_v4, %v1020_v30  ;;  %v1030_v46 = vmul.f32 %v1029_v15, %v1020_v30  ;;  %v1145_v29 = vadd.s32 %v1144_v44, %v1140_v10 }
 0x16b   : > { %v5722_v3 = vsub.s32 32, %v1216_v28  ;;  %v1219_v49 = vshll.u32 %v7061_v36, %v1216_v28  ;;  %v1222_v16 = vshll.u32 %v7055_v38, %v1216_v28  ;;  %v1228_v7 = vshll.u32 %v7053_v45, %v1216_v28 }
 0x16c   : > { %v1024_v2 = vadd.f32 -0.4999988, %v1023_v37  ;;  %v1031_v5 = vadd.f32 -0.16666654, %v1030_v46  ;;  %v1146_v8 = vadd.s32 536870912, %v1145_v29  ;;  %v1225_v44 = vshll.u32 %v7051_v42, %v1216_v28 }
 0x16d   : > { %v1220_v13 = vshrl.u32 %v7055_v38, %v5722_v3  ;;  %v1223_v34 = vshrl.u32 %v7051_v42, %v5722_v3  ;;  %v1226_v35 = vshrl.u32 %v7053_v45, %v5722_v3  ;;  %v1229_v1 = vshrl.u32 %v7048_v48, %v5722_v3 }
 0x16e   : > { %v1025_v60 = vmul.f32 %v1024_v2, %v1020_v30  ;;  %v1032_v33 = vmul.f32 %v1031_v5, %v1020_v30  ;;  %v5724_v40 = vshrl.u32 %v1146_v8, 30  ;;  %v1232_v57 = vshrl.u32 %v7046_v51, %v5722_v3 }
 0x16f   : > { %v1221_v6 = vor.u32 %v1220_v13, %v1219_v49  ;;  %v5749_v37 = vor.u32 %v1223_v34, %v1222_v16  ;;  %v1230_v46 = vor.u32 %v1229_v1, %v1228_v7  ;;  %v1231_v5 = vshll.u32 %v7048_v48, %v1216_v28 }
 0x170   : > { %v5735_v58 = vadd.f32 1.0, %v1025_v60  ;;  %v1033_v27 = vadd.f32 1.0, %v1032_v33  ;;  %v1148_v30 = vshll.u32 %v5724_v40, 30  ;;  %v1227_v8 = vor.u32 %v1226_v35, %v1225_v44 }
 0x171   : > { %v1233_v34 = vor.u32 %v1232_v57, %v1231_v5  ;;  %vm1234_vm2 = vcmp.lt.s32.totalorder %v5727_v50, 1  ;;  %vm1237_vm4 = vcmp.lt.s32.totalorder %v5727_v50, 4  ;;  %vm1236_vm5 = vcmp.lt.s32.totalorder %v5727_v50, 3 }
 0x172   : > { %v5745_v4 = vmul.f32 %v1033_v27, %v1018_v9  ;;  %v7043_v15 = vxor.u32 2147483648, %v5735_v58  ;;  %v1149_v10 = vsub.s32 %v1145_v29, %v1148_v30  ;;  %v1141_v9 = vadd.s32 %v5707_v56, %v1117_v43 }
 0x173   : > { %v1360_v29 = vand.u32 2139095040, %v5720_v62  ;;  %v1242_v27 = vsel %vm1234_vm2, %v1221_v6, %v5749_v37  ;;  %v1243_v30 = vsel %vm1237_vm4, %v1230_v46, 920167782  ;;  %v1252_v16 = vshrl.u32 %v5733_v53, 16 }
 0x174   : > { %v7044_v19 = vxor.u32 2147483648, %v5745_v4  ;;  %vm1150_vm12 = vcmp.lt.s32.totalorder %v1149_v10, 0  ;;  %v1151_v2 = vsub.s32 0, %v1149_v10  ;;  %v1044_v33 = vsel %vm1042_vm15, %v7043_v15, %v5745_v4 }
 0x175   : > { %v1361_v35 = vshrl.u32 %v1360_v29, 23  ;;  %vm1235_vm7 = vcmp.lt.s32.totalorder %v5727_v50, 2  ;;  %v1244_v7 = vsel %vm1236_vm5, %v1227_v8, %v1243_v30  ;;  %v1246_v1 = vsel %vm1234_vm2, %v5749_v37, %v1227_v8 }
 0x176   : > { %v1041_v60 = vsel %vm1039_vm14, %v5735_v58, %v7044_v19  ;;  %v1152_v13 = vsel %vm1150_vm12, %v1151_v2, %v1149_v10  ;;  %v1247_v44 = vsel %vm1237_vm4, %v1233_v34, 1326507024  ;;  %v1171_v57 = vsub.s32 4, %v5724_v40 }
 0x177   : > { %v1045_v28 = vsel %vm1038_vm13, %v1041_v60, %v1044_v33  ;;  %v1153_v56 = vclz %v1152_v13  ;;  %v1245_v2 = vsel %vm1235_vm7, %v1242_v27, %v1244_v7  ;;  %v1248_v5 = vsel %vm1236_vm5, %v1230_v46, %v1247_v44 }
 0x178   : > { %v1046_v43 = vsel %vm1035_vm11, nan, %v1045_v28  ;;  %v1249_v60 = vsel %vm1235_vm7, %v1246_v1, %v1248_v5  ;;  %v1275_v33 = vand.u32 65535, %v1245_v2  ;;  %v1276_v13 = vshrl.u32 %v1245_v2, 16 }
 0x179   : > { %v4734_v49 = vadd.s32 4294967294, %v1153_v56  ;;  %2446 = vst [vmem:[%s5320_s3 + $0x40] sm:$0xff] %v1046_v43  ;;  %v1253_v43 = vand.u32 65535, %v1249_v60  ;;  %v4739_v30 = vadd.s32 4294967169, %v1361_v35  ;;  %v1218_v15 = vshrl.u32 %v7061_v36, %v5722_v3 }
 0x17a   : > { %v1254_v19 = vshrl.u32 %v1249_v60, 16  ;;  %v1278_v52 = vmul.u32 %v1276_v13, %v1251_v24  ;;  %v1279_v46 = vmul.u32 %v1275_v33, %v1252_v16  ;;  %v1239_v3 = vsel %vm1237_vm4, %v1227_v8, 2102212464 }
 0x17b   : > { %vm4735_vm8 = vcmp.lt.s32.totalorder %v4734_v49, 0  ;;  %v1257_v51 = vmul.u32 %v1253_v43, %v1252_v16  ;;  %v1238_v1 = vsel %vm1234_vm2, %v1218_v15, %v1221_v6  ;;  %v1277_v5 = vmul.u32 %v1275_v33, %v1251_v24 }
 0x17c   : > { %v1156_v29 = vsel %vm4735_vm8, 0, %v4734_v49  ;;  %v1172_v49 = vsel %vm1049_vm0, %v1171_v57, %v5724_v40  ;;  %v1256_v44 = vmul.u32 %v1254_v19, %v1251_v24  ;;  %v1281_v2 = vshll.u32 %v1278_v52, 16 }
 0x17d   : > { %v1157_v28 = vsub.s32 32, %v1156_v29  ;;  %v1161_v56 = vsub.s32 4294967266, %v1156_v29  ;;  %v1158_v34 = vshll.u32 %v1149_v10, %v1156_v29  ;;  %v1255_v60 = vmul.u32 %v1253_v43, %v1251_v24 }
 0x17e   : > { %v1259_v40 = vshll.u32 %v1256_v44, 16  ;;  %v1280_v57 = vmul.u32 %v1276_v13, %v1252_v16  ;;  %v1261_v15 = vshll.u32 %v1257_v51, 16  ;;  %v1283_v6 = vshll.u32 %v1279_v46, 16 }
 0x17f   : > { %v1159_v27 = vshrl.u32 %v1141_v9, %v1157_v28  ;;  %v1162_v7 = vadd.s32 127, %v1161_v56  ;;  %v7149_v9 = vand.u32 2147483647, %v5548_v18  ;;  %v1258_v28 = vmul.u32 %v1254_v19, %v1252_v16 }
 0x180   : > { %vm1285_vm13 = vc.u32 %v1277_v5, %v1281_v2  ;;  %vm1263_vm14 = vc.u32 %v1255_v60, %v1259_v40  ;;  %v1287_v8 = vadd.s32 %v1281_v2, %v1277_v5  ;;  %v1240_v19 = vsel %vm1236_vm5, %v5749_v37, %v1239_v3 }
 0x181   : > { %v1160_v35 = vor.u32 %v1159_v27, %v1158_v34  ;;  %v1163_v10 = vshll.u32 %v1162_v7, 23  ;;  %vm5805_vm9 = vcmp.le.f32.partialorder %v7149_v9, 0.7853982  ;;  %v1265_v34 = vadd.s32 %v1259_v40, %v1255_v60 }
 0x182   : > { %v1286_v27 = vsel %vm1285_vm13, 1, %v7057_v0  ;;  %v1264_v9 = vsel %vm1263_vm14, 1, %v7057_v0  ;;  %vm1289_vm15 = vc.u32 %v1287_v8, %v1283_v6  ;;  %v1260_v60 = vshrl.u32 %v1256_v44, 16 }
 0x183   : > { %v1164_v56 = vor.u32 4788187, %v1163_v10  ;;  %v1167_v7 = vcvt.s32.f32 %v1160_v35  ;;  %v1288_v48 = vadd.s32 %v1286_v27, %v1280_v57  ;;  %v1266_v24 = vadd.s32 %v1264_v9, %v1258_v28  ;;  %v228_v27 = vpop.permute.xlu2 %227 }
 0x184   : > { %vm1267_vm12 = vc.u32 %v1265_v34, %v1261_v15  ;;  %v1290_v43 = vsel %vm1289_vm15, 1, %v7057_v0  ;;  %v1367_v10 = vadd.s32 1, %v4739_v30  ;;  %v1282_v5 = vshrl.u32 %v1278_v52, 16 }
 0x185   : > { %v1165_v33 = vand.u32 2147483647, %v1164_v56  ;;  %v1268_v13 = vsel %vm1267_vm12, 1, %v7057_v0  ;;  %v1292_v35 = vadd.s32 %v1290_v43, %v1288_v48  ;;  %v1262_v56 = vshrl.u32 %v1257_v51, 16 }
 0x186   : > { %v1270_v2 = vadd.s32 %v1268_v13, %v1266_v24  ;;  %v7050_v57 = vand.u32 2147483647, %v5720_v62  ;;  %vm1368_vm2 = vcmp.gt.s32.totalorder %v1367_v10, 0  ;;  %v1284_v3 = vshrl.u32 %v1279_v46, 16 }
 0x187   : > { %v1168_v16 = vmul.f32 %v1167_v7, %v1165_v33  ;;  %v1293_v28 = vadd.s32 %v1292_v35, %v1282_v5  ;;  %v1369_v15 = vsel %vm1368_vm2, %v1367_v10, 0  ;;  %v5821_v30 = vsel %vm5805_vm9, 0, %v1172_v49 }
 0x188   : > { %v1271_v37 = vadd.s32 %v1270_v2, %v1260_v60  ;;  %v1241_v48 = vsel %vm1235_vm7, %v1238_v1, %v1240_v19  ;;  %v1371_v52 = vand.u32 31, %v1369_v15  ;;  %v5830_v46 = vadd.s32 %v1287_v8, %v1283_v6 }
 0x189   : > { %v1169_v40 = vxor.u32 2147483648, %v1168_v16  ;;  %v1294_v33 = vadd.s32 %v1293_v28, %v1284_v3  ;;  %v5833_v7 = vmul.f32 %v5545_v26, %v228_v27  ;;  %v1364_v49 = vand.u32 8388607, %v7050_v57 }
 0x18a   : > { %v5828_v44 = vadd.s32 %v1271_v37, %v1262_v56  ;;  %v5837_v24 = vsub.s32 32, %v1371_v52  ;;  %v1191_v50 = vadd.s32 3, %v5821_v30  ;;  %v1295_v1 = vmul.u32 %v5733_v53, %v1241_v48 }
 0x18b   : > { %v1170_v34 = vsel %vm1049_vm0, %v1169_v40, %v1168_v16  ;;  %7152 = vst [vmem:[#allocation15_spill] sm:$0xff] %v5833_v7  ;;  %v1298_v29 = vadd.s32 1, %v1294_v33  ;;  %v5843_v19 = vshrl.u32 %v1369_v15, 5  ;;  %v1374_v26 = vshll.u32 %v7061_v36, %v1371_v52 }
 0x18c   : > { %v1173_v51 = vsel %vm5805_vm9, %v5548_v18, %v1170_v34  ;;  %vm1297_vm0 = vc.u32 %v5828_v44, %v5830_v46  ;;  %v1375_v13 = vshrl.u32 %v7055_v38, %v5837_v24  ;;  %v1378_v43 = vshrl.u32 %v7051_v42, %v5837_v24 }
 0x18d   : > { %v1175_v9 = vmul.f32 %v1173_v51, %v1173_v51  ;;  %v1299_v16 = vsel %vm1297_vm0, %v1298_v29, %v1294_v33  ;;  %v1381_v53 = vshrl.u32 %v7053_v45, %v5837_v24  ;;  %v1377_v5 = vshll.u32 %v7055_v38, %v1371_v52 }
 0x18e   : > { %v1300_v2 = vadd.s32 %v1299_v16, %v1295_v1  ;;  %v1380_v35 = vshll.u32 %v7051_v42, %v1371_v52  ;;  %v1383_v40 = vshll.u32 %v7053_v45, %v1371_v52  ;;  %v7153_v56 = vmov 920167782  }
 0x18f   : > { %v1176_v6 = vmul.f32 -0.001358992, %v1175_v9  ;;  %v1183_v8 = vmul.f32 -0.00019511016, %v1175_v9  ;;  %v1384_v27 = vshrl.u32 %v7153_v56, %v5837_v24  ;;  %v1386_v37 = vshll.u32 %v7153_v56, %v1371_v52 }
 0x190   : > { %v1301_v15 = vadd.s32 536870912, %v1300_v2  ;;  %v7154_v34 = vmov 1326507024   ;;  %v1376_v33 = vor.u32 %v1375_v13, %v1374_v26  ;;  %v5860_v29 = vor.u32 %v1378_v43, %v1377_v5 }
 0x191   : > { %v1177_v10 = vadd.f32 0.041655596, %v1176_v6  ;;  %v1184_v60 = vadd.f32 0.008332121, %v1183_v8  ;;  %v1387_v48 = vshrl.u32 %v7154_v34, %v5837_v24  ;;  %v1382_v1 = vor.u32 %v1381_v53, %v1380_v35 }
 0x192   : > { %v1385_v6 = vor.u32 %v1384_v27, %v1383_v40  ;;  %v5862_v57 = vshrl.u32 %v1301_v15, 30  ;;  %v1192_v45 = vand.u32 3, %v1191_v50  ;;  %v1365_v38 = vor.u32 8388608, %v1364_v49 }
 0x193   : > { %v1178_v3 = vmul.f32 %v1177_v10, %v1175_v9  ;;  %v1185_v28 = vmul.f32 %v1184_v60, %v1175_v9  ;;  %v1388_v42 = vor.u32 %v1387_v48, %v1386_v37  ;;  %vm1389_vm4 = vcmp.lt.s32.totalorder %v5843_v19, 1 }
 0x194   : > { %v1515_v52 = vand.u32 2139095040, %v5833_v7  ;;  %v1303_v0 = vshll.u32 %v5862_v57, 30  ;;  %vm1392_vm5 = vcmp.lt.s32.totalorder %v5843_v19, 4  ;;  %vm7091_vm7 = vweird.f32 %v5548_v18 }
 0x195   : > { %v1179_v8 = vadd.f32 -0.4999988, %v1178_v3  ;;  %v1186_v16 = vadd.f32 -0.16666654, %v1185_v28  ;;  %vm1391_vm8 = vcmp.lt.s32.totalorder %v5843_v19, 3  ;;  %v1397_v26 = vsel %vm1389_vm4, %v1376_v33, %v5860_v29 }
 0x196   : > { %v1398_v49 = vsel %vm1392_vm5, %v1385_v6, 920167782  ;;  %v1402_v50 = vsel %vm1392_vm5, %v1388_v42, 1326507024  ;;  %v1304_v43 = vsub.s32 %v1300_v2, %v1303_v0  ;;  %v1401_v53 = vsel %vm1389_vm4, %v5860_v29, %v1382_v1 }
 0x197   : > { %v1180_v10 = vmul.f32 %v1179_v8, %v1175_v9  ;;  %v1187_v60 = vmul.f32 %v1186_v16, %v1175_v9  ;;  %vm1390_vm9 = vcmp.lt.s32.totalorder %v5843_v19, 2  ;;  %v1399_v5 = vsel %vm1391_vm8, %v1382_v1, %v1398_v49 }
 0x198   : > { %v1403_v35 = vsel %vm1391_vm8, %v1385_v6, %v1402_v50  ;;  %v5887_v40 = vshll.u32 %v1365_v38, 8  ;;  %vm1305_vm13 = vcmp.lt.s32.totalorder %v1304_v43, 0  ;;  %v1306_v0 = vsub.s32 0, %v1304_v43 }
 0x199   : > { %v5877_v13 = vadd.f32 1.0, %v1180_v10  ;;  %v1188_v9 = vadd.f32 1.0, %v1187_v60  ;;  %vm1193_vm14 = vcmp.lt.s32.totalorder %v1192_v45, 2  ;;  %vm1194_vm12 = vcmp.eq.s32.totalorder %v1192_v45, 0 }
 0x19a   : > { %v1400_v2 = vsel %vm1390_vm9, %v1397_v26, %v1399_v5  ;;  %v1404_v37 = vsel %vm1390_vm9, %v1401_v53, %v1403_v35  ;;  %vm1197_vm15 = vcmp.eq.s32.totalorder %v1192_v45, 2  ;;  %v1307_v28 = vsel %vm1305_vm13, %v1306_v0, %v1304_v43 }
 0x19b   : > { %7155 = vst [vmem:[#allocation16_spill] sm:$0xff] %v5877_v13  ;;  %v5889_v27 = vmul.f32 %v1188_v9, %v1173_v51  ;;  %v7059_v42 = vxor.u32 2147483648, %v5877_v13  ;;  %v1408_v38 = vand.u32 65535, %v1404_v37  ;;  %v1308_v15 = vclz %v1307_v28 }
 0x19c   : > { %v1406_v51 = vand.u32 65535, %v5887_v40  ;;  %v1407_v48 = vshrl.u32 %v5887_v40, 16  ;;  %v1409_v6 = vshrl.u32 %v1404_v37, 16  ;;  %v1373_v10 = vshrl.u32 %v7061_v36, %v5837_v24 }
 0x19d   : > { %7156 = vst [vmem:[#allocation17_spill] sm:$0xff] %v5889_v27  ;;  %v7060_v3 = vxor.u32 2147483648, %v5889_v27  ;;  %v1199_v16 = vsel %vm1197_vm15, %v7059_v42, %v5889_v27  ;;  %v1431_v60 = vshrl.u32 %v1400_v2, 16  ;;  %v4737_v49 = vadd.s32 4294967294, %v1308_v15 }
 0x19e   : > { %v1412_v50 = vmul.u32 %v1408_v38, %v1407_v48  ;;  %v1430_v9 = vand.u32 65535, %v1400_v2  ;;  %v1296_v5 = vadd.s32 %v5830_v46, %v5828_v44  ;;  %v1411_v35 = vmul.u32 %v1409_v6, %v1406_v51 }
 0x19f   : > { %v1196_v8 = vsel %vm1194_vm12, %v5877_v13, %v7060_v3  ;;  %v1516_v0 = vshrl.u32 %v1515_v52, 23  ;;  %vm4738_vm2 = vcmp.lt.s32.totalorder %v4737_v49, 0  ;;  %v1393_v37 = vsel %vm1389_vm4, %v1373_v10, %v1376_v33 }
 0x1a0   : > { %v1200_v26 = vsel %vm1193_vm14, %v1196_v8, %v1199_v16  ;;  %v1394_v24 = vsel %vm1392_vm5, %v1382_v1, 2102212464  ;;  %v1410_v45 = vmul.u32 %v1408_v38, %v1406_v51  ;;  %v1311_v28 = vsel %vm4738_vm2, 0, %v4737_v49 }
 0x1a1   : > { %v1201_v53 = vsel %vm7091_vm7, nan, %v1200_v26  ;;  %v1413_v15 = vmul.u32 %v1409_v6, %v1407_v48  ;;  %v1414_v2 = vshll.u32 %v1411_v35, 16  ;;  %v1433_v8 = vmul.u32 %v1431_v60, %v1406_v51 }
 0x1a2   : > { %2447 = vst [vmem:[%s5320_s3 + $0x50] sm:$0xff] %v1201_v53  ;;  %v1312_v16 = vsub.s32 32, %v1311_v28  ;;  %v1316_v26 = vsub.s32 4294967266, %v1311_v28  ;;  %v1416_v42 = vshll.u32 %v1412_v50, 16  ;;  %v1432_v3 = vmul.u32 %v1430_v9, %v1406_v51 }
 0x1a3   : > { %vm1418_vm0 = vc.u32 %v1410_v45, %v1414_v2  ;;  %v1420_v44 = vadd.s32 %v1414_v2, %v1410_v45  ;;  %v1434_v46 = vmul.u32 %v1430_v9, %v1407_v48  ;;  %v1436_v52 = vshll.u32 %v1433_v8, 16 }
 0x1a4   : > { %v1313_v36 = vshll.u32 %v1304_v43, %v1311_v28  ;;  %v1314_v18 = vshrl.u32 %v1296_v5, %v1312_v16  ;;  %v1317_v33 = vadd.s32 127, %v1316_v26  ;;  %v7157_v10 = vmov 0  }
 0x1a5   : > { %v1419_v13 = vsel %vm1418_vm0, 1, %v7157_v10  ;;  %v1415_v1 = vshrl.u32 %v1411_v35, 16  ;;  %vm1422_vm4 = vc.u32 %v1420_v44, %v1416_v42  ;;  %v1435_v49 = vmul.u32 %v1431_v60, %v1407_v48 }
 0x1a6   : > { %v1421_v38 = vadd.s32 %v1419_v13, %v1413_v15  ;;  %v1315_v6 = vor.u32 %v1314_v18, %v1313_v36  ;;  %v1318_v53 = vshll.u32 %v1317_v33, 23  ;;  %v1423_v27 = vsel %vm1422_vm4, 1, %v7157_v10 }
 0x1a7   : > { %vm1440_vm5 = vc.u32 %v1432_v3, %v1436_v52  ;;  %v1438_v51 = vshll.u32 %v1434_v46, 16  ;;  %v1442_v9 = vadd.s32 %v1436_v52, %v1432_v3  ;;  %v1326_v43 = vsub.s32 4, %v5862_v57 }
 0x1a8   : > { %v1425_v12 = vadd.s32 %v1423_v27, %v1421_v38  ;;  %v1441_v45 = vsel %vm1440_vm5, 1, %v7157_v10  ;;  %v1319_v2 = vor.u32 4788187, %v1318_v53  ;;  %v4742_v28 = vadd.s32 4294967169, %v1516_v0 }
 0x1a9   : > { %v1443_v5 = vadd.s32 %v1441_v45, %v1435_v49  ;;  %v1395_v13 = vsel %vm1391_vm8, %v5860_v29, %v1394_v24  ;;  %v1417_v42 = vshrl.u32 %v1412_v50, 16  ;;  %vm1444_vm13 = vc.u32 %v1442_v9, %v1438_v51 }
 0x1aa   : > { %v1426_v36 = vadd.s32 %v1425_v12, %v1415_v1  ;;  %v1320_v18 = vand.u32 2147483647, %v1319_v2  ;;  %v1322_v48 = vcvt.s32.f32 %v1315_v6  ;;  %v1445_v27 = vsel %vm1444_vm13, 1, %v7157_v10 }
 0x1ab   : > { %v1522_v60 = vadd.s32 1, %v4742_v28  ;;  %v1437_v3 = vshrl.u32 %v1433_v8, 16  ;;  %v1447_v15 = vadd.s32 %v1445_v27, %v1443_v5  ;;  %v7069_v16 = vand.u32 2147483647, %v5833_v7 }
 0x1ac   : > { %v5925_v35 = vadd.s32 %v1426_v36, %v1417_v42  ;;  %vm1204_vm14 = vcmp.lt.s32.totalorder %v5582_v22, 0  ;;  %v1323_v0 = vmul.f32 %v1322_v48, %v1320_v18  ;;  %v1396_v29 = vsel %vm1390_vm9, %v1393_v37, %v1395_v13 }
 0x1ad   : > { %vm1523_vm8 = vcmp.gt.s32.totalorder %v1522_v60, 0  ;;  %v1439_v12 = vshrl.u32 %v1434_v46, 16  ;;  %v5931_v50 = vadd.s32 %v1442_v9, %v1438_v51  ;;  %v1448_v24 = vadd.s32 %v1447_v15, %v1437_v3 }
 0x1ae   : > { %v1524_v26 = vsel %vm1523_vm8, %v1522_v60, 0  ;;  %v7158_v44 = vand.u32 2147483647, %v5582_v22  ;;  %v1324_v8 = vxor.u32 2147483648, %v1323_v0  ;;  %v1327_v33 = vsel %vm1204_vm14, %v1326_v43, %v5862_v57 }
 0x1af   : > { %v1526_v1 = vand.u32 31, %v1524_v26  ;;  %v1449_v19 = vadd.s32 %v1448_v24, %v1439_v12  ;;  %v1450_v37 = vmul.u32 %v5887_v40, %v1396_v29  ;;  %vm1452_vm9 = vc.u32 %v5925_v35, %v5931_v50 }
 0x1b0   : > { %vm5935_vm12 = vcmp.le.f32.partialorder %v7158_v44, 0.7853982  ;;  %v1519_v46 = vand.u32 8388607, %v7069_v16  ;;  %v1325_v38 = vsel %vm1204_vm14, %v1324_v8, %v1323_v0  ;;  %v5949_v49 = vshrl.u32 %v1524_v26, 5 }
 0x1b1   : > { %v5951_v6 = vsub.s32 32, %v1526_v1  ;;  %v7161_v53 = vmov 683565275   ;;  %v1328_v57 = vsel %vm5935_vm12, %v5582_v22, %v1325_v38  ;;  %v1453_v40 = vadd.s32 1, %v1449_v19 }
 0x1b2   : > { %v1529_v51 = vshll.u32 %v7161_v53, %v1526_v1  ;;  %v7162_v45 = vmov 2475754826   ;;  %v7163_v2 = vmov 2102212464   ;;  %v1330_v5 = vmul.f32 %v1328_v57, %v1328_v57 }
 0x1b3   : > { %v1532_v9 = vshll.u32 %v7162_v45, %v1526_v1  ;;  %v1538_v43 = vshll.u32 %v7163_v2, %v1526_v1  ;;  %v1530_v28 = vshrl.u32 %v7162_v45, %v5951_v6  ;;  %v7164_v13 = vmov 2131351028  }
 0x1b4   : > { %v1533_v42 = vshrl.u32 %v7164_v13, %v5951_v6  ;;  %v1535_v36 = vshll.u32 %v7164_v13, %v1526_v1  ;;  %v1454_v18 = vsel %vm1452_vm9, %v1453_v40, %v1449_v19  ;;  %v1536_v48 = vshrl.u32 %v7163_v2, %v5951_v6 }
 0x1b5   : > { %v1539_v27 = vshrl.u32 %v7153_v56, %v5951_v6  ;;  %v1541_v60 = vshll.u32 %v7153_v56, %v1526_v1  ;;  %v1331_v3 = vmul.f32 -0.001358992, %v1330_v5  ;;  %v1338_v15 = vmul.f32 -0.00019511016, %v1330_v5 }
 0x1b6   : > { %v1455_v0 = vadd.s32 %v1454_v18, %v1450_v37  ;;  %v5971_v29 = vsel %vm5935_vm12, 0, %v1327_v33  ;;  %v1520_v12 = vor.u32 8388608, %v1519_v46  ;;  %v1542_v26 = vshrl.u32 %v7154_v34, %v5951_v6 }
 0x1b7   : > { %7165 = vst [vmem:[#allocation18_spill] sm:$0xff] %v5971_v29  ;;  %v1540_v24 = vor.u32 %v1539_v27, %v1538_v43  ;;  %v1332_v44 = vadd.f32 0.041655596, %v1331_v3  ;;  %v1339_v8 = vadd.f32 0.008332121, %v1338_v15  ;;  %v5975_v38 = vor.u32 %v1530_v28, %v1529_v51 }
 0x1b8   : > { %v1456_v19 = vadd.s32 536870912, %v1455_v0  ;;  %v5977_v40 = vor.u32 %v1533_v42, %v1532_v9  ;;  %v5979_v1 = vor.u32 %v1536_v48, %v1535_v36  ;;  %v1543_v16 = vor.u32 %v1542_v26, %v1541_v60 }
 0x1b9   : > { %vm1547_vm15 = vcmp.lt.s32.totalorder %v5949_v49, 4  ;;  %v1333_v52 = vmul.f32 %v1332_v44, %v1330_v5  ;;  %v1340_v33 = vmul.f32 %v1339_v8, %v1330_v5  ;;  %vm1544_vm2 = vcmp.lt.s32.totalorder %v5949_v49, 1  ;;  %v233_v44 = vpop.permute.xlu0 %232 }
 0x1ba   : > { %v5982_v37 = vshrl.u32 %v1456_v19, 30  ;;  %v1346_v46 = vadd.s32 3, %v5971_v29  ;;  %vm1546_vm0 = vcmp.lt.s32.totalorder %v5949_v49, 3  ;;  %v1553_v51 = vsel %vm1547_vm15, %v1540_v24, 920167782 }
 0x1bb   : > { %v1334_v9 = vadd.f32 -0.4999988, %v1333_v52  ;;  %v1341_v43 = vadd.f32 -0.16666654, %v1340_v33  ;;  %v5990_v42 = vshll.u32 %v1520_v12, 8  ;;  %vm1545_vm4 = vcmp.lt.s32.totalorder %v5949_v49, 2 }
 0x1bc   : > { %v1458_v28 = vshll.u32 %v5982_v37, 30  ;;  %v1552_v36 = vsel %vm1544_vm2, %v5975_v38, %v5977_v40  ;;  %v1556_v18 = vsel %vm1544_vm2, %v5977_v40, %v5979_v1  ;;  %v1557_v48 = vsel %vm1547_vm15, %v1543_v16, 1326507024 }
 0x1bd   : > { %v1335_v27 = vmul.f32 %v1334_v9, %v1330_v5  ;;  %v1342_v60 = vmul.f32 %v1341_v43, %v1330_v5  ;;  %v1554_v15 = vsel %vm1546_vm0, %v5979_v1, %v1553_v51  ;;  %v1347_v12 = vand.u32 3, %v1346_v46  ;;  %v6022_v43 = vld [vmem:[%s7032_s1] ss:$0 sm:$0xff] }
 0x1be   : > { %v1459_v3 = vsub.s32 %v1455_v0, %v1458_v28  ;;  %v1558_v26 = vsel %vm1546_vm0, %v1540_v24, %v1557_v48  ;;  %v1555_v16 = vsel %vm1545_vm4, %v1552_v36, %v1554_v15  ;;  %v1561_v0 = vand.u32 65535, %v5990_v42 }
 0x1bf   : > { %v6008_v8 = vadd.f32 1.0, %v1335_v27  ;;  %v1343_v19 = vadd.f32 1.0, %v1342_v60  ;;  %v1559_v5 = vsel %vm1545_vm4, %v1556_v18, %v1558_v26  ;;  %v1562_v33 = vshrl.u32 %v5990_v42, 16 }
 0x1c0   : > { %vm1460_vm5 = vcmp.lt.s32.totalorder %v1459_v3, 0  ;;  %v1461_v52 = vsub.s32 0, %v1459_v3  ;;  %v1563_v9 = vand.u32 65535, %v1559_v5  ;;  %v6025_v28 = vmul.f32 %v6022_v43, %v233_v44 }
 0x1c1   : > { %7166 = vst [vmem:[#allocation19_spill] sm:$0xff] %v6008_v8  ;;  %v6016_v46 = vmul.f32 %v1343_v19, %v1328_v57  ;;  %v7079_v24 = vxor.u32 2147483648, %v6008_v8  ;;  %vm7090_vm13 = vweird.f32 %v5582_v22  ;;  %v1564_v18 = vshrl.u32 %v1559_v5, 16 }
 0x1c2   : > { %v1462_v51 = vsel %vm1460_vm5, %v1461_v52, %v1459_v3  ;;  %vm1348_vm14 = vcmp.lt.s32.totalorder %v1347_v12, 2  ;;  %vm1349_vm8 = vcmp.eq.s32.totalorder %v1347_v12, 0  ;;  %v6029_v48 = vmul.u32 %v1563_v9, %v1562_v33 }
 0x1c3   : > { %7167 = vst [vmem:[#allocation20_spill] sm:$0xff] %v6016_v46  ;;  %v1463_v36 = vclz %v1462_v51  ;;  %v7071_v57 = vxor.u32 2147483648, %v6016_v46  ;;  %vm1352_vm12 = vcmp.eq.s32.totalorder %v1347_v12, 2  ;;  %v1585_v60 = vand.u32 65535, %v1555_v16 }
 0x1c4   : > { %v1586_v15 = vshrl.u32 %v1555_v16, 16  ;;  %v1354_v44 = vsel %vm1352_vm12, %v7079_v24, %v6016_v46  ;;  %v1565_v19 = vmul.u32 %v1563_v9, %v1561_v0  ;;  %v1566_v52 = vmul.u32 %v1564_v18, %v1561_v0 }
 0x1c5   : > { %v4740_v27 = vadd.s32 4294967294, %v1463_v36  ;;  %v1351_v26 = vsel %vm1349_vm8, %v6008_v8, %v7071_v57  ;;  %v1451_v51 = vadd.s32 %v5931_v50, %v5925_v35  ;;  %v1568_v12 = vmul.u32 %v1564_v18, %v1562_v33 }
 0x1c6   : > { %v1355_v5 = vsel %vm1348_vm14, %v1351_v26, %v1354_v44  ;;  %v1569_v63 = vshll.u32 %v1566_v52, 16  ;;  %v1571_v57 = vshll.u32 %v6029_v48, 16  ;;  %v1587_v8 = vmul.u32 %v1585_v60, %v1561_v0 }
 0x1c7   : > { %vm4741_vm9 = vcmp.lt.s32.totalorder %v4740_v27, 0  ;;  %v1356_v16 = vsel %vm7090_vm13, nan, %v1355_v5  ;;  %v1588_v25 = vmul.u32 %v1586_v15, %v1561_v0  ;;  %vm1359_vm5 = vcmp.lt.s32.totalorder %v5720_v62, 0 }
 0x1c8   : > { %v1466_v36 = vsel %vm4741_vm9, 0, %v4740_v27  ;;  %2448 = vst [vmem:[%s5320_s3 + $0x60] sm:$0xff] %v1356_v16  ;;  %vm1573_vm14 = vc.u32 %v1565_v19, %v1569_v63  ;;  %v1575_v26 = vadd.s32 %v1569_v63, %v1565_v19  ;;  %v1589_v35 = vmul.u32 %v1585_v60, %v1562_v33 }
 0x1c9   : > { %v1467_v20 = vsub.s32 32, %v1466_v36  ;;  %v1471_v61 = vsub.s32 4294967266, %v1466_v36  ;;  %v1468_v9 = vshll.u32 %v1459_v3, %v1466_v36  ;;  %v1574_v44 = vsel %vm1573_vm14, 1, %v7157_v10 }
 0x1ca   : > { %v1591_v5 = vshll.u32 %v1588_v25, 16  ;;  %v1576_v27 = vadd.s32 %v1574_v44, %v1568_v12  ;;  %vm1577_vm8 = vc.u32 %v1575_v26, %v1571_v57  ;;  %v1590_v24 = vmul.u32 %v1586_v15, %v1562_v33 }
 0x1cb   : > { %v1469_v50 = vshrl.u32 %v1451_v51, %v1467_v20  ;;  %v1472_v18 = vadd.s32 127, %v1471_v61  ;;  %v1593_v22 = vshll.u32 %v1589_v35, 16  ;;  %v1528_v0 = vshrl.u32 %v7161_v53, %v5951_v6 }
 0x1cc   : > { %v1578_v16 = vsel %vm1577_vm8, 1, %v7157_v10  ;;  %v1570_v3 = vshrl.u32 %v1566_v52, 16  ;;  %vm1595_vm12 = vc.u32 %v1587_v8, %v1591_v5  ;;  %v1597_v63 = vadd.s32 %v1591_v5, %v1587_v8 }
 0x1cd   : > { %v1470_v46 = vor.u32 %v1469_v50, %v1468_v9  ;;  %v1473_v39 = vshll.u32 %v1472_v18, 23  ;;  %v1580_v36 = vadd.s32 %v1578_v16, %v1576_v27  ;;  %v1481_v61 = vsub.s32 4, %v5982_v37  ;;  %v238_v50 = vpop.permute.xlu1 %237 }
 0x1ce   : > { %v1549_v57 = vsel %vm1547_vm15, %v5979_v1, 2102212464  ;;  %v1596_v33 = vsel %vm1595_vm12, 1, %v7157_v10  ;;  %vm1599_vm9 = vc.u32 %v1597_v63, %v1593_v22  ;;  %v7086_v6 = vand.u32 2147483647, %v6025_v28 }
 0x1cf   : > { %v1474_v20 = vor.u32 4788187, %v1473_v39  ;;  %v1581_v60 = vadd.s32 %v1580_v36, %v1570_v3  ;;  %v1598_v15 = vadd.s32 %v1596_v33, %v1590_v24  ;;  %v1477_v51 = vcvt.s32.f32 %v1470_v46 }
 0x1d0   : > { %v1572_v52 = vshrl.u32 %v6029_v48, 16  ;;  %v1600_v8 = vsel %vm1599_vm9, 1, %v7157_v10  ;;  %v1548_v39 = vsel %vm1544_vm2, %v1528_v0, %v5975_v38  ;;  %v1592_v12 = vshrl.u32 %v1588_v25, 16 }
 0x1d1   : > { %v1475_v19 = vand.u32 2147483647, %v1474_v20  ;;  %v1602_v9 = vadd.s32 %v1600_v8, %v1598_v15  ;;  %v1670_v1 = vand.u32 2139095040, %v6025_v28  ;;  %v1482_v24 = vsel %vm1359_vm5, %v1481_v61, %v5982_v37  ;;  %v243_v15 = vpop.permute.xlu2 %242 }
 0x1d2   : > { %v1550_v46 = vsel %vm1546_vm0, %v5977_v40, %v1549_v57  ;;  %v1582_v48 = vadd.s32 %v1581_v60, %v1572_v52  ;;  %v1594_v18 = vshrl.u32 %v1589_v35, 16  ;;  %v1674_v25 = vand.u32 8388607, %v7086_v6 }
 0x1d3   : > { %v1478_v26 = vmul.f32 %v1477_v51, %v1475_v19  ;;  %v1603_v44 = vadd.s32 %v1602_v9, %v1592_v12  ;;  %v1671_v5 = vshrl.u32 %v1670_v1, 23  ;;  %v1601_v27 = vadd.s32 %v1597_v63, %v1593_v22 }
 0x1d4   : > { %v7168_v0 = vand.u32 2147483647, %v5720_v62  ;;  %v1551_v37 = vsel %vm1545_vm4, %v1548_v39, %v1550_v46  ;;  %v6073_v40 = vmul.f32 %v6022_v43, %v238_v50  ;;  %v1675_v63 = vor.u32 8388608, %v1674_v25 }
 0x1d5   : > { %v1479_v38 = vxor.u32 2147483648, %v1478_v26  ;;  %v1604_v16 = vadd.s32 %v1603_v44, %v1594_v18  ;;  %v4745_v3 = vadd.s32 4294967169, %v1671_v5  ;;  %vm1607_vm2 = vc.u32 %v1582_v48, %v1601_v27 }
 0x1d6   : > { %vm1358_vm15 = vcmp.le.f32.partialorder %v7168_v0, 0.7853982  ;;  %7169 = vst [vmem:[#allocation21_spill] sm:$0xff] %v6073_v40  ;;  %v1605_v49 = vmul.u32 %v5990_v42, %v1551_v37  ;;  %v6082_v12 = vshll.u32 %v1675_v63, 8  ;;  %v7085_v9 = vand.u32 2147483647, %v6073_v40 }
 0x1d7   : > { %v1480_v35 = vsel %vm1359_vm5, %v1479_v38, %v1478_v26  ;;  %v6077_v36 = vsel %vm1358_vm15, 0, %v1482_v24  ;;  %v1608_v22 = vadd.s32 1, %v1604_v16  ;;  %v1677_v61 = vadd.s32 1, %v4745_v3 }
 0x1d8   : > { %7170 = vst [vmem:[#allocation22_spill] sm:$0xff] %v6077_v36  ;;  %v1483_v20 = vsel %vm1358_vm15, %v5720_v62, %v1480_v35  ;;  %v1501_v33 = vadd.s32 3, %v6077_v36  ;;  %v1825_v1 = vand.u32 2139095040, %v6073_v40  ;;  %v6087_v42 = vmul.f32 %v6022_v43, %v243_v15 }
 0x1d9   : > { %v1485_v57 = vmul.f32 %v1483_v20, %v1483_v20  ;;  %v1609_v60 = vsel %vm1607_vm2, %v1608_v22, %v1604_v16  ;;  %vm1678_vm0 = vcmp.gt.s32.totalorder %v1677_v61, 0  ;;  %v6089_v25 = vadd.s32 %v1601_v27, %v1582_v48 }
 0x1da   : > { %v1610_v52 = vadd.s32 %v1609_v60, %v1605_v49  ;;  %v1679_v8 = vsel %vm1678_vm0, %v1677_v61, 0  ;;  %7171 = vst [vmem:[#allocation23_spill] sm:$0xff] %v6087_v42  ;;  %v1502_v50 = vand.u32 3, %v1501_v33  ;;  %vm1514_vm4 = vcmp.lt.s32.totalorder %v5833_v7, 0 }
 0x1db   : > { %v1486_v19 = vmul.f32 -0.001358992, %v1485_v57  ;;  %v1493_v51 = vmul.f32 -0.00019511016, %v1485_v57  ;;  %v1681_v39 = vand.u32 31, %v1679_v8  ;;  %v6093_v0 = vand.u32 65535, %v6082_v12 }
 0x1dc   : > { %v1611_v46 = vadd.s32 536870912, %v1610_v52  ;;  %v6096_v37 = vshrl.u32 %v6082_v12, 16  ;;  %v1826_v16 = vshrl.u32 %v1825_v1, 23  ;;  %v6100_v3 = vand.u32 8388607, %v7085_v9 }
 0x1dd   : > { %v1487_v26 = vadd.f32 0.041655596, %v1486_v19  ;;  %v1494_v24 = vadd.f32 0.008332121, %v1493_v51  ;;  %v1682_v18 = vsub.s32 32, %v1681_v39  ;;  %v6102_v61 = vshrl.u32 %v1679_v8, 5 }
 0x1de   : > { %v1612_v38 = vshrl.u32 %v1611_v46, 30  ;;  %vm1504_vm5 = vcmp.eq.s32.totalorder %v1502_v50, 0  ;;  %vm1507_vm14 = vcmp.eq.s32.totalorder %v1502_v50, 2  ;;  %v1684_v48 = vshll.u32 %v7161_v53, %v1681_v39 }
 0x1df   : > { %v1488_v44 = vmul.f32 %v1487_v26, %v1485_v57  ;;  %v1495_v5 = vmul.f32 %v1494_v24, %v1485_v57  ;;  %v1685_v27 = vshrl.u32 %v7162_v45, %v1682_v18  ;;  %v1688_v49 = vshrl.u32 %v7164_v13, %v1682_v18 }
 0x1e0   : > { %v1613_v63 = vshll.u32 %v1612_v38, 30  ;;  %v1694_v33 = vshrl.u32 %v7153_v56, %v1682_v18  ;;  %vm1503_vm8 = vcmp.lt.s32.totalorder %v1502_v50, 2  ;;  %v1687_v51 = vshll.u32 %v7162_v45, %v1681_v39 }
 0x1e1   : > { %v1489_v35 = vadd.f32 -0.4999988, %v1488_v44  ;;  %v1496_v22 = vadd.f32 -0.16666654, %v1495_v5  ;;  %vm7127_vm12 = vweird.f32 %v5720_v62  ;;  %v1636_v8 = vsub.s32 4, %v1612_v38 }
 0x1e2   : > { %v1614_v19 = vsub.s32 %v1610_v52, %v1613_v63  ;;  %v1691_v1 = vshrl.u32 %v7163_v2, %v1682_v18  ;;  %v1693_v26 = vshll.u32 %v7163_v2, %v1681_v39  ;;  %v1697_v24 = vshrl.u32 %v7154_v34, %v1682_v18 }
 0x1e3   : > { %v1490_v60 = vmul.f32 %v1489_v35, %v1485_v57  ;;  %v1497_v15 = vmul.f32 %v1496_v22, %v1485_v57  ;;  %v1686_v35 = vor.u32 %v1685_v27, %v1684_v48  ;;  %v1689_v57 = vor.u32 %v1688_v49, %v1687_v51 }
 0x1e4   : > { %vm1615_vm9 = vcmp.lt.s32.totalorder %v1614_v19, 0  ;;  %v1616_v5 = vsub.s32 0, %v1614_v19  ;;  %v1690_v52 = vshll.u32 %v7164_v13, %v1681_v39  ;;  %v1695_v22 = vor.u32 %v1694_v33, %v1693_v26 }
 0x1e5   : > { %v6113_v46 = vadd.f32 1.0, %v1490_v60  ;;  %v1498_v44 = vadd.f32 1.0, %v1497_v15  ;;  %v1696_v36 = vshll.u32 %v7153_v56, %v1681_v39  ;;  %v7174_v55 = vand.u32 2147483647, %v5833_v7 }
 0x1e6   : > { %v1617_v6 = vsel %vm1615_vm9, %v1616_v5, %v1614_v19  ;;  %v1683_v48 = vshrl.u32 %v7161_v53, %v1682_v18  ;;  %v1692_v27 = vor.u32 %v1691_v1, %v1690_v52  ;;  %v4748_v49 = vadd.s32 4294967169, %v1826_v16 }
 0x1e7   : > { %7172 = vst [vmem:[#allocation24_spill] sm:$0xff] %v6113_v46  ;;  %v6116_v63 = vmul.f32 %v1498_v44, %v1483_v20  ;;  %v7092_v9 = vxor.u32 2147483648, %v6113_v46  ;;  %vm6122_vm15 = vcmp.le.f32.partialorder %v7174_v55, 0.7853982  ;;  %v1618_v15 = vclz %v1617_v6 }
 0x1e8   : > { %v1637_v20 = vsel %vm1514_vm4, %v1636_v8, %v1612_v38  ;;  %v1698_v51 = vor.u32 %v1697_v24, %v1696_v36  ;;  %vm1699_vm2 = vcmp.lt.s32.totalorder %v6102_v61, 1  ;;  %vm1700_vm0 = vcmp.lt.s32.totalorder %v6102_v61, 2 }
 0x1e9   : > { %7173 = vst [vmem:[#allocation25_spill] sm:$0xff] %v6116_v63  ;;  %v7093_v33 = vxor.u32 2147483648, %v6116_v63  ;;  %v4743_v39 = vadd.s32 4294967294, %v1618_v15  ;;  %vm1702_vm9 = vcmp.lt.s32.totalorder %v6102_v61, 4  ;;  %v1707_v55 = vsel %vm1699_vm2, %v1686_v35, %v1689_v57 }
 0x1ea   : > { %v1509_v36 = vsel %vm1507_vm14, %v7092_v9, %v6116_v63  ;;  %vm1701_vm13 = vcmp.lt.s32.totalorder %v6102_v61, 3  ;;  %v1708_v18 = vsel %vm1702_vm9, %v1695_v22, 920167782  ;;  %v1711_v8 = vsel %vm1699_vm2, %v1689_v57, %v1692_v27 }
 0x1eb   : > { %v1506_v6 = vsel %vm1504_vm5, %v6113_v46, %v7093_v33  ;;  %vm4744_vm7 = vcmp.lt.s32.totalorder %v4743_v39, 0  ;;  %v1709_v16 = vsel %vm1701_vm13, %v1692_v27, %v1708_v18  ;;  %v1712_v44 = vsel %vm1702_vm9, %v1698_v51, 1326507024 }
 0x1ec   : > { %v1510_v38 = vsel %vm1503_vm8, %v1506_v6, %v1509_v36  ;;  %v1621_v26 = vsel %vm4744_vm7, 0, %v4743_v39  ;;  %v1710_v24 = vsel %vm1700_vm0, %v1707_v55, %v1709_v16  ;;  %v1704_v52 = vsel %vm1702_vm9, %v1692_v27, 2102212464 }
 0x1ed   : > { %v1511_v1 = vsel %vm7127_vm12, nan, %v1510_v38  ;;  %v1622_v5 = vsub.s32 32, %v1621_v26  ;;  %v1626_v50 = vsub.s32 4294967266, %v1621_v26  ;;  %v1713_v15 = vsel %vm1701_vm13, %v1695_v22, %v1712_v44 }
 0x1ee   : > { %2449 = vst [vmem:[%s5320_s3 + $0x70] sm:$0xff] %v1511_v1  ;;  %v1623_v6 = vshll.u32 %v1614_v19, %v1621_v26  ;;  %v1714_v36 = vsel %vm1700_vm0, %v1711_v8, %v1713_v15  ;;  %v1740_v39 = vand.u32 65535, %v1710_v24  ;;  %v1741_v18 = vshrl.u32 %v1710_v24, 16 }
 0x1ef   : > { %v1624_v55 = vshrl.u32 %v6089_v25, %v1622_v5  ;;  %v1627_v38 = vadd.s32 127, %v1626_v50  ;;  %v1718_v16 = vand.u32 65535, %v1714_v36  ;;  %v1719_v51 = vshrl.u32 %v1714_v36, 16 }
 0x1f0   : > { %v6167_v9 = vsel %vm6122_vm15, 0, %v1637_v20  ;;  %v1743_v27 = vmul.u32 %v1741_v18, %v6093_v0  ;;  %v1744_v22 = vmul.u32 %v1740_v39, %v6096_v37  ;;  %v1832_v1 = vadd.s32 1, %v4748_v49 }
 0x1f1   : > { %v1625_v19 = vor.u32 %v1624_v55, %v1623_v6  ;;  %v1628_v26 = vshll.u32 %v1627_v38, 23  ;;  %v1703_v8 = vsel %vm1699_vm2, %v1683_v48, %v1686_v35  ;;  %v1721_v24 = vmul.u32 %v1719_v51, %v6093_v0 }
 0x1f2   : > { %v1705_v25 = vsel %vm1701_vm13, %v1689_v57, %v1704_v52  ;;  %v1722_v44 = vmul.u32 %v1718_v16, %v6096_v37  ;;  %v1742_v20 = vmul.u32 %v1740_v39, %v6093_v0  ;;  %v1746_v5 = vshll.u32 %v1743_v27, 16 }
 0x1f3   : > { %v1629_v50 = vor.u32 4788187, %v1628_v26  ;;  %v1720_v15 = vmul.u32 %v1718_v16, %v6093_v0  ;;  %v1724_v36 = vshll.u32 %v1721_v24, 16  ;;  %v1745_v49 = vmul.u32 %v1741_v18, %v6096_v37 }
 0x1f4   : > { %v1632_v6 = vcvt.s32.f32 %v1625_v19  ;;  %v1723_v55 = vmul.u32 %v1719_v51, %v6096_v37  ;;  %v1726_v35 = vshll.u32 %v1722_v44, 16  ;;  %v1748_v48 = vshll.u32 %v1744_v22, 16 }
 0x1f5   : > { %v1630_v38 = vand.u32 2147483647, %v1629_v50  ;;  %vm1728_vm7 = vc.u32 %v1720_v15, %v1724_v36  ;;  %v1730_v33 = vadd.s32 %v1724_v36, %v1720_v15  ;;  %vm1750_vm13 = vc.u32 %v1742_v20, %v1746_v5 }
 0x1f6   : > { %v1729_v57 = vsel %vm1728_vm7, 1, %v7157_v10  ;;  %v1751_v52 = vsel %vm1750_vm13, 1, %v7157_v10  ;;  %v1752_v39 = vadd.s32 %v1746_v5, %v1742_v20  ;;  %vm1833_vm5 = vcmp.gt.s32.totalorder %v1832_v1, 0 }
 0x1f7   : > { %v1633_v26 = vmul.f32 %v1632_v6, %v1630_v38  ;;  %v1731_v0 = vadd.s32 %v1729_v57, %v1723_v55  ;;  %vm1732_vm14 = vc.u32 %v1730_v33, %v1726_v35  ;;  %v1753_v16 = vadd.s32 %v1751_v52, %v1745_v49 }
 0x1f8   : > { %v1706_v18 = vsel %vm1700_vm0, %v1703_v8, %v1705_v25  ;;  %v1733_v37 = vsel %vm1732_vm14, 1, %v7157_v10  ;;  %vm1754_vm8 = vc.u32 %v1752_v39, %v1748_v48  ;;  %v1834_v51 = vsel %vm1833_vm5, %v1832_v1, 0 }
 0x1f9   : > { %v1634_v19 = vxor.u32 2147483648, %v1633_v26  ;;  %v1725_v50 = vshrl.u32 %v1721_v24, 16  ;;  %v1735_v15 = vadd.s32 %v1733_v37, %v1731_v0  ;;  %v1755_v36 = vsel %vm1754_vm8, 1, %v7157_v10 }
 0x1fa   : > { %v1656_v62 = vadd.s32 3, %v6167_v9  ;;  %v1747_v20 = vshrl.u32 %v1743_v27, 16  ;;  %v1757_v5 = vadd.s32 %v1755_v36, %v1753_v16  ;;  %v1836_v6 = vand.u32 31, %v1834_v51 }
 0x1fb   : > { %v1635_v33 = vsel %vm1514_vm4, %v1634_v19, %v1633_v26  ;;  %v1727_v49 = vshrl.u32 %v1722_v44, 16  ;;  %v1736_v61 = vadd.s32 %v1735_v15, %v1725_v50  ;;  %v1760_v8 = vmul.u32 %v6082_v12, %v1706_v18 }
 0x1fc   : > { %v1638_v1 = vsel %vm6122_vm15, %v5833_v7, %v1635_v33  ;;  %v1749_v24 = vshrl.u32 %v1744_v22, 16  ;;  %v1758_v25 = vadd.s32 %v1757_v5, %v1747_v20  ;;  %v6194_v55 = vsub.s32 32, %v1836_v6 }
 0x1fd   : > { %v1640_v35 = vmul.f32 %v1638_v1, %v1638_v1  ;;  %v6196_v38 = vadd.s32 %v1736_v61, %v1727_v49  ;;  %v6198_v27 = vadd.s32 %v1752_v39, %v1748_v48  ;;  %v6200_v57 = vshrl.u32 %v1834_v51, 5 }
 0x1fe   : > { %v1759_v52 = vadd.s32 %v1758_v25, %v1749_v24  ;;  %v1839_v44 = vshll.u32 %v7161_v53, %v1836_v6  ;;  %v1842_v12 = vshll.u32 %v7162_v45, %v1836_v6  ;;  %v1843_v60 = vshrl.u32 %v7164_v13, %v6194_v55 }
 0x1ff   : > { %v1641_v26 = vmul.f32 -0.001358992, %v1640_v35  ;;  %v1648_v22 = vmul.f32 -0.00019511016, %v1640_v35  ;;  %vm1762_vm4 = vc.u32 %v6196_v38, %v6198_v27  ;;  %v1845_v0 = vshll.u32 %v7164_v13, %v1836_v6 }
 0x200   : > { %v1763_v16 = vadd.s32 1, %v1759_v52  ;;  %v1840_v48 = vshrl.u32 %v7162_v45, %v6194_v55  ;;  %v6211_v39 = vor.u32 %v1843_v60, %v1842_v12  ;;  %v1846_v18 = vshrl.u32 %v7163_v2, %v6194_v55 }
 0x201   : > { %v1642_v37 = vadd.f32 0.041655596, %v1641_v26  ;;  %v1649_v51 = vadd.f32 0.008332121, %v1648_v22  ;;  %v1848_v19 = vshll.u32 %v7163_v2, %v1836_v6  ;;  %v1849_v50 = vshrl.u32 %v7153_v56, %v6194_v55 }
 0x202   : > { %v1764_v15 = vsel %vm1762_vm4, %v1763_v16, %v1759_v52  ;;  %v6218_v36 = vor.u32 %v1846_v18, %v1845_v0  ;;  %v1851_v20 = vshll.u32 %v7153_v56, %v1836_v6  ;;  %v1852_v5 = vshrl.u32 %v7154_v34, %v6194_v55 }
 0x203   : > { %v1643_v33 = vmul.f32 %v1642_v37, %v1640_v35  ;;  %v1650_v49 = vmul.f32 %v1649_v51, %v1640_v35  ;;  %v1765_v61 = vadd.s32 %v1764_v15, %v1760_v8  ;;  %v1850_v24 = vor.u32 %v1849_v50, %v1848_v19 }
 0x204   : > { %v1657_v25 = vand.u32 3, %v1656_v62  ;;  %v1830_v12 = vor.u32 8388608, %v6100_v3  ;;  %v1841_v60 = vor.u32 %v1840_v48, %v1839_v44  ;;  %v1853_v26 = vor.u32 %v1852_v5, %v1851_v20 }
 0x205   : > { %v1644_v22 = vadd.f32 -0.4999988, %v1643_v33  ;;  %v1651_v46 = vadd.f32 -0.16666654, %v1650_v49  ;;  %v1766_v63 = vadd.s32 536870912, %v1765_v61  ;;  %vm1857_vm15 = vcmp.lt.s32.totalorder %v6200_v57, 4 }
 0x206   : > { %vm1854_vm2 = vcmp.lt.s32.totalorder %v6200_v57, 1  ;;  %vm1856_vm0 = vcmp.lt.s32.totalorder %v6200_v57, 3  ;;  %v1863_v6 = vsel %vm1857_vm15, %v1850_v24, 920167782  ;;  %v1867_v8 = vsel %vm1857_vm15, %v1853_v26, 1326507024 }
 0x207   : > { %v1645_v62 = vmul.f32 %v1644_v22, %v1640_v35  ;;  %v1652_v52 = vmul.f32 %v1651_v46, %v1640_v35  ;;  %v6231_v3 = vshrl.u32 %v1766_v63, 30  ;;  %v1866_v44 = vsel %vm1854_vm2, %v6211_v39, %v6218_v36 }
 0x208   : > { %vm1855_vm9 = vcmp.lt.s32.totalorder %v6200_v57, 2  ;;  %v1862_v0 = vsel %vm1854_vm2, %v1841_v60, %v6211_v39  ;;  %v1868_v16 = vsel %vm1856_vm0, %v1850_v24, %v1867_v8  ;;  %v6243_v48 = vshll.u32 %v1830_v12, 8 }
 0x209   : > { %v6245_v18 = vadd.f32 1.0, %v1645_v62  ;;  %v1653_v46 = vadd.f32 1.0, %v1652_v52  ;;  %v1768_v63 = vshll.u32 %v6231_v3, 30  ;;  %v1864_v35 = vsel %vm1856_vm0, %v6218_v36, %v1863_v6 }
 0x20a   : > { %vm7107_vm7 = vweird.f32 %v5833_v7  ;;  %vm1658_vm13 = vcmp.lt.s32.totalorder %v1657_v25, 2  ;;  %v1869_v37 = vsel %vm1855_vm9, %v1866_v44, %v1868_v16  ;;  %v1980_v51 = vand.u32 2139095040, %v6087_v42 }
 0x20b   : > { %7177 = vst [vmem:[#allocation26_spill] sm:$0xff] %v6245_v18  ;;  %v6255_v19 = vmul.f32 %v1653_v46, %v1638_v1  ;;  %vm1662_vm5 = vcmp.eq.s32.totalorder %v1657_v25, 2  ;;  %v7099_v50 = vxor.u32 2147483648, %v6245_v18  ;;  %v1769_v15 = vsub.s32 %v1765_v61, %v1768_v63 }
 0x20c   : > { %v1865_v20 = vsel %vm1855_vm9, %v1862_v0, %v1864_v35  ;;  %v1871_v5 = vand.u32 65535, %v6243_v48  ;;  %v1873_v33 = vand.u32 65535, %v1869_v37  ;;  %v1874_v49 = vshrl.u32 %v1869_v37, 16 }
 0x20d   : > { %7178 = vst [vmem:[#allocation27_spill] sm:$0xff] %v6255_v19  ;;  %v7100_v24 = vxor.u32 2147483648, %v6255_v19  ;;  %vm1770_vm14 = vcmp.lt.s32.totalorder %v1769_v15, 0  ;;  %v1771_v12 = vsub.s32 0, %v1769_v15  ;;  %v1872_v26 = vshrl.u32 %v6243_v48, 16 }
 0x20e   : > { %vm1659_vm8 = vcmp.eq.s32.totalorder %v1657_v25, 0  ;;  %v1664_v1 = vsel %vm1662_vm5, %v7099_v50, %v6255_v19  ;;  %v1838_v61 = vshrl.u32 %v7161_v53, %v6194_v55  ;;  %v1876_v22 = vmul.u32 %v1874_v49, %v1871_v5 }
 0x20f   : > { %v1661_v6 = vsel %vm1659_vm8, %v6245_v18, %v7100_v24  ;;  %v1772_v8 = vsel %vm1770_vm14, %v1771_v12, %v1769_v15  ;;  %v1877_v62 = vmul.u32 %v1873_v33, %v1872_v26  ;;  %v1896_v52 = vshrl.u32 %v1865_v20, 16 }
 0x210   : > { %v1665_v44 = vsel %vm1658_vm13, %v1661_v6, %v1664_v1  ;;  %v1773_v0 = vclz %v1772_v8  ;;  %v1879_v16 = vshll.u32 %v1876_v22, 16  ;;  %v1895_v46 = vand.u32 65535, %v1865_v20 }
 0x211   : > { %v1666_v63 = vsel %vm7107_vm7, nan, %v1665_v44  ;;  %v1761_v55 = vadd.s32 %v6198_v27, %v6196_v38  ;;  %v1875_v35 = vmul.u32 %v1873_v33, %v1871_v5  ;;  %v1981_v37 = vshrl.u32 %v1980_v51, 23 }
 0x212   : > { %v4746_v50 = vadd.s32 4294967294, %v1773_v0  ;;  %v1858_v24 = vsel %vm1854_vm2, %v1838_v61, %v1841_v60  ;;  %v1859_v25 = vsel %vm1857_vm15, %v6218_v36, 2102212464  ;;  %v1878_v12 = vmul.u32 %v1874_v49, %v1872_v26  ;;  %2450 = vst [vmem:[%s5320_s3 + $0x80] sm:$0xff] %v1666_v63 }
 0x213   : > { %v1881_v1 = vshll.u32 %v1877_v62, 16  ;;  %vm1883_vm4 = vc.u32 %v1875_v35, %v1879_v16  ;;  %v1885_v20 = vadd.s32 %v1879_v16, %v1875_v35  ;;  %v1898_v6 = vmul.u32 %v1896_v52, %v1871_v5 }
 0x214   : > { %vm4747_vm13 = vcmp.lt.s32.totalorder %v4746_v50, 0  ;;  %v1880_v8 = vshrl.u32 %v1876_v22, 16  ;;  %v1884_v38 = vsel %vm1883_vm4, 1, %v7157_v10  ;;  %v1899_v27 = vmul.u32 %v1895_v46, %v1872_v26 }
 0x215   : > { %v1776_v51 = vsel %vm4747_vm13, 0, %v4746_v50  ;;  %v1886_v33 = vadd.s32 %v1884_v38, %v1878_v12  ;;  %vm1887_vm5 = vc.u32 %v1885_v20, %v1881_v1  ;;  %v1901_v44 = vshll.u32 %v1898_v6, 16 }
 0x216   : > { %v1777_v60 = vsub.s32 32, %v1776_v51  ;;  %v1781_v61 = vsub.s32 4294967266, %v1776_v51  ;;  %v1888_v0 = vsel %vm1887_vm5, 1, %v7157_v10  ;;  %v1897_v36 = vmul.u32 %v1895_v46, %v1871_v5 }
 0x217   : > { %v1778_v49 = vshll.u32 %v1769_v15, %v1776_v51  ;;  %v1890_v63 = vadd.s32 %v1888_v0, %v1886_v33  ;;  %v1900_v7 = vmul.u32 %v1896_v52, %v1872_v26  ;;  %v1903_v18 = vshll.u32 %v1899_v27, 16 }
 0x218   : > { %v1779_v16 = vshrl.u32 %v1761_v55, %v1777_v60  ;;  %v1782_v35 = vadd.s32 127, %v1781_v61  ;;  %vm1905_vm15 = vc.u32 %v1897_v36, %v1901_v44  ;;  %v1907_v22 = vadd.s32 %v1901_v44, %v1897_v36 }
 0x219   : > { %v1860_v50 = vsel %vm1856_vm0, %v6211_v39, %v1859_v25  ;;  %v1891_v12 = vadd.s32 %v1890_v63, %v1880_v8  ;;  %v1906_v1 = vsel %vm1905_vm15, 1, %v7157_v10  ;;  %v4751_v20 = vadd.s32 4294967169, %v1981_v37 }
 0x21a   : > { %v1780_v38 = vor.u32 %v1779_v16, %v1778_v49  ;;  %v1783_v19 = vshll.u32 %v1782_v35, 23  ;;  %v1908_v29 = vadd.s32 %v1906_v1, %v1900_v7  ;;  %vm1909_vm2 = vc.u32 %v1907_v22, %v1903_v18 }
 0x21b   : > { %v1791_v15 = vsub.s32 4, %v6231_v3  ;;  %v1882_v5 = vshrl.u32 %v1877_v62, 16  ;;  %v1910_v26 = vsel %vm1909_vm2, 1, %v7157_v10  ;;  %v1902_v46 = vshrl.u32 %v1898_v6, 16 }
 0x21c   : > { %v1784_v52 = vor.u32 4788187, %v1783_v19  ;;  %v1912_v55 = vadd.s32 %v1910_v26, %v1908_v29  ;;  %v1987_v51 = vadd.s32 1, %v4751_v20  ;;  %vm1669_vm14 = vcmp.lt.s32.totalorder %v6025_v28, 0 }
 0x21d   : > { %v1861_v39 = vsel %vm1855_vm9, %v1858_v24, %v1860_v50  ;;  %v6293_v25 = vadd.s32 %v1891_v12, %v1882_v5  ;;  %v1904_v37 = vshrl.u32 %v1899_v27, 16  ;;  %v1787_v7 = vcvt.s32.f32 %v1780_v38 }
 0x21e   : > { %v1785_v8 = vand.u32 2147483647, %v1784_v52  ;;  %v1913_v33 = vadd.s32 %v1912_v55, %v1902_v46  ;;  %vm1988_vm0 = vcmp.gt.s32.totalorder %v1987_v51, 0  ;;  %v1792_v62 = vsel %vm1669_vm14, %v1791_v15, %v6231_v3 }
 0x21f   : > { %v6298_v19 = vadd.s32 %v1907_v22, %v1903_v18  ;;  %v1989_v29 = vsel %vm1988_vm0, %v1987_v51, 0  ;;  %v7179_v57 = vand.u32 2147483647, %v6025_v28  ;;  %v1915_v27 = vmul.u32 %v6243_v48, %v1861_v39 }
 0x220   : > { %v1788_v6 = vmul.f32 %v1787_v7, %v1785_v8  ;;  %v1914_v44 = vadd.s32 %v1913_v33, %v1904_v37  ;;  %v1991_v60 = vand.u32 31, %v1989_v29  ;;  %v7109_v61 = vand.u32 2147483647, %v6087_v42  ;;  %v253_v37 = vpop.permute.xlu1 %252 }
 0x221   : > { %vm6302_vm9 = vcmp.le.f32.partialorder %v7179_v57, 0.7853982  ;;  %vm1917_vm8 = vc.u32 %v6293_v25, %v6298_v19  ;;  %v6316_v49 = vshrl.u32 %v1989_v29, 5  ;;  %vm7116_vm0 = vweird.f32 %v6025_v28 }
 0x222   : > { %v1789_v3 = vxor.u32 2147483648, %v1788_v6  ;;  %v6312_v18 = vsel %vm6302_vm9, 0, %v1792_v62  ;;  %v1918_v0 = vadd.s32 1, %v1914_v44  ;;  %v6314_v36 = vsub.s32 32, %v1991_v60 }
 0x223   : > { %v1994_v63 = vshll.u32 %v7161_v53, %v1991_v60  ;;  %v1997_v16 = vshll.u32 %v7162_v45, %v1991_v60  ;;  %v2000_v48 = vshll.u32 %v7164_v13, %v1991_v60  ;;  %v2003_v12 = vshll.u32 %v7163_v2, %v1991_v60 }
 0x224   : > { %v1790_v35 = vsel %vm1669_vm14, %v1789_v3, %v1788_v6  ;;  %v1919_v22 = vsel %vm1917_vm8, %v1918_v0, %v1914_v44  ;;  %v1995_v50 = vshrl.u32 %v7162_v45, %v6314_v36  ;;  %v1998_v38 = vshrl.u32 %v7164_v13, %v6314_v36 }
 0x225   : > { %v6329_v1 = vsel %vm6302_vm9, %v6025_v28, %v1790_v35  ;;  %v1920_v20 = vadd.s32 %v1919_v22, %v1915_v27  ;;  %v2001_v15 = vshrl.u32 %v7163_v2, %v6314_v36  ;;  %v1811_v26 = vadd.s32 3, %v6312_v18 }
 0x226   : > { %v1795_v5 = vmul.f32 %v6329_v1, %v6329_v1  ;;  %v2004_v52 = vshrl.u32 %v7153_v56, %v6314_v36  ;;  %v1984_v55 = vand.u32 8388607, %v7109_v61  ;;  %v2006_v51 = vshll.u32 %v7153_v56, %v1991_v60  ;;  %v248_v60 = vpop.permute.xlu0 %247 }
 0x227   : > { %v1921_v46 = vadd.s32 536870912, %v1920_v20  ;;  %v2007_v39 = vshrl.u32 %v7154_v34, %v6314_v36  ;;  %v6345_v33 = vor.u32 %v1995_v50, %v1994_v63  ;;  %v6349_v6 = vor.u32 %v1998_v38, %v1997_v16 }
 0x228   : > { %v1796_v8 = vmul.f32 -0.001358992, %v1795_v5  ;;  %v1803_v7 = vmul.f32 -0.00019511016, %v1795_v5  ;;  %v2005_v62 = vor.u32 %v2004_v52, %v2003_v12  ;;  %v6351_v44 = vor.u32 %v2001_v15, %v2000_v48 }
 0x229   : > { %v6347_v29 = vshrl.u32 %v1921_v46, 30  ;;  %vm2012_vm4 = vcmp.lt.s32.totalorder %v6316_v49, 4  ;;  %vm2009_vm13 = vcmp.lt.s32.totalorder %v6316_v49, 1  ;;  %vm2011_vm5 = vcmp.lt.s32.totalorder %v6316_v49, 3 }
 0x22a   : > { %v1797_v57 = vadd.f32 0.041655596, %v1796_v8  ;;  %v1804_v24 = vadd.f32 0.008332121, %v1803_v7  ;;  %v6357_v27 = vmul.f32 %v6022_v43, %v253_v37  ;;  %v1985_v0 = vor.u32 8388608, %v1984_v55 }
 0x22b   : > { %v1923_v3 = vshll.u32 %v6347_v29, 30  ;;  %v2008_v63 = vor.u32 %v2007_v39, %v2006_v51  ;;  %v1812_v48 = vand.u32 3, %v1811_v26  ;;  %v2018_v22 = vsel %vm2012_vm4, %v2005_v62, 920167782 }
 0x22c   : > { %v1798_v16 = vmul.f32 %v1797_v57, %v1795_v5  ;;  %v1805_v35 = vmul.f32 %v1804_v24, %v1795_v5  ;;  %vm2010_vm15 = vcmp.lt.s32.totalorder %v6316_v49, 2  ;;  %v2017_v12 = vsel %vm2009_vm13, %v6345_v33, %v6349_v6 }
 0x22d   : > { %v6362_v50 = vsub.s32 %v1920_v20, %v1923_v3  ;;  %v2019_v38 = vsel %vm2011_vm5, %v6351_v44, %v2018_v22  ;;  %v6373_v15 = vmul.f32 %v6022_v43, %v248_v60  ;;  %v2021_v20 = vsel %vm2009_vm13, %v6349_v6, %v6351_v44 }
 0x22e   : > { %v1799_v26 = vadd.f32 -0.4999988, %v1798_v16  ;;  %v1806_v52 = vadd.f32 -0.16666654, %v1805_v35  ;;  %v2022_v55 = vsel %vm2012_vm4, %v2008_v63, 1326507024  ;;  %v2020_v43 = vsel %vm2010_vm15, %v2017_v12, %v2019_v38 }
 0x22f   : > { %vm1925_vm2 = vcmp.lt.s32.totalorder %v6362_v50, 0  ;;  %v1926_v46 = vsub.s32 0, %v6362_v50  ;;  %v6383_v51 = vshll.u32 %v1985_v0, 8  ;;  %vm1813_vm14 = vcmp.lt.s32.totalorder %v1812_v48, 2 }
 0x230   : > { %v1800_v39 = vmul.f32 %v1799_v26, %v1795_v5  ;;  %v1807_v37 = vmul.f32 %v1806_v52, %v1795_v5  ;;  %v2023_v8 = vsel %vm2011_vm5, %v2005_v62, %v2022_v55  ;;  %vm1814_vm9 = vcmp.eq.s32.totalorder %v1812_v48, 0 }
 0x231   : > { %vm1817_vm8 = vcmp.eq.s32.totalorder %v1812_v48, 2  ;;  %v1927_v7 = vsel %vm1925_vm2, %v1926_v46, %v6362_v50  ;;  %v2024_v57 = vsel %vm2010_vm15, %v2021_v20, %v2023_v8  ;;  %v2026_v0 = vand.u32 65535, %v6383_v51 }
 0x232   : > { %v6393_v24 = vadd.f32 1.0, %v1800_v39  ;;  %v1808_v60 = vadd.f32 1.0, %v1807_v37  ;;  %v1928_v5 = vclz %v1927_v7  ;;  %v2028_v3 = vand.u32 65535, %v2024_v57 }
 0x233   : > { %v2027_v63 = vshrl.u32 %v6383_v51, 16  ;;  %v2029_v16 = vshrl.u32 %v2024_v57, 16  ;;  %v2051_v62 = vshrl.u32 %v2020_v43, 16  ;;  %v1916_v12 = vadd.s32 %v6298_v19, %v6293_v25 }
 0x234   : > { %7182 = vst [vmem:[#allocation28_spill] sm:$0xff] %v6393_v24  ;;  %v6398_v35 = vmul.f32 %v1808_v60, %v6329_v1  ;;  %v7108_v22 = vxor.u32 2147483648, %v6393_v24  ;;  %v4749_v38 = vadd.s32 4294967294, %v1928_v5  ;;  %v1993_v26 = vshrl.u32 %v7161_v53, %v6314_v36 }
 0x235   : > { %v2031_v52 = vmul.u32 %v2029_v16, %v2026_v0  ;;  %v2032_v20 = vmul.u32 %v2028_v3, %v2027_v63  ;;  %v2050_v46 = vand.u32 65535, %v2020_v43  ;;  %v2030_v39 = vmul.u32 %v2028_v3, %v2026_v0 }
 0x236   : > { %7183 = vst [vmem:[#allocation29_spill] sm:$0xff] %v6398_v35  ;;  %v7110_v55 = vxor.u32 2147483648, %v6398_v35  ;;  %vm4750_vm2 = vcmp.lt.s32.totalorder %v4749_v38, 0  ;;  %v2033_v37 = vmul.u32 %v2029_v16, %v2027_v63  ;;  %v1819_v1 = vsel %vm1817_vm8, %v7108_v22, %v6398_v35 }
 0x237   : > { %v1931_v8 = vsel %vm4750_vm2, 0, %v4749_v38  ;;  %v2034_v7 = vshll.u32 %v2031_v52, 16  ;;  %v2053_v25 = vmul.u32 %v2051_v62, %v2026_v0  ;;  %v2036_v57 = vshll.u32 %v2032_v20, 16 }
 0x238   : > { %v1816_v19 = vsel %vm1814_vm9, %v6393_v24, %v7110_v55  ;;  %v1932_v36 = vsub.s32 32, %v1931_v8  ;;  %v1936_v43 = vsub.s32 4294967266, %v1931_v8  ;;  %v1933_v5 = vshll.u32 %v6362_v50, %v1931_v8 }
 0x239   : > { %v1820_v60 = vsel %vm1813_vm14, %v1816_v19, %v1819_v1  ;;  %vm2038_vm7 = vc.u32 %v2030_v39, %v2034_v7  ;;  %v2040_v3 = vadd.s32 %v2034_v7, %v2030_v39  ;;  %vm1824_vm8 = vcmp.lt.s32.totalorder %v6073_v40, 0 }
 0x23a   : > { %v1821_v16 = vsel %vm7116_vm0, nan, %v1820_v60  ;;  %v1934_v38 = vshrl.u32 %v1916_v12, %v1932_v36  ;;  %v1937_v22 = vadd.s32 127, %v1936_v43  ;;  %v2039_v61 = vsel %vm2038_vm7, 1, %v7157_v10 }
 0x23b   : > { %v2041_v55 = vadd.s32 %v2039_v61, %v2033_v37  ;;  %vm2042_vm9 = vc.u32 %v2040_v3, %v2036_v57  ;;  %v2052_v24 = vmul.u32 %v2050_v46, %v2026_v0  ;;  %v2054_v35 = vmul.u32 %v2050_v46, %v2027_v63  ;;  %2451 = vst [vmem:[%s5320_s3 + $0x90] sm:$0xff] %v1821_v16 }
 0x23c   : > { %v1935_v48 = vor.u32 %v1934_v38, %v1933_v5  ;;  %v1938_v1 = vshll.u32 %v1937_v22, 23  ;;  %v2043_v50 = vsel %vm2042_vm9, 1, %v7157_v10  ;;  %v2056_v8 = vshll.u32 %v2053_v25, 16 }
 0x23d   : > { %v2014_v39 = vsel %vm2012_vm4, %v6351_v44, 2102212464  ;;  %v2035_v7 = vshrl.u32 %v2031_v52, 16  ;;  %v2045_v19 = vadd.s32 %v2043_v50, %v2041_v55  ;;  %v2055_v12 = vmul.u32 %v2051_v62, %v2027_v63 }
 0x23e   : > { %v1939_v36 = vor.u32 4788187, %v1938_v1  ;;  %v2058_v43 = vshll.u32 %v2054_v35, 16  ;;  %vm2060_vm7 = vc.u32 %v2052_v24, %v2056_v8  ;;  %v2062_v61 = vadd.s32 %v2056_v8, %v2052_v24 }
 0x23f   : > { %v1942_v37 = vcvt.s32.f32 %v1935_v48  ;;  %v1946_v0 = vsub.s32 4, %v6347_v29  ;;  %v2046_v46 = vadd.s32 %v2045_v19, %v2035_v7  ;;  %v2061_v22 = vsel %vm2060_vm7, 1, %v7157_v10 }
 0x240   : > { %v1940_v57 = vand.u32 2147483647, %v1939_v36  ;;  %v2063_v60 = vadd.s32 %v2061_v22, %v2055_v12  ;;  %vm2064_vm14 = vc.u32 %v2062_v61, %v2058_v43  ;;  %v7115_v5 = vand.u32 2147483647, %v6373_v15 }
 0x241   : > { %v2013_v44 = vsel %vm2009_vm13, %v1993_v26, %v6345_v33  ;;  %v2015_v63 = vsel %vm2011_vm5, %v6349_v6, %v2014_v39  ;;  %v2037_v24 = vshrl.u32 %v2032_v20, 16  ;;  %v2065_v62 = vsel %vm2064_vm14, 1, %v7157_v10 }
 0x242   : > { %v1943_v52 = vmul.f32 %v1942_v37, %v1940_v57  ;;  %v2057_v55 = vshrl.u32 %v2053_v25, 16  ;;  %v2067_v3 = vadd.s32 %v2065_v62, %v2063_v60  ;;  %v2135_v16 = vand.u32 2139095040, %v6373_v15 }
 0x243   : > { %v1947_v38 = vsel %vm1824_vm8, %v1946_v0, %v6347_v29  ;;  %v2047_v48 = vadd.s32 %v2046_v46, %v2037_v24  ;;  %v2059_v1 = vshrl.u32 %v2054_v35, 16  ;;  %v2139_v6 = vand.u32 8388607, %v7115_v5 }
 0x244   : > { %v1944_v50 = vxor.u32 2147483648, %v1943_v52  ;;  %v2068_v33 = vadd.s32 %v2067_v3, %v2057_v55  ;;  %v2136_v26 = vshrl.u32 %v2135_v16, 23  ;;  %v7184_v20 = vand.u32 2147483647, %v6073_v40 }
 0x245   : > { %v2016_v25 = vsel %vm2010_vm15, %v2013_v44, %v2015_v63  ;;  %v2066_v8 = vadd.s32 %v2062_v61, %v2058_v43  ;;  %v2290_v39 = vand.u32 2139095040, %v6357_v27  ;;  %v2140_v0 = vor.u32 8388608, %v2139_v6 }
 0x246   : > { %vm1823_vm4 = vcmp.le.f32.partialorder %v7184_v20, 0.7853982  ;;  %v1945_v29 = vsel %vm1824_vm8, %v1944_v50, %v1943_v52  ;;  %v2069_v35 = vadd.s32 %v2068_v33, %v2059_v1  ;;  %v4754_v19 = vadd.s32 4294967169, %v2136_v26 }
 0x247   : > { %v6448_v7 = vsel %vm1823_vm4, 0, %v1947_v38  ;;  %v1948_v12 = vsel %vm1823_vm4, %v6073_v40, %v1945_v29  ;;  %vm2072_vm13 = vc.u32 %v2047_v48, %v2066_v8  ;;  %v2070_v43 = vmul.u32 %v6383_v51, %v2016_v25 }
 0x248   : > { %v1950_v36 = vmul.f32 %v1948_v12, %v1948_v12  ;;  %v2073_v37 = vadd.s32 1, %v2069_v35  ;;  %v2142_v46 = vadd.s32 1, %v4754_v19  ;;  %v1966_v49 = vadd.s32 3, %v6448_v7 }
 0x249   : > { %v2291_v61 = vshrl.u32 %v2290_v39, 23  ;;  %v6453_v55 = vshll.u32 %v2140_v0, 8  ;;  %vm1979_vm15 = vcmp.lt.s32.totalorder %v6087_v42, 0  ;;  %v6456_v51 = vadd.s32 %v2066_v8, %v2047_v48 }
 0x24a   : > { %v1951_v22 = vmul.f32 -0.001358992, %v1950_v36  ;;  %v1958_v57 = vmul.f32 -0.00019511016, %v1950_v36  ;;  %v2074_v60 = vsel %vm2072_vm13, %v2073_v37, %v2069_v35  ;;  %vm2143_vm5 = vcmp.gt.s32.totalorder %v2142_v46, 0 }
 0x24b   : > { %v2075_v44 = vadd.s32 %v2074_v60, %v2070_v43  ;;  %v2144_v63 = vsel %vm2143_vm5, %v2142_v46, 0  ;;  %v1967_v3 = vand.u32 3, %v1966_v49  ;;  %v4757_v38 = vadd.s32 4294967169, %v2291_v61 }
 0x24c   : > { %v1952_v24 = vadd.f32 0.041655596, %v1951_v22  ;;  %v1959_v62 = vadd.f32 0.008332121, %v1958_v57  ;;  %v2146_v52 = vand.u32 31, %v2144_v63  ;;  %v6460_v39 = vand.u32 65535, %v6453_v55 }
 0x24d   : > { %v2076_v16 = vadd.s32 536870912, %v2075_v44  ;;  %v6463_v29 = vshrl.u32 %v6453_v55, 16  ;;  %vm1969_vm2 = vcmp.eq.s32.totalorder %v1967_v3, 0  ;;  %vm1972_vm8 = vcmp.eq.s32.totalorder %v1967_v3, 2 }
 0x24e   : > { %v1953_v1 = vmul.f32 %v1952_v24, %v1950_v36  ;;  %v1960_v50 = vmul.f32 %v1959_v62, %v1950_v36  ;;  %v2147_v33 = vsub.s32 32, %v2146_v52  ;;  %v6465_v19 = vshrl.u32 %v2144_v63, 5 }
 0x24f   : > { %v2077_v26 = vshrl.u32 %v2076_v16, 30  ;;  %v6468_v48 = vadd.s32 1, %v4757_v38  ;;  %vm1968_vm9 = vcmp.lt.s32.totalorder %v1967_v3, 2  ;;  %v2149_v46 = vshll.u32 %v7161_v53, %v2146_v52 }
 0x250   : > { %v1954_v20 = vadd.f32 -0.4999988, %v1953_v1  ;;  %v1961_v25 = vadd.f32 -0.16666654, %v1960_v50  ;;  %v2150_v37 = vshrl.u32 %v7162_v45, %v2147_v33  ;;  %v2153_v49 = vshrl.u32 %v7164_v13, %v2147_v33 }
 0x251   : > { %v2078_v35 = vshll.u32 %v2077_v26, 30  ;;  %vm7120_vm7 = vweird.f32 %v6073_v40  ;;  %v2152_v61 = vshll.u32 %v7162_v45, %v2146_v52  ;;  %v2156_v22 = vshrl.u32 %v7163_v2, %v2147_v33 }
 0x252   : > { %v1955_v8 = vmul.f32 %v1954_v20, %v1950_v36  ;;  %v1962_v0 = vmul.f32 %v1961_v25, %v1950_v36  ;;  %v2159_v57 = vshrl.u32 %v7153_v56, %v2147_v33  ;;  %v2101_v24 = vsub.s32 4, %v2077_v26 }
 0x253   : > { %v6473_v43 = vsub.s32 %v2075_v44, %v2078_v35  ;;  %v2155_v36 = vshll.u32 %v7164_v13, %v2146_v52  ;;  %v2151_v16 = vor.u32 %v2150_v37, %v2149_v46  ;;  %v2158_v44 = vshll.u32 %v7163_v2, %v2146_v52 }
 0x254   : > { %v6478_v60 = vadd.f32 1.0, %v1955_v8  ;;  %v1963_v63 = vadd.f32 1.0, %v1962_v0  ;;  %v2154_v50 = vor.u32 %v2153_v49, %v2152_v61  ;;  %v2162_v20 = vshrl.u32 %v7154_v34, %v2147_v33 }
 0x255   : > { %vm2080_vm14 = vcmp.lt.s32.totalorder %v6473_v43, 0  ;;  %v2081_v62 = vsub.s32 0, %v6473_v43  ;;  %v2157_v35 = vor.u32 %v2156_v22, %v2155_v36  ;;  %v2160_v8 = vor.u32 %v2159_v57, %v2158_v44 }
 0x256   : > { %v6484_v38 = vmul.f32 %v1963_v63, %v1948_v12  ;;  %v7117_v1 = vxor.u32 2147483648, %v6478_v60  ;;  %v2161_v0 = vshll.u32 %v7153_v56, %v2146_v52  ;;  %v2102_v37 = vsel %vm1979_vm15, %v2101_v24, %v2077_v26 }
 0x257   : > { %v2082_v25 = vsel %vm2080_vm14, %v2081_v62, %v6473_v43  ;;  %v2148_v12 = vshrl.u32 %v7161_v53, %v2147_v33  ;;  %v7185_v46 = vand.u32 2147483647, %v6087_v42  ;;  %vm2164_vm13 = vcmp.lt.s32.totalorder %v6465_v19, 1 }
 0x258   : > { %v7118_v5 = vxor.u32 2147483648, %v6484_v38  ;;  %v2083_v6 = vclz %v2082_v25  ;;  %v2163_v61 = vor.u32 %v2162_v20, %v2161_v0  ;;  %vm2165_vm5 = vcmp.lt.s32.totalorder %v6465_v19, 2 }
 0x259   : > { %vm6496_vm4 = vcmp.le.f32.partialorder %v7185_v46, 0.7853982  ;;  %vm2166_vm14 = vcmp.lt.s32.totalorder %v6465_v19, 3  ;;  %v1974_v33 = vsel %vm1972_vm8, %v7117_v1, %v6484_v38  ;;  %vm2167_vm0 = vcmp.lt.s32.totalorder %v6465_v19, 4 }
 0x25a   : > { %v1971_v52 = vsel %vm1969_vm2, %v6478_v60, %v7118_v5  ;;  %v4752_v26 = vadd.s32 4294967294, %v2083_v6  ;;  %v2169_v57 = vsel %vm2167_vm0, %v2157_v35, 2102212464  ;;  %v2172_v63 = vsel %vm2164_vm13, %v2151_v16, %v2154_v50 }
 0x25b   : > { %v1975_v22 = vsel %vm1968_vm9, %v1971_v52, %v1974_v33  ;;  %v2173_v24 = vsel %vm2167_vm0, %v2160_v8, 920167782  ;;  %v2168_v62 = vsel %vm2164_vm13, %v2148_v12, %v2151_v16  ;;  %v2176_v20 = vsel %vm2164_vm13, %v2154_v50, %v2157_v35 }
 0x25c   : > { %v1976_v36 = vsel %vm7120_vm7, nan, %v1975_v22  ;;  %vm4753_vm2 = vcmp.lt.s32.totalorder %v4752_v26, 0  ;;  %v2174_v44 = vsel %vm2166_vm14, %v2157_v35, %v2173_v24  ;;  %v2177_v25 = vsel %vm2167_vm0, %v2163_v61, 1326507024 }
 0x25d   : > { %v2086_v6 = vsel %vm4753_vm2, 0, %v4752_v26  ;;  %v2175_v3 = vsel %vm2165_vm5, %v2172_v63, %v2174_v44  ;;  %2452 = vst [vmem:[%s5320_s3 + $0xa0] sm:$0xff] %v1976_v36  ;;  %v2170_v52 = vsel %vm2166_vm14, %v2154_v50, %v2169_v57  ;;  %v2178_v16 = vsel %vm2166_vm14, %v2160_v8, %v2177_v25 }
 0x25e   : > { %v2087_v0 = vsub.s32 32, %v2086_v6  ;;  %v2091_v46 = vsub.s32 4294967266, %v2086_v6  ;;  %v2088_v12 = vshll.u32 %v6473_v43, %v2086_v6  ;;  %v2179_v33 = vsel %vm2165_vm5, %v2176_v20, %v2178_v16 }
 0x25f   : > { %v2205_v26 = vand.u32 65535, %v2175_v3  ;;  %v2206_v22 = vshrl.u32 %v2175_v3, 16  ;;  %v2183_v61 = vand.u32 65535, %v2179_v33  ;;  %v2184_v24 = vshrl.u32 %v2179_v33, 16 }
 0x260   : > { %v2089_v63 = vshrl.u32 %v6456_v51, %v2087_v0  ;;  %v2092_v35 = vadd.s32 127, %v2091_v46  ;;  %v7188_v50 = vand.u32 2147483647, %v6357_v27  ;;  %vm2298_vm0 = vcmp.gt.s32.totalorder %v6468_v48, 0 }
 0x261   : > { %v2208_v36 = vmul.u32 %v2206_v22, %v6460_v39  ;;  %v2209_v44 = vmul.u32 %v2205_v26, %v6463_v29  ;;  %v6543_v6 = vsel %vm6496_vm4, 0, %v2102_v37  ;;  %v2186_v51 = vmul.u32 %v2184_v24, %v6460_v39 }
 0x262   : > { %v6538_v57 = vand.u32 8388607, %v7188_v50  ;;  %v2090_v43 = vor.u32 %v2089_v63, %v2088_v12  ;;  %v2093_v8 = vshll.u32 %v2092_v35, 23  ;;  %v6548_v3 = vsel %vm2165_vm5, %v2168_v62, %v2170_v52 }
 0x263   : > { %v2187_v20 = vmul.u32 %v2183_v61, %v6463_v29  ;;  %v2207_v25 = vmul.u32 %v2205_v26, %v6460_v39  ;;  %v2211_v0 = vshll.u32 %v2208_v36, 16  ;;  %v2185_v16 = vmul.u32 %v2183_v61, %v6460_v39 }
 0x264   : > { %v2094_v46 = vor.u32 4788187, %v2093_v8  ;;  %v2189_v12 = vshll.u32 %v2186_v51, 16  ;;  %v2210_v33 = vmul.u32 %v2206_v22, %v6463_v29  ;;  %v2097_v63 = vcvt.s32.f32 %v2090_v43 }
 0x265   : > { %v2188_v37 = vmul.u32 %v2184_v24, %v6463_v29  ;;  %v2191_v35 = vshll.u32 %v2187_v20, 16  ;;  %v2213_v50 = vshll.u32 %v2209_v44, 16  ;;  %vm2215_vm9 = vc.u32 %v2207_v25, %v2211_v0 }
 0x266   : > { %v2095_v1 = vand.u32 2147483647, %v2094_v46  ;;  %vm2193_vm8 = vc.u32 %v2185_v16, %v2189_v12  ;;  %v2195_v19 = vadd.s32 %v2189_v12, %v2185_v16  ;;  %v2216_v52 = vsel %vm2215_vm9, 1, %v7157_v10 }
 0x267   : > { %v2194_v62 = vsel %vm2193_vm8, 1, %v7157_v10  ;;  %v2217_v26 = vadd.s32 %v2211_v0, %v2207_v25  ;;  %v2299_v39 = vsel %vm2298_vm0, %v6468_v48, 0  ;;  %v2218_v43 = vadd.s32 %v2216_v52, %v2210_v33 }
 0x268   : > { %v2098_v61 = vmul.f32 %v2097_v63, %v2095_v1  ;;  %v2196_v22 = vadd.s32 %v2194_v62, %v2188_v37  ;;  %vm2197_vm13 = vc.u32 %v2195_v19, %v2191_v35  ;;  %v2190_v29 = vshrl.u32 %v2186_v51, 16 }
 0x269   : > { %v2198_v24 = vsel %vm2197_vm13, 1, %v7157_v10  ;;  %vm2219_vm5 = vc.u32 %v2217_v26, %v2213_v50  ;;  %v2295_v8 = vor.u32 8388608, %v6538_v57  ;;  %v2301_v5 = vand.u32 31, %v2299_v39 }
 0x26a   : > { %v2099_v46 = vxor.u32 2147483648, %v2098_v61  ;;  %v2200_v16 = vadd.s32 %v2198_v24, %v2196_v22  ;;  %v2220_v12 = vsel %vm2219_vm5, 1, %v7157_v10  ;;  %v2121_v25 = vadd.s32 3, %v6543_v6 }
 0x26b   : > { %v2212_v0 = vshrl.u32 %v2208_v36, 16  ;;  %v2222_v40 = vadd.s32 %v2220_v12, %v2218_v43  ;;  %v2225_v48 = vmul.u32 %v6453_v55, %v6548_v3  ;;  %v2192_v51 = vshrl.u32 %v2187_v20, 16 }
 0x26c   : > { %v2100_v1 = vsel %vm1979_vm15, %v2099_v46, %v2098_v61  ;;  %v2201_v33 = vadd.s32 %v2200_v16, %v2190_v29  ;;  %v6568_v63 = vsub.s32 32, %v2301_v5  ;;  %v2214_v35 = vshrl.u32 %v2209_v44, 16 }
 0x26d   : > { %v2103_v37 = vsel %vm6496_vm4, %v6087_v42, %v2100_v1  ;;  %v6573_v19 = vadd.s32 %v2217_v26, %v2213_v50  ;;  %v2223_v62 = vadd.s32 %v2222_v40, %v2212_v0  ;;  %v6577_v22 = vshrl.u32 %v2299_v39, 5 }
 0x26e   : > { %v2105_v36 = vmul.f32 %v2103_v37, %v2103_v37  ;;  %v6575_v52 = vadd.s32 %v2201_v33, %v2192_v51  ;;  %v2305_v55 = vshrl.u32 %v7162_v45, %v6568_v63  ;;  %v2304_v20 = vshll.u32 %v7161_v53, %v2301_v5 }
 0x26f   : > { %v2224_v3 = vadd.s32 %v2223_v62, %v2214_v35  ;;  %v2308_v61 = vshrl.u32 %v7164_v13, %v6568_v63  ;;  %v2311_v49 = vshrl.u32 %v7163_v2, %v6568_v63  ;;  %v2307_v40 = vshll.u32 %v7162_v45, %v2301_v5 }
 0x270   : > { %v2106_v44 = vmul.f32 -0.001358992, %v2105_v36  ;;  %v2113_v50 = vmul.f32 -0.00019511016, %v2105_v36  ;;  %vm2227_vm15 = vc.u32 %v6575_v52, %v6573_v19  ;;  %v6589_v39 = vor.u32 %v2305_v55, %v2304_v20 }
 0x271   : > { %v2228_v26 = vadd.s32 1, %v2224_v3  ;;  %v2310_v43 = vshll.u32 %v7164_v13, %v2301_v5  ;;  %v2313_v29 = vshll.u32 %v7163_v2, %v2301_v5  ;;  %v6593_v16 = vor.u32 %v2308_v61, %v2307_v40 }
 0x272   : > { %v2107_v24 = vadd.f32 0.041655596, %v2106_v44  ;;  %v2114_v46 = vadd.f32 0.008332121, %v2113_v50  ;;  %v2314_v12 = vshrl.u32 %v7153_v56, %v6568_v63  ;;  %v2316_v51 = vshll.u32 %v7153_v56, %v2301_v5 }
 0x273   : > { %v2229_v0 = vsel %vm2227_vm15, %v2228_v26, %v2224_v3  ;;  %v6597_v1 = vor.u32 %v2311_v49, %v2310_v43  ;;  %v2317_v45 = vshrl.u32 %v7154_v34, %v6568_v63  ;;  %v2122_v2 = vand.u32 3, %v2121_v25 }
 0x274   : > { %v2108_v33 = vmul.f32 %v2107_v24, %v2105_v36  ;;  %v2115_v35 = vmul.f32 %v2114_v46, %v2105_v36  ;;  %v2230_v13 = vadd.s32 %v2229_v0, %v2225_v48  ;;  %v2315_v62 = vor.u32 %v2314_v12, %v2313_v29 }
 0x275   : > { %v2318_v55 = vor.u32 %v2317_v45, %v2316_v51  ;;  %vm2319_vm4 = vcmp.lt.s32.totalorder %v6577_v22, 1  ;;  %vm2321_vm14 = vcmp.lt.s32.totalorder %v6577_v22, 3  ;;  %vm2322_vm2 = vcmp.lt.s32.totalorder %v6577_v22, 4 }
 0x276   : > { %v2109_v20 = vadd.f32 -0.4999988, %v2108_v33  ;;  %v2116_v61 = vadd.f32 -0.16666654, %v2115_v35  ;;  %v2231_v3 = vadd.s32 536870912, %v2230_v13  ;;  %v2327_v56 = vsel %vm2319_vm4, %v6589_v39, %v6593_v16 }
 0x277   : > { %v2328_v34 = vsel %vm2322_vm2, %v2315_v62, 920167782  ;;  %v2331_v5 = vsel %vm2319_vm4, %v6593_v16, %v6597_v1  ;;  %v2332_v25 = vsel %vm2322_vm2, %v2318_v55, 1326507024  ;;  %vm2320_vm0 = vcmp.lt.s32.totalorder %v6577_v22, 2 }
 0x278   : > { %v2110_v48 = vmul.f32 %v2109_v20, %v2105_v36  ;;  %v2117_v49 = vmul.f32 %v2116_v61, %v2105_v36  ;;  %v6617_v44 = vshrl.u32 %v2231_v3, 30  ;;  %v2329_v50 = vsel %vm2321_vm14, %v6597_v1, %v2328_v34 }
 0x279   : > { %v2333_v40 = vsel %vm2321_vm14, %v2315_v62, %v2332_v25  ;;  %v6627_v26 = vshll.u32 %v2295_v8, 8  ;;  %v2330_v24 = vsel %vm2320_vm0, %v2327_v56, %v2329_v50  ;;  %vm7126_vm8 = vweird.f32 %v6087_v42 }
 0x27a   : > { %v6629_v43 = vadd.f32 1.0, %v2110_v48  ;;  %v2118_v29 = vadd.f32 1.0, %v2117_v49  ;;  %v2233_v36 = vshll.u32 %v6617_v44, 30  ;;  %v2334_v46 = vsel %vm2320_vm0, %v2331_v5, %v2333_v40 }
 0x27b   : > { %vm2123_vm9 = vcmp.lt.s32.totalorder %v2122_v2, 2  ;;  %v2336_v0 = vand.u32 65535, %v6627_v26  ;;  %v2338_v51 = vand.u32 65535, %v2334_v46  ;;  %v2339_v45 = vshrl.u32 %v2334_v46, 16 }
 0x27c   : > { %7189 = vst [vmem:[#allocation30_spill] sm:$0xff] %v6629_v43  ;;  %v6637_v12 = vmul.f32 %v2118_v29, %v2103_v37  ;;  %v7121_v57 = vxor.u32 2147483648, %v6629_v43  ;;  %v2234_v8 = vsub.s32 %v2230_v13, %v2233_v36  ;;  %v2361_v33 = vshrl.u32 %v2330_v24, 16 }
 0x27d   : > { %v2337_v55 = vshrl.u32 %v6627_v26, 16  ;;  %vm2124_vm5 = vcmp.eq.s32.totalorder %v2122_v2, 0  ;;  %vm2127_vm15 = vcmp.eq.s32.totalorder %v2122_v2, 2  ;;  %v2341_v20 = vmul.u32 %v2339_v45, %v2336_v0 }
 0x27e   : > { %v7122_v35 = vxor.u32 2147483648, %v6637_v12  ;;  %vm2235_vm13 = vcmp.lt.s32.totalorder %v2234_v8, 0  ;;  %v2236_v62 = vsub.s32 0, %v2234_v8  ;;  %v2360_v37 = vand.u32 65535, %v2330_v24 }
 0x27f   : > { %v2129_v13 = vsel %vm2127_vm15, %v7121_v57, %v6637_v12  ;;  %v2342_v56 = vmul.u32 %v2338_v51, %v2337_v55  ;;  %vm2134_vm7 = vcmp.lt.s32.totalorder %v6373_v15, 0  ;;  %v2344_v25 = vshll.u32 %v2341_v20, 16 }
 0x280   : > { %v2126_v61 = vsel %vm2124_vm5, %v6629_v43, %v7122_v35  ;;  %v2237_v3 = vsel %vm2235_vm13, %v2236_v62, %v2234_v8  ;;  %v2363_v48 = vmul.u32 %v2361_v33, %v2336_v0  ;;  %v2226_v50 = vadd.s32 %v6573_v19, %v6575_v52 }
 0x281   : > { %v2130_v34 = vsel %vm2123_vm9, %v2126_v61, %v2129_v13  ;;  %v2238_v5 = vclz %v2237_v3  ;;  %v2303_v40 = vshrl.u32 %v7161_v53, %v6568_v63  ;;  %v2340_v29 = vmul.u32 %v2338_v51, %v2336_v0 }
 0x282   : > { %v2131_v49 = vsel %vm7126_vm8, nan, %v2130_v34  ;;  %v2256_v24 = vsub.s32 4, %v6617_v44  ;;  %v2324_v2 = vsel %vm2322_vm2, %v6597_v1, 2102212464  ;;  %v2343_v46 = vmul.u32 %v2339_v45, %v2337_v55 }
 0x283   : > { %v4755_v36 = vadd.s32 4294967294, %v2238_v5  ;;  %2453 = vst [vmem:[%s5320_s3 + $0xb0] sm:$0xff] %v2131_v49  ;;  %v2346_v62 = vshll.u32 %v2342_v56, 16  ;;  %vm2348_vm9 = vc.u32 %v2340_v29, %v2344_v25  ;;  %v2350_v61 = vadd.s32 %v2344_v25, %v2340_v29 }
 0x284   : > { %v2364_v13 = vmul.u32 %v2360_v37, %v2337_v55  ;;  %v2349_v19 = vsel %vm2348_vm9, 1, %v7157_v10  ;;  %v2362_v52 = vmul.u32 %v2360_v37, %v2336_v0  ;;  %v2366_v3 = vshll.u32 %v2363_v48, 16 }
 0x285   : > { %vm4756_vm13 = vcmp.lt.s32.totalorder %v4755_v36, 0  ;;  %v2345_v63 = vshrl.u32 %v2341_v20, 16  ;;  %v2351_v51 = vadd.s32 %v2349_v19, %v2343_v46  ;;  %vm2352_vm5 = vc.u32 %v2350_v61, %v2346_v62 }
 0x286   : > { %v2241_v53 = vsel %vm4756_vm13, 0, %v4755_v36  ;;  %v2353_v57 = vsel %vm2352_vm5, 1, %v7157_v10  ;;  %v2365_v1 = vmul.u32 %v2361_v33, %v2337_v55  ;;  %v2368_v49 = vshll.u32 %v2364_v13, 16 }
 0x287   : > { %v2242_v34 = vsub.s32 32, %v2241_v53  ;;  %v2246_v5 = vsub.s32 4294967266, %v2241_v53  ;;  %v2355_v45 = vadd.s32 %v2353_v57, %v2351_v51  ;;  %vm2370_vm2 = vc.u32 %v2362_v52, %v2366_v3 }
 0x288   : > { %v2372_v35 = vadd.s32 %v2366_v3, %v2362_v52  ;;  %v2243_v25 = vshll.u32 %v2234_v8, %v2241_v53  ;;  %v2371_v43 = vsel %vm2370_vm2, 1, %v7157_v10  ;;  %v2257_v0 = vsel %vm2134_vm7, %v2256_v24, %v6617_v44 }
 0x289   : > { %v2244_v29 = vshrl.u32 %v2226_v50, %v2242_v34  ;;  %v2247_v42 = vadd.s32 127, %v2246_v5  ;;  %v2356_v20 = vadd.s32 %v2355_v45, %v2345_v63  ;;  %v2373_v37 = vadd.s32 %v2371_v43, %v2365_v1 }
 0x28a   : > { %vm2374_vm15 = vc.u32 %v2372_v35, %v2368_v49  ;;  %v2347_v62 = vshrl.u32 %v2342_v56, 16  ;;  %v7190_v33 = vand.u32 2147483647, %v6373_v15  ;;  %v2323_v55 = vsel %vm2319_vm4, %v2303_v40, %v6589_v39 }
 0x28b   : > { %v2245_v36 = vor.u32 %v2244_v29, %v2243_v25  ;;  %v2248_v46 = vshll.u32 %v2247_v42, 23  ;;  %v2375_v57 = vsel %vm2374_vm15, 1, %v7157_v10  ;;  %v2367_v50 = vshrl.u32 %v2363_v48, 16 }
 0x28c   : > { %vm6671_vm9 = vcmp.le.f32.partialorder %v7190_v33, 0.7853982  ;;  %v2377_v44 = vadd.s32 %v2375_v57, %v2373_v37  ;;  %v2325_v10 = vsel %vm2321_vm14, %v6593_v16, %v2324_v2  ;;  %v2357_v42 = vadd.s32 %v2356_v20, %v2347_v62 }
 0x28d   : > { %v2249_v24 = vor.u32 4788187, %v2248_v46  ;;  %v6680_v43 = vsel %vm6671_vm9, 0, %v2257_v0  ;;  %v2369_v56 = vshrl.u32 %v2364_v13, 16  ;;  %v2252_v52 = vcvt.s32.f32 %v2245_v36 }
 0x28e   : > { %v2378_v61 = vadd.s32 %v2377_v44, %v2367_v50  ;;  %v2376_v3 = vadd.s32 %v2372_v35, %v2368_v49  ;;  %v2276_v53 = vadd.s32 3, %v6680_v43  ;;  %v2326_v39 = vsel %vm2320_vm0, %v2323_v55, %v2325_v10 }
 0x28f   : > { %v2250_v19 = vand.u32 2147483647, %v2249_v24  ;;  %v2600_v40 = vand.u32 3, %v5194_v41  ;;  %v2908_v34 = vand.u32 3, %v5381_v11  ;;  %v2380_v2 = vmul.u32 %v6627_v26, %v2326_v39 }
 0x290   : > { %v2379_v48 = vadd.s32 %v2378_v61, %v2369_v56  ;;  %vm2382_vm4 = vc.u32 %v2357_v42, %v2376_v3  ;;  %v6692_v13 = vand.u32 3, %v5325_v14  ;;  %v6694_v35 = vand.u32 3, %v2276_v53  ;;  %v7199_v61 = vld [vmem:[#allocation18_spill] sm:$0xff]  ;;  %v7200_v53 = vld [vmem:[#allocation9_spill] sm:$0xff] }
 0x291   : > { %v2253_v63 = vmul.f32 %v2252_v52, %v2250_v19  ;;  %vm2601_vm14 = vcmp.lt.s32.totalorder %v2600_v40, 2  ;;  %vm2602_vm0 = vcmp.eq.s32.totalorder %v2600_v40, 0  ;;  %v6699_v41 = vand.u32 3, %v5575_v54 }
 0x292   : > { %v2383_v51 = vadd.s32 1, %v2379_v48  ;;  %v6706_v26 = vadd.s32 %v2376_v3, %v2357_v42  ;;  %vm2605_vm13 = vcmp.eq.s32.totalorder %v2600_v40, 2  ;;  %vm2909_vm5 = vcmp.lt.s32.totalorder %v2908_v34, 2 }
 0x293   : > { %v2254_v16 = vxor.u32 2147483648, %v2253_v63  ;;  %vm2759_vm2 = vcmp.eq.s32.totalorder %v6692_v13, 2  ;;  %vm2910_vm15 = vcmp.eq.s32.totalorder %v2908_v34, 0  ;;  %v7193_v54 = vxor.u32 2147483648, %v5281_v31 }
 0x294   : > { %v2384_v5 = vsel %vm2382_vm4, %v2383_v51, %v2379_v48  ;;  %vm2913_vm4 = vcmp.eq.s32.totalorder %v2908_v34, 2  ;;  %v7194_v25 = vxor.u32 2147483648, %v5276_v32  ;;  %v3216_v0 = vand.u32 3, %v5689_v23  ;;  %v7202_v48 = vld [vmem:[#allocation8_spill] sm:$0xff]  ;;  %v7204_v51 = vld [vmem:[#allocation22_spill] sm:$0xff] }
 0x295   : > { %v2255_v22 = vsel %vm2134_vm7, %v2254_v16, %v2253_v63  ;;  %v2385_v1 = vadd.s32 %v2384_v5, %v2380_v2  ;;  %vm2756_vm7 = vcmp.eq.s32.totalorder %v6692_v13, 0  ;;  %v2604_v49 = vsel %vm2602_vm0, %v5276_v32, %v7193_v54 }
 0x296   : > { %v6704_v11 = vsel %vm6671_vm9, %v6373_v15, %v2255_v22  ;;  %v2607_v29 = vsel %vm2605_vm13, %v7194_v25, %v5281_v31  ;;  %vm2755_vm9 = vcmp.lt.s32.totalorder %v6692_v13, 2  ;;  %v6721_v20 = vand.u32 3, %v5821_v30 }
 0x297   : > { %v2260_v14 = vmul.f32 %v6704_v11, %v6704_v11  ;;  %v2386_v45 = vadd.s32 536870912, %v2385_v1  ;;  %v2608_v62 = vsel %vm2601_vm14, %v2604_v49, %v2607_v29  ;;  %vm3064_vm0 = vcmp.eq.s32.totalorder %v6699_v41, 0  ;;  %v7206_v49 = vld [vmem:[#allocation13_spill] sm:$0xff]  ;;  %v7208_v29 = vld [vmem:[#allocation12_spill] sm:$0xff] }
 0x298   : > { %vm3067_vm8 = vcmp.eq.s32.totalorder %v6699_v41, 2  ;;  %v2609_v32 = vsel %vm415_vm6, nan, %v2608_v62  ;;  %v7195_v31 = vxor.u32 2147483648, %v5513_v59  ;;  %vm3063_vm13 = vcmp.lt.s32.totalorder %v6699_v41, 2  ;;  %v7211_v41 = vld [vmem:[#allocation7_spill] sm:$0xff] }
 0x299   : > { %v2261_v37 = vmul.f32 -0.001358992, %v2260_v14  ;;  %v2268_v36 = vmul.f32 -0.00019511016, %v2260_v14  ;;  %v6723_v46 = vshrl.u32 %v2386_v45, 30  ;;  %v6735_v30 = vand.u32 3, %v6167_v9 }
 0x29a   : > { %v2912_v23 = vsel %vm2910_vm15, %v5497_v47, %v7195_v31  ;;  %v6738_v57 = vand.u32 3, %v6543_v6  ;;  %v2915_v50 = vsel %vm2913_vm4, %v7196_v17, %v5513_v59  ;;  %vm3217_vm6 = vcmp.lt.s32.totalorder %v3216_v0, 2  ;;  %4612 = vst [vmem:[%s5320_s3 + $0x8] sm:$0xff] %v2609_v32  ;;  %v7213_v17 = vld [vmem:[#allocation17_spill] sm:$0xff] }
 0x29b   : > { %v2262_v33 = vadd.f32 0.041655596, %v2261_v37  ;;  %v2269_v8 = vadd.f32 0.008332121, %v2268_v36  ;;  %v2388_v55 = vshll.u32 %v6723_v46, 30  ;;  %v2916_v44 = vsel %vm2909_vm5, %v2912_v23, %v2915_v50  ;;  %v7226_v45 = vld [vmem:[#allocation25_spill] sm:$0xff] }
 0x29c   : > { %vm3218_vm14 = vcmp.eq.s32.totalorder %v3216_v0, 0  ;;  %vm3221_vm15 = vcmp.eq.s32.totalorder %v3216_v0, 2  ;;  %vm3372_vm12 = vcmp.eq.s32.totalorder %v6721_v20, 0  ;;  %vm2282_vm10 = vcmp.eq.s32.totalorder %v6694_v35, 2 }
 0x29d   : > { %v2263_v9 = vmul.f32 %v2262_v33, %v2260_v14  ;;  %v2270_v24 = vmul.f32 %v2269_v8, %v2260_v14  ;;  %v6747_v10 = vsub.s32 %v2385_v1, %v2388_v55  ;;  %v2917_v47 = vsel %vm725_vm3, nan, %v2916_v44  ;;  %v7215_v44 = vld [vmem:[#allocation16_spill] sm:$0xff] }
 0x29e   : > { %v7197_v59 = vxor.u32 2147483648, %v5745_v4  ;;  %v7198_v42 = vxor.u32 2147483648, %v5735_v58  ;;  %vm3371_vm5 = vcmp.lt.s32.totalorder %v6721_v20, 2  ;;  %v6761_v19 = vand.u32 3, %v7199_v61  ;;  %4614 = vst [vmem:[%s5320_s3 + $0x28] sm:$0xff] %v2917_v47 }
 0x29f   : > { %v2264_v52 = vadd.f32 -0.4999988, %v2263_v9  ;;  %v2271_v3 = vadd.f32 -0.16666654, %v2270_v24  ;;  %vm2390_vm4 = vcmp.lt.s32.totalorder %v6747_v10, 0  ;;  %v2391_v21 = vsub.s32 0, %v6747_v10 }
 0x2a0   : > { %v3220_v6 = vsel %vm3218_vm14, %v5735_v58, %v7197_v59  ;;  %v3223_v56 = vsel %vm3221_vm15, %v7198_v42, %v5745_v4  ;;  %vm2279_vm3 = vcmp.eq.s32.totalorder %v6694_v35, 0  ;;  %v7201_v39 = vxor.u32 2147483648, %v7200_v53 }
 0x2a1   : > { %v7203_v4 = vxor.u32 2147483648, %v7202_v48  ;;  %v3224_v63 = vsel %vm3217_vm6, %v3220_v6, %v3223_v56  ;;  %v6778_v34 = vand.u32 3, %v7204_v51  ;;  %v2265_v16 = vmul.f32 %v2264_v52, %v2260_v14 }
 0x2a2   : > { %v2758_v58 = vsel %vm2756_vm7, %v7202_v48, %v7201_v39  ;;  %v2272_v2 = vmul.f32 %v2271_v3, %v2260_v14  ;;  %vm2278_vm14 = vcmp.lt.s32.totalorder %v6694_v35, 2  ;;  %v2392_v5 = vsel %vm2390_vm4, %v2391_v21, %v6747_v10  ;;  %v7217_v3 = vld [vmem:[#allocation10_spill] sm:$0xff]  ;;  %v7222_v35 = vld [vmem:[#allocation20_spill] sm:$0xff] }
 0x2a3   : > { %v2761_v40 = vsel %vm2759_vm2, %v7203_v4, %v7200_v53  ;;  %vm2275_vm7 = vweird.f32 %v6373_v15  ;;  %v2393_v1 = vclz %v2392_v5  ;;  %v7207_v25 = vxor.u32 2147483648, %v7206_v49 }
 0x2a4   : > { %v2762_v22 = vsel %vm2755_vm9, %v2758_v58, %v2761_v40  ;;  %v7209_v0 = vxor.u32 2147483648, %v7208_v29  ;;  %v6798_v37 = vadd.f32 1.0, %v2265_v16  ;;  %v2273_v36 = vadd.f32 1.0, %v2272_v2  ;;  %v7219_v40 = vld [vmem:[#allocation27_spill] sm:$0xff] }
 0x2a5   : > { %v2763_v54 = vsel %vm570_vm1, nan, %v2762_v22  ;;  %v3066_v14 = vsel %vm3064_vm0, %v7208_v29, %v7207_v25  ;;  %v3225_v31 = vsel %vm1035_vm11, nan, %v3224_v63  ;;  %v4758_v23 = vadd.s32 4294967294, %v2393_v1  ;;  %v7220_v63 = vld [vmem:[#allocation26_spill] sm:$0xff] }
 0x2a6   : > { %v3069_v13 = vsel %vm3067_vm8, %v7209_v0, %v7206_v49  ;;  %4613 = vst [vmem:[%s5320_s3 + $0x18] sm:$0xff] %v2763_v54  ;;  %vm3375_vm1 = vcmp.eq.s32.totalorder %v6721_v20, 2  ;;  %vm3526_vm2 = vcmp.eq.s32.totalorder %v6761_v19, 0  ;;  %vm3837_vm9 = vcmp.eq.s32.totalorder %v6735_v30, 2  ;;  %v7228_v49 = vld [vmem:[#allocation24_spill] sm:$0xff] }
 0x2a7   : > { %v3070_v62 = vsel %vm3063_vm13, %v3066_v14, %v3069_v13  ;;  %4616 = vst [vmem:[%s5320_s3 + $0x48] sm:$0xff] %v3225_v31  ;;  %v6810_v33 = vmul.f32 %v2273_v36, %v6704_v11  ;;  %v2283_v8 = vxor.u32 2147483648, %v6798_v37  ;;  %vm7212_vm8 = vweird.f32 %v7211_v41 }
 0x2a8   : > { %v3071_v55 = vsel %vm7212_vm8, nan, %v3070_v62  ;;  %v7214_v50 = vxor.u32 2147483648, %v7213_v17  ;;  %vm3525_vm11 = vcmp.lt.s32.totalorder %v6761_v19, 2  ;;  %vm4759_vm0 = vcmp.lt.s32.totalorder %v4758_v23, 0 }
 0x2a9   : > { %v7216_v24 = vxor.u32 2147483648, %v7215_v44  ;;  %vm3529_vm13 = vcmp.eq.s32.totalorder %v6761_v19, 2  ;;  %vm3679_vm6 = vcmp.lt.s32.totalorder %v6778_v34, 2  ;;  %vm3834_vm15 = vcmp.eq.s32.totalorder %v6735_v30, 0  ;;  %4615 = vst [vmem:[%s5320_s3 + $0x38] sm:$0xff] %v3071_v55  ;;  %v7235_v55 = vld [vmem:[#allocation14_spill] sm:$0xff] }
 0x2aa   : > { %v3374_v9 = vsel %vm3372_vm12, %v7215_v44, %v7214_v50  ;;  %v2280_v11 = vxor.u32 2147483648, %v6810_v33  ;;  %v2284_v59 = vsel %vm2282_vm10, %v2283_v8, %v6810_v33  ;;  %v2396_v6 = vsel %vm4759_vm0, 0, %v4758_v23  ;;  %v7233_v23 = vld [vmem:[#allocation11_spill] sm:$0xff]  ;;  %v7240_v19 = vld [vmem:[#allocation28_spill] sm:$0xff] }
 0x2ab   : > { %v3377_v47 = vsel %vm3375_vm1, %v7216_v24, %v7213_v17  ;;  %vm3833_vm12 = vcmp.lt.s32.totalorder %v6735_v30, 2  ;;  %v2397_v56 = vsub.s32 32, %v2396_v6  ;;  %v2398_v61 = vshll.u32 %v6747_v10, %v2396_v6 }
 0x2ac   : > { %v3378_v42 = vsel %vm3371_vm5, %v3374_v9, %v3377_v47  ;;  %v2401_v52 = vsub.s32 4294967266, %v2396_v6  ;;  %vm7218_vm4 = vweird.f32 %v7217_v3  ;;  %v2281_v53 = vsel %vm2279_vm3, %v6798_v37, %v2280_v11  ;;  %v7238_v9 = vld [vmem:[#allocation29_spill] sm:$0xff] }
 0x2ad   : > { %v3379_v21 = vsel %vm7218_vm4, nan, %v3378_v42  ;;  %vm3680_vm10 = vcmp.eq.s32.totalorder %v6778_v34, 0  ;;  %vm3683_vm5 = vcmp.eq.s32.totalorder %v6778_v34, 2  ;;  %v3986_v20 = vand.u32 3, %v6312_v18 }
 0x2ae   : > { %vm4296_vm1 = vcmp.eq.s32.totalorder %v6738_v57, 0  ;;  %4617 = vst [vmem:[%s5320_s3 + $0x58] sm:$0xff] %v3379_v21  ;;  %v2285_v10 = vsel %vm2278_vm14, %v2281_v53, %v2284_v59  ;;  %v2399_v39 = vshrl.u32 %v6706_v26, %v2397_v56  ;;  %v2402_v48 = vadd.s32 127, %v2401_v52  ;;  %v7224_v26 = vld [vmem:[#allocation19_spill] sm:$0xff] }
 0x2af   : > { %v4140_v58 = vand.u32 3, %v6448_v7  ;;  %v2286_v4 = vsel %vm2275_vm7, nan, %v2285_v10  ;;  %v7221_v51 = vxor.u32 2147483648, %v7220_v63  ;;  %vm3987_vm3 = vcmp.lt.s32.totalorder %v3986_v20, 2  ;;  %v7242_v56 = vld [vmem:[#allocation15_spill] sm:$0xff] }
 0x2b0   : > { %vm3988_vm8 = vcmp.eq.s32.totalorder %v3986_v20, 0  ;;  %v2400_v16 = vor.u32 %v2399_v39, %v2398_v61  ;;  %v2403_v2 = vshll.u32 %v2402_v48, 23  ;;  %2454 = vst [vmem:[%s5320_s3 + $0xc0] sm:$0xff] %v2286_v4  ;;  %vm3991_vm14 = vcmp.eq.s32.totalorder %v3986_v20, 2  ;;  %v7248_v4 = vld [vmem:[#allocation30_spill] sm:$0xff] }
 0x2b1   : > { %v3839_v18 = vsel %vm3837_vm9, %v7221_v51, %v7219_v40  ;;  %vm4141_vm0 = vcmp.lt.s32.totalorder %v4140_v58, 2  ;;  %vm2289_vm4 = vcmp.lt.s32.totalorder %v6357_v27, 0  ;;  %v7223_v7 = vxor.u32 2147483648, %v7222_v35 }
 0x2b2   : > { %v7225_v22 = vxor.u32 2147483648, %v7224_v26  ;;  %v7227_v54 = vxor.u32 2147483648, %v7226_v45  ;;  %v7229_v29 = vxor.u32 2147483648, %v7228_v49  ;;  %v7230_v0 = vand.u32 2147483647, %v6357_v27 }
 0x2b3   : > { %v3528_v5 = vsel %vm3526_vm2, %v7224_v26, %v7223_v7  ;;  %v2404_v36 = vor.u32 4788187, %v2403_v2  ;;  %v2407_v62 = vcvt.s32.f32 %v2400_v16  ;;  %vm7234_vm9 = vweird.f32 %v7233_v23 }
 0x2b4   : > { %v3531_v1 = vsel %vm3529_vm13, %v7225_v22, %v7222_v35  ;;  %v3682_v25 = vsel %vm3680_vm10, %v7228_v49, %v7227_v54  ;;  %v3685_v14 = vsel %vm3683_vm5, %v7229_v29, %v7226_v45  ;;  %vm6885_vm2 = vcmp.le.f32.partialorder %v7230_v0, 0.7853982 }
 0x2b5   : > { %v3532_v32 = vsel %vm3525_vm11, %v3528_v5, %v3531_v1  ;;  %v3686_v31 = vsel %vm3679_vm6, %v3682_v25, %v3685_v14  ;;  %vm7236_vm13 = vweird.f32 %v7235_v55  ;;  %v7237_v50 = vxor.u32 2147483648, %v7219_v40 }
 0x2b6   : > { %v3533_v41 = vsel %vm7234_vm9, nan, %v3532_v32  ;;  %v3687_v17 = vsel %vm7236_vm13, nan, %v3686_v31  ;;  %v7239_v24 = vxor.u32 2147483648, %v7238_v9  ;;  %v2405_v34 = vand.u32 2147483647, %v2404_v36 }
 0x2b7   : > { %v3836_v44 = vsel %vm3834_vm15, %v7220_v63, %v7237_v50  ;;  %v7241_v6 = vxor.u32 2147483648, %v7240_v19  ;;  %vm4142_vm11 = vcmp.eq.s32.totalorder %v4140_v58, 0  ;;  %4618 = vst [vmem:[%s5320_s3 + $0x68] sm:$0xff] %v3533_v41  ;;  %vm7243_vm6 = vweird.f32 %v7242_v56  ;;  %v7249_v63 = vld [vmem:[#allocation21_spill] sm:$0xff] }
 0x2b8   : > { %v3990_v47 = vsel %vm3988_vm8, %v7240_v19, %v7239_v24  ;;  %v3840_v59 = vsel %vm3833_vm12, %v3836_v44, %v3839_v18  ;;  %v7244_v3 = vxor.u32 2147483648, %v6484_v38  ;;  %vm4145_vm15 = vcmp.eq.s32.totalorder %v4140_v58, 2  ;;  %4619 = vst [vmem:[%s5320_s3 + $0x78] sm:$0xff] %v3687_v17 }
 0x2b9   : > { %v3993_v42 = vsel %vm3991_vm14, %v7241_v6, %v7238_v9  ;;  %v3841_v61 = vsel %vm7243_vm6, nan, %v3840_v59  ;;  %v2408_v30 = vmul.f32 %v2407_v62, %v2405_v34  ;;  %vm7245_vm12 = vweird.f32 %v6025_v28 }
 0x2ba   : > { %v3994_v52 = vsel %vm3987_vm3, %v3990_v47, %v3993_v42  ;;  %v4144_v21 = vsel %vm4142_vm11, %v6478_v60, %v7244_v3  ;;  %v7246_v10 = vxor.u32 2147483648, %v6478_v60  ;;  %v7247_v48 = vxor.u32 2147483648, %v6637_v12  ;;  %4620 = vst [vmem:[%s5320_s3 + $0x88] sm:$0xff] %v3841_v61 }
 0x2bb   : > { %v3995_v53 = vsel %vm7245_vm12, nan, %v3994_v52  ;;  %vm4295_vm10 = vcmp.lt.s32.totalorder %v6738_v57, 2  ;;  %vm4299_vm5 = vcmp.eq.s32.totalorder %v6738_v57, 2  ;;  %v4448_v28 = vand.u32 3, %v6680_v43  ;;  %v7252_v57 = vld [vmem:[#allocation23_spill] sm:$0xff] }
 0x2bc   : > { %v4147_v39 = vsel %vm4145_vm15, %v7246_v10, %v6484_v38  ;;  %v4298_v20 = vsel %vm4296_vm1, %v7248_v4, %v7247_v48  ;;  %4621 = vst [vmem:[%s5320_s3 + $0x98] sm:$0xff] %v3995_v53  ;;  %v2409_v60 = vxor.u32 2147483648, %v2408_v30  ;;  %v2411_v38 = vsub.s32 4, %v6723_v46 }
 0x2bd   : > { %v4148_v40 = vsel %vm4141_vm0, %v4144_v21, %v4147_v39  ;;  %vm7250_vm3 = vweird.f32 %v7249_v63  ;;  %v7251_v18 = vxor.u32 2147483648, %v7248_v4  ;;  %vm4449_vm1 = vcmp.lt.s32.totalorder %v4448_v28, 2 }
 0x2be   : > { %v4149_v51 = vsel %vm7250_vm3, nan, %v4148_v40  ;;  %vm4450_vm8 = vcmp.eq.s32.totalorder %v4448_v28, 0  ;;  %vm4453_vm14 = vcmp.eq.s32.totalorder %v4448_v28, 2  ;;  %v2410_v43 = vsel %vm2289_vm4, %v2409_v60, %v2408_v30 }
 0x2bf   : > { %v4301_v58 = vsel %vm4299_vm5, %v7251_v18, %v6637_v12  ;;  %4622 = vst [vmem:[%s5320_s3 + $0xa8] sm:$0xff] %v4149_v51  ;;  %vm7253_vm0 = vweird.f32 %v7252_v57  ;;  %v4452_v35 = vsel %vm4450_vm8, %v6798_v37, %v2280_v11  ;;  %v4455_v7 = vsel %vm4453_vm14, %v2283_v8, %v6810_v33 }
 0x2c0   : > { %v4302_v16 = vsel %vm4295_vm10, %v4298_v20, %v4301_v58  ;;  %v2413_v12 = vsel %vm6885_vm2, %v6357_v27, %v2410_v43  ;;  %v4456_v26 = vsel %vm4449_vm1, %v4452_v35, %v4455_v7  ;;  %v2412_v1 = vsel %vm2289_vm4, %v2411_v38, %v6723_v46 }
 0x2c1   : > { %v4303_v2 = vsel %vm7253_vm0, nan, %v4302_v16  ;;  %v2415_v5 = vmul.f32 %v2413_v12, %v2413_v12  ;;  %v4457_v22 = vsel %vm2275_vm7, nan, %v4456_v26  ;;  %v2414_v33 = vsel %vm6885_vm2, 0, %v2412_v1 }
 0x2c2   : > { %4623 = vst [vmem:[%s5320_s3 + $0xb8] sm:$0xff] %v4303_v2  ;;  %v2431_v14 = vadd.s32 3, %v2414_v33  ;;  %v4602_v31 = vand.u32 3, %v2414_v33  ;;  %vm2430_vm6 = vweird.f32 %v6357_v27 }
 0x2c3   : > { %4624 = vst [vmem:[%s5320_s3 + $0xc8] sm:$0xff] %v4457_v22  ;;  %v2416_v11 = vmul.f32 -0.001358992, %v2415_v5  ;;  %v2423_v45 = vmul.f32 -0.00019511016, %v2415_v5 }
 0x2c4   : > { %v2432_v32 = vand.u32 3, %v2431_v14  ;;  %vm4603_vm9 = vcmp.lt.s32.totalorder %v4602_v31, 2  ;;  %vm4604_vm13 = vcmp.eq.s32.totalorder %v4602_v31, 0  ;;  %vm4607_vm11 = vcmp.eq.s32.totalorder %v4602_v31, 2 }
 0x2c5   : > { %v2417_v54 = vadd.f32 0.041655596, %v2416_v11  ;;  %v2424_v37 = vadd.f32 0.008332121, %v2423_v45 }
 0x2c6   : > { %vm2433_vm7 = vcmp.lt.s32.totalorder %v2432_v32, 2  ;;  %vm2434_vm4 = vcmp.eq.s32.totalorder %v2432_v32, 0  ;;  %vm2437_vm2 = vcmp.eq.s32.totalorder %v2432_v32, 2 }
 0x2c7   : > { %v2418_v8 = vmul.f32 %v2417_v54, %v2415_v5  ;;  %v2425_v49 = vmul.f32 %v2424_v37, %v2415_v5 }
 0x2c9   : > { %v2419_v25 = vadd.f32 -0.4999988, %v2418_v8  ;;  %v2426_v29 = vadd.f32 -0.16666654, %v2425_v49 }
 0x2cb   : > { %v2420_v0 = vmul.f32 %v2419_v25, %v2415_v5  ;;  %v2427_v15 = vmul.f32 %v2426_v29, %v2415_v5 }
 0x2cd   : > { %v2421_v36 = vadd.f32 1.0, %v2420_v0  ;;  %v2428_v62 = vadd.f32 1.0, %v2427_v15 }
 0x2cf   : > { %v2429_v23 = vmul.f32 %v2428_v62, %v2413_v12  ;;  %v2438_v46 = vxor.u32 2147483648, %v2421_v36 }
 0x2d1   : > { %v2435_v41 = vxor.u32 2147483648, %v2429_v23  ;;  %v2439_v55 = vsel %vm2437_vm2, %v2438_v46, %v2429_v23  ;;  %v4609_v50 = vsel %vm4607_vm11, %v2438_v46, %v2429_v23 }
 0x2d3   : > { %v2436_v13 = vsel %vm2434_vm4, %v2421_v36, %v2435_v41  ;;  %v4606_v17 = vsel %vm4604_vm13, %v2421_v36, %v2435_v41  ;;  %4633 = sbr.rel (!%p5007_p5) target bundleno = 759 (0x2f7), region = 32 }
 0x2d4   : > { %v2440_v44 = vsel %vm2433_vm7, %v2436_v13, %v2439_v55  ;;  %v4610_v9 = vsel %vm4603_vm9, %v4606_v17, %v4609_v50 }
 0x2d5   : > { %v2441_v24 = vsel %vm2430_vm6, nan, %v2440_v44  ;;  %v4611_v19 = vsel %vm2430_vm6, nan, %v4610_v9 }
 0x2d6   : > { %2455 = vst [vmem:[%s5320_s3 + $0xd0] sm:$0xff] %v2441_v24 }
 0x2d7   : > { %4625 = vst [vmem:[%s5320_s3 + $0xd8] sm:$0xff] %v4611_v19 }
 0x2d8   : > { %s7260_s14 = smov (!%p4636_p11, %s4635_s14), 14 }
 0x2d9   : > { %s4811_s16 = sshll.u32 %s7260_s14, 4 }
 0x2da   : > { %s4640_s17 = ssub.s32 224, %s4811_s16 }
 0x2db   : > { %s4641_s22 = sshll.u32 %s4640_s17, 4 }
 0x2dc   : > { %4642 = vsyncadd %s6970_s8, %s4641_s22  ;;  %p6979_p12 = scmp.ne.s32.totalorder %s4811_s16, 0  ;;  %s4814_s19 = smul.u32 224, %s4990_s13 }
 0x2dd   : > { %s4648_s24 = sshll.u32 %s5320_s3, 4  ;;  %s4808_s21 = sshll.u32 %s7260_s14, 8  ;;  %s6989_s24 = int_to_ptr.vmem [resolvable:$true] %s4648_s24 }
 0x2de   : > { %s4646_s27 = scalar_lea.hbm %s7033_s2, %s4814_s19  ;;  %s4869_s29 = sshra.s32 %s6989_s24, 4  ;;  %s4870_s29 = int_to_ptr.vmem [resolvable:$true] %s4869_s29 }
 0x2df   : > { %s4650_s28 = sshll.u32 %s4646_s27, 4  ;;  %s4871_s30 = sshrl.u32 %s4808_s21, 4  ;;  %s6991_s28 = int_to_ptr.hbm [resolvable:$true] %s4650_s28 }
 0x2e0   : > { %s4876_s4 = scalar_lea.vmem %s4870_s29, %s4871_s30  ;;  %s4951_s13 = smov [#allocation2]  }
 0x2e1   : > { %p4877_p13 = scmp.ne.s32.totalorder %s4870_s29, %s4876_s4  ;;  %s4880_s3 = scalar_lea.vmem %s4951_s13, 448 }
 0x2e2   : > { %p4882_p2 = scmp.lt.s32.totalorder %s4880_s3, %s4876_s4 }
 0x2e3   : > { %p4878_p0 = pnand %p4877_p13, %p6979_p12 }
 0x2e5   : > { %p4879_p1 = pneg %p4878_p0 }
 0x2e7   : > { %p4884_p3 = pnand %p4882_p2, %p4879_p1 }
 0x2e9   : > { %4887 = shalt.err (!%p4884_p3)
}
 0x2ea   : > { %s4888_s5 = sshra.s32 %s6991_s28, 4  ;;  %s4899_s17 = scalar_lea.hbm %s7033_s2, 400  ;;  %s4889_s5 = int_to_ptr.hbm [resolvable:$true] %s4888_s5 }
 0x2eb   : > { %s4895_s6 = scalar_lea.hbm %s4889_s5, %s4871_s30  ;;  %p4900_p8 = scmp.lt.s32.totalorder %s4889_s5, %s7033_s2 }
 0x2ec   : > { %p4896_p4 = scmp.ne.s32.totalorder %s4889_s5, %s4895_s6  ;;  %p4901_p9 = scmp.lt.s32.totalorder %s4899_s17, %s4895_s6 }
 0x2ee   : > { %p4897_p5 = pnand %p4896_p4, %p6979_p12  ;;  %p4902_p10 = por %p4901_p9, %p4900_p8 }
 0x2f0   : > { %p4898_p7 = pneg %p4897_p5 }
 0x2f2   : > { %p4903_p11 = pnand %p4902_p10, %p4898_p7 }
 0x2f4   : > { %4906 = shalt.err (!%p4903_p11)
}
 0x2f5   : > { %s4952_s25 = smov 256   ;;  %s4953_s26 = smov 16  }
 0x2f6   : > { %4656 = dma.vmem_to_hbm [thread:$0]  (%p6979_p12), %s6989_s24, %s4808_s21, %s6991_s28, %s6970_s8, %s4952_s25, %s4952_s25, %s4953_s26  }
 0x2f7 PF: > { %p4821_p13 = scmp.ge.s32.totalorder %s4942_s12, 2  ;;  %s4665_s27 = sand.u32 1, %s4930_s9  }
 0x2f8   : > { %s4666_s29 = scalar_lea.sflag [#allocation3], %s4665_s27 }
 0x2f9   : > { %p4818_p0 = pnand %p4821_p13, %p5011_p6 }
 0x2fb   : > { %p4819_p1 = pneg %p4818_p0 }
 0x2fd   : > { %4925 = dma.done.wait (%p4819_p1), %s4666_s29, 3584  }
 0x2fe   : > { %4927 = vsyncadd (%p4819_p1), %s4666_s29, 4294963712  ;;  %p12_p2 = scmp.ge.s32.totalorder %s4994_s15, 4   ;;  %s7255_s9 = smov %s4934_s10 }
 0x2ff   : > { %s7256_s10 = smov %s4938_s11  ;;  %s7257_s11 = smov %s5005_s18 }
 0x300   : > { %s7258_s12 = smov %s4994_s15  ;;  %14 = sbr.rel (!%p12_p2) target bundleno = 3 (0x3), region = 63 }
 0x305   :  { %4672 = vsyncpa [#allocation3], 1 }
 0x306   :  { %4674 = vsyncpa [#allocation3 + $0x1], 1 }

</bundles_post_ra>
